<compile_context>
chip_gen: v6e
topology: v6e:2x2x1
jax: 0.10.0
libtpu: 0.0.40
codegen_flags: <defaults>
</compile_context>

<pallas_src>
import numpy as np
import jax
import jax.numpy as jnp
from jax.experimental import pallas as pl
from jax.experimental.pallas import tpu as pltpu

# ----------------------------- configuration -------------------------------
IN_CHANNELS = 4
PATCH_SIZE = 4
IMAGE_SIZE = 16
EMB_SIZE = 32
ENCODER_LAYERS = 2
DECODER_LAYERS = 1
N_HEADS = 4
FF_HIDDEN_MULT = 4
MASK_RATIO = 0.75

GRID_SIZE = IMAGE_SIZE // PATCH_SIZE
NUM_PATCHES = GRID_SIZE * GRID_SIZE
PATCH_DIM = PATCH_SIZE * PATCH_SIZE * IN_CHANNELS
HEAD_DIM = EMB_SIZE // N_HEADS
FF_HIDDEN = FF_HIDDEN_MULT * EMB_SIZE
LN_EPS = 1e-5

DP = 128            # lane-padded feature width (EMB_SIZE=32 -> 128, FF_HIDDEN=128)
PDP = 128           # lane-padded patch dim (PATCH_DIM=64 -> 128)
NUM_MATS = 6        # wq, wk, wv, wo, w1, w2
NUM_VECS = 16       # bq,bk,bv,bo,b1,b2,ln1g,ln1b,ln2g,ln2b (+ padding rows)

ARBITRARY_1D = pltpu.CompilerParams(dimension_semantics=("arbitrary",))


# ----------------------- sin/cos positional embedding ----------------------
def get_1d_sincos_pos_embed_from_grid(embed_dim, pos):
    assert embed_dim % 2 == 0
    omega = np.arange(embed_dim // 2, dtype=np.float64)
    omega /= embed_dim / 2.0
    omega = 1.0 / 10000 ** omega
    pos = pos.reshape(-1)
    out = np.einsum('m,d->md', pos, omega)
    return np.concatenate([np.sin(out), np.cos(out)], axis=1)


def get_sincos_pos_embed_from_grid(embed_dim, grid):
    assert embed_dim % 2 == 0
    emb_h = get_1d_sincos_pos_embed_from_grid(embed_dim // 2, grid[0])
    emb_w = get_1d_sincos_pos_embed_from_grid(embed_dim // 2, grid[1])
    return np.concatenate([emb_h, emb_w], axis=1)


def get_2d_sincos_pos_embed(embed_dim, grid_size, cls_token=False):
    grid_h = np.arange(grid_size, dtype=np.float32)
    grid_w = np.arange(grid_size, dtype=np.float32)
    grid = np.meshgrid(grid_w, grid_h)
    grid = np.stack(grid, axis=0)
    grid = grid.reshape([2, 1, grid_size, grid_size])
    pos_embed = get_sincos_pos_embed_from_grid(embed_dim, grid)
    if cls_token:
        pos_embed = np.concatenate([np.zeros([1, embed_dim]), pos_embed], axis=0)
    return pos_embed


# ------------------------------- kernel helpers -----------------------------
def _ln_masked(x, g, b, vmask):
    """LayerNorm over the first EMB_SIZE lanes of a lane-padded (rows, 128) slab.

    `x` must be zero in the padded lanes; `g`/`b` are zero there, so the output
    stays zero-padded.
    """
    inv_d = 1.0 / float(EMB_SIZE)
    mu = jnp.sum(x, axis=-1, keepdims=True) * inv_d
    xc = (x - mu) * vmask
    var = jnp.sum(xc * xc, axis=-1, keepdims=True) * inv_d
    return xc * jax.lax.rsqrt(var + LN_EPS) * g + b


def _block_compute(x, wm_ref, wv_ref, B, S):
    """One transformer block on a (B*S, DP) lane-padded activation slab."""
    BS = B * S
    lane = jax.lax.broadcasted_iota(jnp.int32, (1, DP), 1)
    vmask = (lane < EMB_SIZE).astype(jnp.float32)

    w_q = wm_ref[0, 0, :, :]
    w_k = wm_ref[0, 1, :, :]
    w_v = wm_ref[0, 2, :, :]
    w_o = wm_ref[0, 3, :, :]
    w_1 = wm_ref[0, 4, :, :]
    w_2 = wm_ref[0, 5, :, :]
    b_q = wv_ref[0, 0:1, :]
    b_k = wv_ref[0, 1:2, :]
    b_v = wv_ref[0, 2:3, :]
    b_o = wv_ref[0, 3:4, :]
    b_1 = wv_ref[0, 4:5, :]
    b_2 = wv_ref[0, 5:6, :]
    ln1g = wv_ref[0, 6:7, :]
    ln1b = wv_ref[0, 7:8, :]
    ln2g = wv_ref[0, 8:9, :]
    ln2b = wv_ref[0, 9:10, :]

    q = jnp.dot(x, w_q, preferred_element_type=jnp.float32) + b_q
    k = jnp.dot(x, w_k, preferred_element_type=jnp.float32) + b_k
    v = jnp.dot(x, w_v, preferred_element_type=jnp.float32) + b_v

    # block-diagonal additive score bias: tokens only attend within their sample
    r = jax.lax.broadcasted_iota(jnp.int32, (BS, BS), 0)
    c = jax.lax.broadcasted_iota(jnp.int32, (BS, BS), 1)
    same = None
    for b in range(B):
        term = ((r >= b * S) & (r < (b + 1) * S)) & ((c >= b * S) & (c < (b + 1) * S))
        same = term if same is None else (same | term)
    score_bias = jnp.where(same, 0.0, -1e30).astype(jnp.float32)

    scale = 1.0 / float(HEAD_DIM) ** 0.5
    ctx = jnp.zeros((BS, DP), jnp.float32)
    for h in range(N_HEADS):                       # unrolled, 4 heads
        hmask = ((lane >= h * HEAD_DIM) & (lane < (h + 1) * HEAD_DIM)
                 ).astype(jnp.float32)
        qh = q * hmask
        vh = v * hmask
        s = jax.lax.dot_general(qh, k, (((1,), (1,)), ((), ())),
                                preferred_element_type=jnp.float32) * scale
        s = s + score_bias
        s = s - jnp.max(s, axis=-1, keepdims=True)
        p = jnp.exp(s)
        p = p * pl.reciprocal(jnp.sum(p, axis=-1, keepdims=True), approx=True)
        ctx = ctx + jnp.dot(p, vh, preferred_element_type=jnp.float32)

    attn_out = jnp.dot(ctx, w_o, preferred_element_type=jnp.float32) + b_o
    h1 = _ln_masked(attn_out + x, ln1g, ln1b, vmask)
    # TODO(synk): nn.Dropout(p=0.1) implemented as identity (eval semantics).
    ff = jnp.maximum(jnp.dot(h1, w_1, preferred_element_type=jnp.float32) + b_1, 0.0)
    ff = jnp.dot(ff, w_2, preferred_element_type=jnp.float32) + b_2
    return _ln_masked(ff + h1, ln2g, ln2b, vmask)


# ------------------------------- Pallas kernels -----------------------------
def patch_embed_cls(patches_flat, w, pvec, pos_patch, B, N):
    """Fused patch embedding + bias + pos-emb + per-sample cls-token prepend."""
    rows_out = B * (N + 1)

    def kernel(p_ref, w_ref, pv_ref, pos_ref, o_ref):
        emb = (jnp.dot(p_ref[...], w_ref[...], preferred_element_type=jnp.float32)
               + pv_ref[0:1, :])                                  # (B*N, DP)
        for b in range(B):                                        # unrolled, B small
            o_ref[pl.ds(b * (N + 1), 1), :] = pv_ref[1:2, :]      # cls + pos[0]
            o_ref[pl.ds(b * (N + 1) + 1, N), :] = (
                emb[b * N:(b + 1) * N, :] + pos_ref[...])

    return pl.pallas_call(
        kernel,
        out_shape=jax.ShapeDtypeStruct((rows_out, DP), jnp.float32),
    )(patches_flat, w, pvec, pos_patch)


def encoder_stack(x0, wm, wvec, norm_gb, B, S):
    """All encoder layers + final LayerNorm in one pallas_call (grid over layers)."""
    BS = B * S
    L = wm.shape[0]

    def kernel(x0_ref, wm_ref, wv_ref, nrm_ref, o_ref, act_ref):
        layer = pl.program_id(0)

        @pl.when(layer == 0)
        def _():
            act_ref[...] = x0_ref[...]

        y = _block_compute(act_ref[...], wm_ref, wv_ref, B, S)
        act_ref[...] = y
        o_ref[...] = y

        @pl.when(layer == pl.num_programs(0) - 1)
        def _():
            lane = jax.lax.broadcasted_iota(jnp.int32, (1, DP), 1)
            vmask = (lane < EMB_SIZE).astype(jnp.float32)
            o_ref[...] = _ln_masked(y, nrm_ref[0:1, :], nrm_ref[1:2, :], vmask)

    return pl.pallas_call(
        kernel,
        grid=(L,),
        in_specs=[pl.BlockSpec((BS, DP), lambda l: (0, 0)),
                  pl.BlockSpec((1, NUM_MATS, DP, DP), lambda l: (l, 0, 0, 0)),
                  pl.BlockSpec((1, NUM_VECS, DP), lambda l: (l, 0, 0)),
                  pl.BlockSpec((2, DP), lambda l: (0, 0))],
        out_specs=pl.BlockSpec((BS, DP), lambda l: (0, 0)),
        out_shape=jax.ShapeDtypeStruct((BS, DP), jnp.float32),
        scratch_shapes=[pltpu.VMEM((BS, DP), jnp.float32)],
        compiler_params=ARBITRARY_1D,
    )(x0, wm, wvec, norm_gb)


def decoder_stack(x0, wm, wvec, tailv, rec_w, target, mask_col, B, S):
    """All decoder layers + LayerNorm + reconstruction head + masked-MSE loss."""
    BS = B * S
    L = wm.shape[0]

    def kernel(x0_ref, wm_ref, wv_ref, tail_ref, recw_ref, tgt_ref, msk_ref,
               pred_ref, loss_ref, act_ref):
        layer = pl.program_id(0)

        @pl.when(layer == 0)
        def _():
            act_ref[...] = x0_ref[...]

        y = _block_compute(act_ref[...], wm_ref, wv_ref, B, S)
        act_ref[...] = y

        @pl.when(layer == pl.num_programs(0) - 1)
        def _():
            lane = jax.lax.broadcasted_iota(jnp.int32, (1, DP), 1)
            vmask = (lane < EMB_SIZE).astype(jnp.float32)
            xn = _ln_masked(y, tail_ref[0:1, :], tail_ref[1:2, :], vmask)
            pred = (jnp.dot(xn, recw_ref[...], preferred_element_type=jnp.float32)
                    + tail_ref[2:3, :])                           # (BS, PDP)
            pred_ref[...] = pred
            d = pred - tgt_ref[...]                               # padded lanes diff 0
            tot = jnp.sum(d * d * msk_ref[...])                   # masked SSE
            cnt = jnp.sum(msk_ref[...])                           # # masked patches
            loss = tot / (cnt * float(PATCH_DIM))
            loss_ref[...] = jnp.zeros((1, DP), jnp.float32) + loss

    return pl.pallas_call(
        kernel,
        grid=(L,),
        in_specs=[pl.BlockSpec((BS, DP), lambda l: (0, 0)),
                  pl.BlockSpec((1, NUM_MATS, DP, DP), lambda l: (l, 0, 0, 0)),
                  pl.BlockSpec((1, NUM_VECS, DP), lambda l: (l, 0, 0)),
                  pl.BlockSpec((8, DP), lambda l: (0, 0)),
                  pl.BlockSpec((DP, PDP), lambda l: (0, 0)),
                  pl.BlockSpec((BS, PDP), lambda l: (0, 0)),
                  pl.BlockSpec((BS, 1), lambda l: (0, 0))],
        out_specs=(pl.BlockSpec((BS, PDP), lambda l: (0, 0)),
                   pl.BlockSpec((1, DP), lambda l: (0, 0))),
        out_shape=(jax.ShapeDtypeStruct((BS, PDP), jnp.float32),
                   jax.ShapeDtypeStruct((1, DP), jnp.float32)),
        scratch_shapes=[pltpu.VMEM((BS, DP), jnp.float32)],
        compiler_params=ARBITRARY_1D,
    )(x0, wm, wvec, tailv, rec_w, target, mask_col)


# ------------------------------- model glue --------------------------------
def patchify(imgs, p):
    B, C, H, W = imgs.shape
    x = imgs.reshape(B, C, H // p, p, W // p, p)
    x = jnp.transpose(x, (0, 2, 4, 3, 5, 1))          # (B, H/p, W/p, p, p, C)
    return x.reshape(B, (H // p) * (W // p), p * p * C)


def random_mask_with_cls(x_with_cls, mask_ratio, key):
    B, N_seq, D = x_with_cls.shape
    N_patches = N_seq - 1
    N_sel = int(N_patches * (1 - mask_ratio))
    cls_tok = x_with_cls[:, 0:1]
    patches = x_with_cls[:, 1:]
    score = jax.random.uniform(key, (B, N_patches))
    idx_shuffle = jnp.argsort(score, axis=1)
    idx_sel = idx_shuffle[:, :N_sel]
    idx_restore = jnp.argsort(idx_shuffle, axis=1)
    patches_vis = jnp.take_along_axis(
        patches, jnp.broadcast_to(idx_sel[:, :, None], (B, N_sel, D)), axis=1)
    x_vis = jnp.concatenate([cls_tok, patches_vis], axis=1)
    bin_mask = jnp.ones((B, N_patches), dtype=bool).at[:, :N_sel].set(False)
    mask = jnp.take_along_axis(bin_mask, idx_restore, axis=1)
    return x_vis, mask, idx_restore, idx_sel


def mae_forward(params, imgs, mask_ratio, mask_key):
    B = imgs.shape[0]
    patches = patchify(imgs, PATCH_SIZE)                           # (B, N, 64)
    patches_flat = patches.reshape(B * NUM_PATCHES, PATCH_DIM)

    # --- patch embedding + pos emb + cls prepend (pallas_call #1) ---
    pos_enc = params['pos_emb_enc_pad']                            # (N+1, DP)
    pvec = jnp.concatenate(
        [params['pe_b_pad'], params['cls_token_pad'] + pos_enc[0:1]], axis=0)
    seq = patch_embed_cls(patches_flat, params['pe_w_pad'], pvec, pos_enc[1:],
                          B, NUM_PATCHES)
    seq = seq.reshape(B, NUM_PATCHES + 1, DP)
    # enc dropout: identity (eval semantics)

    x_vis, mask, idx_restore, _ = random_mask_with_cls(seq, mask_ratio, mask_key)
    S_enc = x_vis.shape[1]

    # --- encoder stack + final LayerNorm (pallas_call #2) ---
    y = encoder_stack(x_vis.reshape(B * S_enc, DP),
                      params['enc_wm'], params['enc_wv'], params['enc_norm'],
                      B, S_enc)
    y = y.reshape(B, S_enc, DP)

    # --- decoder token assembly (JAX glue: unshuffle + mask tokens) ---
    n_vis = S_enc - 1
    x_vis_patches = y[:, 1:]
    mask_tok = jnp.broadcast_to(params['mask_token_pad'][None],
                                (B, NUM_PATCHES - n_vis, DP))
    x_shuf = jnp.concatenate([x_vis_patches, mask_tok], axis=1)
    x_full = jnp.take_along_axis(
        x_shuf,
        jnp.broadcast_to(idx_restore[:, :, None], (B, NUM_PATCHES, DP)), axis=1)
    dec_in = (x_full + params['pos_emb_dec_pad'][None]).reshape(B * NUM_PATCHES, DP)

    # --- decoder stack + LayerNorm + rec head + masked MSE (pallas_call #3) ---
    tgt = jnp.pad(patches_flat, ((0, 0), (0, PDP - PATCH_DIM)))
    mask_col = mask.astype(jnp.float32).reshape(B * NUM_PATCHES, 1)
    pred_pad, loss_vec = decoder_stack(dec_in, params['dec_wm'], params['dec_wv'],
                                       params['dec_tailv'], params['rec_w_pad'],
                                       tgt, mask_col, B, NUM_PATCHES)
    pred = pred_pad[:, :PATCH_DIM].reshape(B, NUM_PATCHES, PATCH_DIM)
    return loss_vec[0, 0], pred, mask


# ----------------------------- parameter init ------------------------------
def _xavier(key, shape, fan_in, fan_out):
    limit = float(np.sqrt(6.0 / (fan_in + fan_out)))
    return jax.random.uniform(key, shape, jnp.float32, -limit, limit)


def _pad2(x, rows, cols):
    return jnp.pad(x, ((0, rows - x.shape[0]), (0, cols - x.shape[1])))


def init_block_packed(key):
    """One transformer block, packed & lane-padded: (6,128,128) mats, (16,128) vecs."""
    D, H = EMB_SIZE, FF_HIDDEN
    ks = jax.random.split(key, 6)
    wq = _xavier(ks[0], (D, D), D, D)
    wk = _xavier(ks[1], (D, D), D, D)
    wv = _xavier(ks[2], (D, D), D, D)
    wo = _xavier(ks[3], (D, D), D, D)
    w1 = _xavier(ks[4], (D, H), D, H)
    w2 = _xavier(ks[5], (H, D), H, D)
    mats = jnp.stack([_pad2(wq, DP, DP), _pad2(wk, DP, DP), _pad2(wv, DP, DP),
                      _pad2(wo, DP, DP), _pad2(w1, DP, DP), _pad2(w2, DP, DP)])
    ones_d = jnp.pad(jnp.ones((D,), jnp.float32), (0, DP - D))
    vecs = jnp.zeros((NUM_VECS, DP), jnp.float32)
    # rows 0-5: biases (zero); rows 6/8: LayerNorm gains (1 on valid lanes);
    # rows 7/9: LayerNorm biases (zero); rest padding.
    vecs = vecs.at[6].set(ones_d).at[8].set(ones_d)
    return mats, vecs


def init_params(key):
    ks = jax.random.split(key, 4 + ENCODER_LAYERS + DECODER_LAYERS)
    pe_w = _xavier(ks[0], (PATCH_DIM, EMB_SIZE),
                   IN_CHANNELS * PATCH_SIZE * PATCH_SIZE,
                   EMB_SIZE * PATCH_SIZE * PATCH_SIZE)
    pe_b = 1e-6 * jax.random.normal(ks[1], (EMB_SIZE,), jnp.float32)
    rec_w = _xavier(ks[2], (EMB_SIZE, PATCH_DIM), EMB_SIZE, PATCH_DIM)

    pos_enc = jnp.asarray(get_2d_sincos_pos_embed(EMB_SIZE, GRID_SIZE, cls_token=True),
                          jnp.float32)                             # (N+1, 32)
    pos_dec = jnp.asarray(get_2d_sincos_pos_embed(EMB_SIZE, GRID_SIZE, cls_token=False),
                          jnp.float32)                             # (N, 32)

    enc_m, enc_v, dec_m, dec_v = [], [], [], []
    for i in range(ENCODER_LAYERS):
        m, v = init_block_packed(ks[4 + i])
        enc_m.append(m); enc_v.append(v)
    for i in range(DECODER_LAYERS):
        m, v = init_block_packed(ks[4 + ENCODER_LAYERS + i])
        dec_m.append(m); dec_v.append(v)

    ones_d = jnp.pad(jnp.ones((EMB_SIZE,), jnp.float32), (0, DP - EMB_SIZE))
    enc_norm = jnp.stack([ones_d, jnp.zeros((DP,), jnp.float32)])  # (2, DP): gamma, beta
    dec_tailv = jnp.zeros((8, DP), jnp.float32).at[0].set(ones_d)  # rows: g, b, rec_bias

    return dict(
        pe_w_pad=_pad2(pe_w, PATCH_DIM, DP),                       # (64, 128)
        pe_b_pad=jnp.pad(pe_b, (0, DP - EMB_SIZE))[None, :],       # (1, 128)
        cls_token_pad=jnp.zeros((1, DP), jnp.float32),
        mask_token_pad=jnp.zeros((1, DP), jnp.float32),
        pos_emb_enc_pad=_pad2(pos_enc, NUM_PATCHES + 1, DP),       # (17, 128)
        pos_emb_dec_pad=_pad2(pos_dec, NUM_PATCHES, DP),           # (16, 128)
        enc_wm=jnp.stack(enc_m), enc_wv=jnp.stack(enc_v),          # (L,6,128,128)/(L,16,128)
        dec_wm=jnp.stack(dec_m), dec_wv=jnp.stack(dec_v),
        enc_norm=enc_norm,
        dec_tailv=dec_tailv,
        rec_w_pad=_pad2(rec_w, DP, PDP),                           # (128, 128)
    )


# ----------------------------------- main -----------------------------------
if __name__ == "__main__":
    root = jax.random.PRNGKey(0)
    k_img, k_param, k_mask = jax.random.split(root, 3)

    imgs = jax.random.normal(k_img, (2, IN_CHANNELS, IMAGE_SIZE, IMAGE_SIZE),
                             dtype=jnp.float32)                    # NCHW, like PyTorch
    params = init_params(k_param)

    fwd = jax.jit(lambda p, im, key: mae_forward(p, im, MASK_RATIO, key))
    loss, pred, mask = fwd(params, imgs, k_mask)
    jax.block_until_ready((loss, pred, mask))

    assert pred.shape == (2, NUM_PATCHES, PATCH_DIM)
    assert mask.shape == (2, NUM_PATCHES)
    assert bool(jnp.isfinite(loss))
    print("KERNEL_OK")
</pallas_src>

<mosaic_0001>
module attributes {stable_mosaic.version = 11 : i64} {
  func.func @kernel(%arg0: memref<32x64xf32, #tpu.memory_space<vmem>>, %arg1: memref<64x128xf32, #tpu.memory_space<vmem>>, %arg2: memref<2x128xf32, #tpu.memory_space<vmem>>, %arg3: memref<16x128xf32, #tpu.memory_space<vmem>>, %arg4: memref<34x128xf32, #tpu.memory_space<vmem>>) attributes {dimension_semantics = [], scalar_prefetch = 0 : i64, scratch_operands = 0 : i64, tpu.core_type = #tpu.core_type<tc>} {
    %c0 = arith.constant 0 : index
    %c0_0 = arith.constant 0 : index
    %0 = vector.load %arg0[%c0, %c0_0] : memref<32x64xf32, #tpu.memory_space<vmem>>, vector<32x64xf32>
    %c0_1 = arith.constant 0 : index
    %c0_2 = arith.constant 0 : index
    %1 = vector.load %arg1[%c0_1, %c0_2] : memref<64x128xf32, #tpu.memory_space<vmem>>, vector<64x128xf32>
    %cst = arith.constant dense<0.000000e+00> : vector<32x128xf32>
    %2 = tpu.matmul %0, %1, %cst {dimension_numbers = #tpu.dot_dimension_numbers<[1], [0], [0], [1], [0, 0, 1, 1], [], []>} : vector<32x64xf32>, vector<64x128xf32>, vector<32x128xf32> -> vector<32x128xf32>
    %c0_3 = arith.constant 0 : index
    %c0_4 = arith.constant 0 : index
    %3 = vector.load %arg2[%c0_3, %c0_4] : memref<2x128xf32, #tpu.memory_space<vmem>>, vector<1x128xf32>
    %4 = vector.broadcast %3 : vector<1x128xf32> to vector<32x128xf32>
    %5 = arith.addf %2, %4 : vector<32x128xf32>
    %c1 = arith.constant 1 : index
    %c0_5 = arith.constant 0 : index
    %6 = vector.load %arg2[%c1, %c0_5] : memref<2x128xf32, #tpu.memory_space<vmem>>, vector<1x128xf32>
    %c0_6 = arith.constant 0 : index
    %c0_7 = arith.constant 0 : index
    %7 = vector.load %arg4[%c0_6, %c0_7] : memref<34x128xf32, #tpu.memory_space<vmem>>, vector<1x128xf32>
    tpu.vector_store %arg4[%c0_6, %c0_7], %6 {strides = array<i32>} : memref<34x128xf32, #tpu.memory_space<vmem>>, vector<1x128xf32>,
    %8 = vector.extract_strided_slice %5 {offsets = [0, 0], sizes = [16, 128], strides = [1, 1]} : vector<32x128xf32> to vector<16x128xf32>
    %c0_8 = arith.constant 0 : index
    %c0_9 = arith.constant 0 : index
    %9 = vector.load %arg3[%c0_8, %c0_9] : memref<16x128xf32, #tpu.memory_space<vmem>>, vector<16x128xf32>
    %10 = arith.addf %8, %9 : vector<16x128xf32>
    %c1_10 = arith.constant 1 : index
    %c0_11 = arith.constant 0 : index
    %11 = vector.load %arg4[%c1_10, %c0_11] : memref<34x128xf32, #tpu.memory_space<vmem>>, vector<16x128xf32>
    tpu.vector_store %arg4[%c1_10, %c0_11], %10 {strides = array<i32>} : memref<34x128xf32, #tpu.memory_space<vmem>>, vector<16x128xf32>,
    %c1_12 = arith.constant 1 : index
    %c0_13 = arith.constant 0 : index
    %12 = vector.load %arg2[%c1_12, %c0_13] : memref<2x128xf32, #tpu.memory_space<vmem>>, vector<1x128xf32>
    %c17 = arith.constant 17 : index
    %c0_14 = arith.constant 0 : index
    %13 = vector.load %arg4[%c17, %c0_14] : memref<34x128xf32, #tpu.memory_space<vmem>>, vector<1x128xf32>
    tpu.vector_store %arg4[%c17, %c0_14], %12 {strides = array<i32>} : memref<34x128xf32, #tpu.memory_space<vmem>>, vector<1x128xf32>,
    %14 = vector.extract_strided_slice %5 {offsets = [16, 0], sizes = [16, 128], strides = [1, 1]} : vector<32x128xf32> to vector<16x128xf32>
    %c0_15 = arith.constant 0 : index
    %c0_16 = arith.constant 0 : index
    %15 = vector.load %arg3[%c0_15, %c0_16] : memref<16x128xf32, #tpu.memory_space<vmem>>, vector<16x128xf32>
    %16 = arith.addf %14, %15 : vector<16x128xf32>
    %c18 = arith.constant 18 : index
    %c0_17 = arith.constant 0 : index
    %17 = vector.load %arg4[%c18, %c0_17] : memref<34x128xf32, #tpu.memory_space<vmem>>, vector<16x128xf32>
    tpu.vector_store %arg4[%c18, %c0_17], %16 {strides = array<i32>} : memref<34x128xf32, #tpu.memory_space<vmem>>, vector<16x128xf32>,
    return
  }
}

module attributes {stable_mosaic.version = 11 : i64} {
  func.func @kernel(%arg0: i32, %arg1: memref<10x128xf32, #tpu.memory_space<vmem>>, %arg2: memref<1x6x128x128xf32, #tpu.memory_space<vmem>>, %arg3: memref<1x16x128xf32, #tpu.memory_space<vmem>>, %arg4: memref<2x128xf32, #tpu.memory_space<vmem>>, %arg5: memref<10x128xf32, #tpu.memory_space<vmem>>, %arg6: memref<10x128xf32, #tpu.memory_space<vmem>>) attributes {dimension_semantics = [#tpu.dimension_semantics<arbitrary>], iteration_bounds = array<i64: 2>, scalar_prefetch = 0 : i64, scratch_operands = 1 : i64, tpu.core_type = #tpu.core_type<tc>, window_params = [{pipeline_mode = #tpu.pipeline_mode<synchronous>, transform_indices = @transform_0, window_bounds = array<i64: 10, 128>}, {transform_indices = @transform_1, window_bounds = array<i64: 1, 6, 128, 128>}, {transform_indices = @transform_2, window_bounds = array<i64: 1, 16, 128>}, {pipeline_mode = #tpu.pipeline_mode<synchronous>, transform_indices = @transform_3, window_bounds = array<i64: 2, 128>}, {pipeline_mode = #tpu.pipeline_mode<synchronous>, transform_indices = @transform_4, window_bounds = array<i64: 10, 128>}]} {
    %c0_i32 = arith.constant 0 : i32
    %0 = arith.cmpi eq, %arg0, %c0_i32 : i32
    %1 = arith.extui %0 : i1 to i32
    %c0_i32_0 = arith.constant 0 : i32
    %2 = arith.cmpi ne, %1, %c0_i32_0 : i32
    scf.if %2 {
      %c0_102 = arith.constant 0 : index
      %c0_103 = arith.constant 0 : index
      %249 = vector.load %arg1[%c0_102, %c0_103] : memref<10x128xf32, #tpu.memory_space<vmem>>, vector<10x128xf32>
      %c0_104 = arith.constant 0 : index
      %c0_105 = arith.constant 0 : index
      %250 = vector.load %arg6[%c0_104, %c0_105] : memref<10x128xf32, #tpu.memory_space<vmem>>, vector<10x128xf32>
      tpu.vector_store %arg6[%c0_104, %c0_105], %249 {strides = array<i32>} : memref<10x128xf32, #tpu.memory_space<vmem>>, vector<10x128xf32>,
    } else {
    }
    %c0 = arith.constant 0 : index
    %c0_1 = arith.constant 0 : index
    %3 = vector.load %arg6[%c0, %c0_1] : memref<10x128xf32, #tpu.memory_space<vmem>>, vector<10x128xf32>
    %4 = tpu.iota {dimensions = array<i32: 1>} : vector<1x128xi32>
    %c32_i32 = arith.constant 32 : i32
    %5 = vector.broadcast %c32_i32 : i32 to vector<1x128xi32>
    %6 = arith.cmpi slt, %4, %5 : vector<1x128xi32>
    %7 = arith.extui %6 : vector<1x128xi1> to vector<1x128xi32>
    %8 = arith.sitofp %7 : vector<1x128xi32> to vector<1x128xf32>
    %c0_2 = arith.constant 0 : index
    %c0_3 = arith.constant 0 : index
    %c0_4 = arith.constant 0 : index
    %c0_5 = arith.constant 0 : index
    %9 = vector.load %arg2[%c0_2, %c0_3, %c0_4, %c0_5] : memref<1x6x128x128xf32, #tpu.memory_space<vmem>>, vector<1x1x128x128xf32>
    %10 = vector.shape_cast %9 : vector<1x1x128x128xf32> to vector<128x128xf32>
    %c0_6 = arith.constant 0 : index
    %c1 = arith.constant 1 : index
    %c0_7 = arith.constant 0 : index
    %c0_8 = arith.constant 0 : index
    %11 = vector.load %arg2[%c0_6, %c1, %c0_7, %c0_8] : memref<1x6x128x128xf32, #tpu.memory_space<vmem>>, vector<1x1x128x128xf32>
    %12 = vector.shape_cast %11 : vector<1x1x128x128xf32> to vector<128x128xf32>
    %c0_9 = arith.constant 0 : index
    %c2 = arith.constant 2 : index
    %c0_10 = arith.constant 0 : index
    %c0_11 = arith.constant 0 : index
    %13 = vector.load %arg2[%c0_9, %c2, %c0_10, %c0_11] : memref<1x6x128x128xf32, #tpu.memory_space<vmem>>, vector<1x1x128x128xf32>
    %14 = vector.shape_cast %13 : vector<1x1x128x128xf32> to vector<128x128xf32>
    %c0_12 = arith.constant 0 : index
    %c3 = arith.constant 3 : index
    %c0_13 = arith.constant 0 : index
    %c0_14 = arith.constant 0 : index
    %15 = vector.load %arg2[%c0_12, %c3, %c0_13, %c0_14] : memref<1x6x128x128xf32, #tpu.memory_space<vmem>>, vector<1x1x128x128xf32>
    %16 = vector.shape_cast %15 : vector<1x1x128x128xf32> to vector<128x128xf32>
    %c0_15 = arith.constant 0 : index
    %c4 = arith.constant 4 : index
    %c0_16 = arith.constant 0 : index
    %c0_17 = arith.constant 0 : index
    %17 = vector.load %arg2[%c0_15, %c4, %c0_16, %c0_17] : memref<1x6x128x128xf32, #tpu.memory_space<vmem>>, vector<1x1x128x128xf32>
    %18 = vector.shape_cast %17 : vector<1x1x128x128xf32> to vector<128x128xf32>
    %c0_18 = arith.constant 0 : index
    %c5 = arith.constant 5 : index
    %c0_19 = arith.constant 0 : index
    %c0_20 = arith.constant 0 : index
    %19 = vector.load %arg2[%c0_18, %c5, %c0_19, %c0_20] : memref<1x6x128x128xf32, #tpu.memory_space<vmem>>, vector<1x1x128x128xf32>
    %20 = vector.shape_cast %19 : vector<1x1x128x128xf32> to vector<128x128xf32>
    %c0_21 = arith.constant 0 : index
    %c0_22 = arith.constant 0 : index
    %c0_23 = arith.constant 0 : index
    %21 = vector.load %arg3[%c0_21, %c0_22, %c0_23] : memref<1x16x128xf32, #tpu.memory_space<vmem>>, vector<1x1x128xf32>
    %22 = vector.shape_cast %21 : vector<1x1x128xf32> to vector<1x128xf32>
    %c0_24 = arith.constant 0 : index
    %c1_25 = arith.constant 1 : index
    %c0_26 = arith.constant 0 : index
    %23 = vector.load %arg3[%c0_24, %c1_25, %c0_26] : memref<1x16x128xf32, #tpu.memory_space<vmem>>, vector<1x1x128xf32>
    %24 = vector.shape_cast %23 : vector<1x1x128xf32> to vector<1x128xf32>
    %c0_27 = arith.constant 0 : index
    %c2_28 = arith.constant 2 : index
    %c0_29 = arith.constant 0 : index
    %25 = vector.load %arg3[%c0_27, %c2_28, %c0_29] : memref<1x16x128xf32, #tpu.memory_space<vmem>>, vector<1x1x128xf32>
    %26 = vector.shape_cast %25 : vector<1x1x128xf32> to vector<1x128xf32>
    %c0_30 = arith.constant 0 : index
    %c3_31 = arith.constant 3 : index
    %c0_32 = arith.constant 0 : index
    %27 = vector.load %arg3[%c0_30, %c3_31, %c0_32] : memref<1x16x128xf32, #tpu.memory_space<vmem>>, vector<1x1x128xf32>
    %28 = vector.shape_cast %27 : vector<1x1x128xf32> to vector<1x128xf32>
    %c0_33 = arith.constant 0 : index
    %c4_34 = arith.constant 4 : index
    %c0_35 = arith.constant 0 : index
    %29 = vector.load %arg3[%c0_33, %c4_34, %c0_35] : memref<1x16x128xf32, #tpu.memory_space<vmem>>, vector<1x1x128xf32>
    %30 = vector.shape_cast %29 : vector<1x1x128xf32> to vector<1x128xf32>
    %c0_36 = arith.constant 0 : index
    %c5_37 = arith.constant 5 : index
    %c0_38 = arith.constant 0 : index
    %31 = vector.load %arg3[%c0_36, %c5_37, %c0_38] : memref<1x16x128xf32, #tpu.memory_space<vmem>>, vector<1x1x128xf32>
    %32 = vector.shape_cast %31 : vector<1x1x128xf32> to vector<1x128xf32>
    %c0_39 = arith.constant 0 : index
    %c6 = arith.constant 6 : index
    %c0_40 = arith.constant 0 : index
    %33 = vector.load %arg3[%c0_39, %c6, %c0_40] : memref<1x16x128xf32, #tpu.memory_space<vmem>>, vector<1x1x128xf32>
    %34 = vector.shape_cast %33 : vector<1x1x128xf32> to vector<1x128xf32>
    %c0_41 = arith.constant 0 : index
    %c7 = arith.constant 7 : index
    %c0_42 = arith.constant 0 : index
    %35 = vector.load %arg3[%c0_41, %c7, %c0_42] : memref<1x16x128xf32, #tpu.memory_space<vmem>>, vector<1x1x128xf32>
    %36 = vector.shape_cast %35 : vector<1x1x128xf32> to vector<1x128xf32>
    %c0_43 = arith.constant 0 : index
    %c8 = arith.constant 8 : index
    %c0_44 = arith.constant 0 : index
    %37 = vector.load %arg3[%c0_43, %c8, %c0_44] : memref<1x16x128xf32, #tpu.memory_space<vmem>>, vector<1x1x128xf32>
    %38 = vector.shape_cast %37 : vector<1x1x128xf32> to vector<1x128xf32>
    %c0_45 = arith.constant 0 : index
    %c9 = arith.constant 9 : index
    %c0_46 = arith.constant 0 : index
    %39 = vector.load %arg3[%c0_45, %c9, %c0_46] : memref<1x16x128xf32, #tpu.memory_space<vmem>>, vector<1x1x128xf32>
    %40 = vector.shape_cast %39 : vector<1x1x128xf32> to vector<1x128xf32>
    %cst = arith.constant dense<0.000000e+00> : vector<10x128xf32>
    %41 = tpu.matmul %3, %10, %cst {dimension_numbers = #tpu.dot_dimension_numbers<[1], [0], [0], [1], [0, 0, 1, 1], [], []>} : vector<10x128xf32>, vector<128x128xf32>, vector<10x128xf32> -> vector<10x128xf32>
    %42 = vector.broadcast %22 : vector<1x128xf32> to vector<10x128xf32>
    %43 = arith.addf %41, %42 : vector<10x128xf32>
    %cst_47 = arith.constant dense<0.000000e+00> : vector<10x128xf32>
    %44 = tpu.matmul %3, %12, %cst_47 {dimension_numbers = #tpu.dot_dimension_numbers<[1], [0], [0], [1], [0, 0, 1, 1], [], []>} : vector<10x128xf32>, vector<128x128xf32>, vector<10x128xf32> -> vector<10x128xf32>
    %45 = vector.broadcast %24 : vector<1x128xf32> to vector<10x128xf32>
    %46 = arith.addf %44, %45 : vector<10x128xf32>
    %cst_48 = arith.constant dense<0.000000e+00> : vector<10x128xf32>
    %47 = tpu.matmul %3, %14, %cst_48 {dimension_numbers = #tpu.dot_dimension_numbers<[1], [0], [0], [1], [0, 0, 1, 1], [], []>} : vector<10x128xf32>, vector<128x128xf32>, vector<10x128xf32> -> vector<10x128xf32>
    %48 = vector.broadcast %26 : vector<1x128xf32> to vector<10x128xf32>
    %49 = arith.addf %47, %48 : vector<10x128xf32>
    %50 = tpu.iota {dimensions = array<i32: 0>} : vector<10x10xi32>
    %51 = tpu.iota {dimensions = array<i32: 1>} : vector<10x10xi32>
    %c0_i32_49 = arith.constant 0 : i32
    %52 = vector.broadcast %c0_i32_49 : i32 to vector<10x10xi32>
    %53 = arith.cmpi sge, %50, %52 : vector<10x10xi32>
    %c5_i32 = arith.constant 5 : i32
    %54 = vector.broadcast %c5_i32 : i32 to vector<10x10xi32>
    %55 = arith.cmpi slt, %50, %54 : vector<10x10xi32>
    %56 = arith.andi %53, %55 : vector<10x10xi1>
    %c0_i32_50 = arith.constant 0 : i32
    %57 = vector.broadcast %c0_i32_50 : i32 to vector<10x10xi32>
    %58 = arith.cmpi sge, %51, %57 : vector<10x10xi32>
    %c5_i32_51 = arith.constant 5 : i32
    %59 = vector.broadcast %c5_i32_51 : i32 to vector<10x10xi32>
    %60 = arith.cmpi slt, %51, %59 : vector<10x10xi32>
    %61 = arith.andi %58, %60 : vector<10x10xi1>
    %62 = arith.andi %56, %61 : vector<10x10xi1>
    %c5_i32_52 = arith.constant 5 : i32
    %63 = vector.broadcast %c5_i32_52 : i32 to vector<10x10xi32>
    %64 = arith.cmpi sge, %50, %63 : vector<10x10xi32>
    %c10_i32 = arith.constant 10 : i32
    %65 = vector.broadcast %c10_i32 : i32 to vector<10x10xi32>
    %66 = arith.cmpi slt, %50, %65 : vector<10x10xi32>
    %67 = arith.andi %64, %66 : vector<10x10xi1>
    %c5_i32_53 = arith.constant 5 : i32
    %68 = vector.broadcast %c5_i32_53 : i32 to vector<10x10xi32>
    %69 = arith.cmpi sge, %51, %68 : vector<10x10xi32>
    %c10_i32_54 = arith.constant 10 : i32
    %70 = vector.broadcast %c10_i32_54 : i32 to vector<10x10xi32>
    %71 = arith.cmpi slt, %51, %70 : vector<10x10xi32>
    %72 = arith.andi %69, %71 : vector<10x10xi1>
    %73 = arith.andi %67, %72 : vector<10x10xi1>
    %74 = arith.ori %62, %73 : vector<10x10xi1>
    %cst_55 = arith.constant 0.000000e+00 : f32
    %cst_56 = arith.constant -1.000000e+30 : f32
    %75 = vector.broadcast %cst_55 : f32 to vector<10x10xf32>
    %76 = vector.broadcast %cst_56 : f32 to vector<10x10xf32>
    %77 = arith.select %74, %75, %76 : vector<10x10xi1>, vector<10x10xf32>
    %cst_57 = arith.constant 0.000000e+00 : f32
    %78 = vector.broadcast %cst_57 : f32 to vector<10x128xf32>
    %c0_i32_58 = arith.constant 0 : i32
    %79 = vector.broadcast %c0_i32_58 : i32 to vector<1x128xi32>
    %80 = arith.cmpi sge, %4, %79 : vector<1x128xi32>
    %c8_i32 = arith.constant 8 : i32
    %81 = vector.broadcast %c8_i32 : i32 to vector<1x128xi32>
    %82 = arith.cmpi slt, %4, %81 : vector<1x128xi32>
    %83 = arith.andi %80, %82 : vector<1x128xi1>
    %84 = arith.extui %83 : vector<1x128xi1> to vector<1x128xi32>
    %85 = arith.sitofp %84 : vector<1x128xi32> to vector<1x128xf32>
    %86 = vector.broadcast %85 : vector<1x128xf32> to vector<10x128xf32>
    %87 = arith.mulf %43, %86 : vector<10x128xf32>
    %88 = vector.broadcast %85 : vector<1x128xf32> to vector<10x128xf32>
    %89 = arith.mulf %49, %88 : vector<10x128xf32>
    %cst_59 = arith.constant dense<0.000000e+00> : vector<10x10xf32>
    %90 = tpu.matmul %87, %46, %cst_59 {dimension_numbers = #tpu.dot_dimension_numbers<[1], [1], [0], [0], [0, 0, 1, 0], [], []>} : vector<10x128xf32>, vector<10x128xf32>, vector<10x10xf32> -> vector<10x10xf32>
    %cst_60 = arith.constant 0.353553385 : f32
    %91 = vector.broadcast %cst_60 : f32 to vector<10x10xf32>
    %92 = arith.mulf %90, %91 : vector<10x10xf32>
    %93 = arith.addf %92, %77 : vector<10x10xf32>
    %cst_61 = arith.constant dense<0xFF800000> : vector<10xf32>
    %94 = vector.multi_reduction <maximumf>, %93, %cst_61 [1] : vector<10x10xf32> to vector<10xf32>
    %95 = vector.shape_cast %94 : vector<10xf32> to vector<10x1xf32>
    %96 = vector.broadcast %95 : vector<10x1xf32> to vector<10x10xf32>
    %97 = arith.subf %93, %96 : vector<10x10xf32>
    %98 = math.exp %97 : vector<10x10xf32>
    %cst_62 = arith.constant dense<0.000000e+00> : vector<10xf32>
    %99 = vector.multi_reduction <add>, %98, %cst_62 [1] : vector<10x10xf32> to vector<10xf32>
    %100 = vector.shape_cast %99 : vector<10xf32> to vector<10x1xf32>
    %101 = tpu.reciprocal %100 {approx = true} : vector<10x1xf32> -> vector<10x1xf32>
    %102 = vector.broadcast %101 : vector<10x1xf32> to vector<10x10xf32>
    %103 = arith.mulf %98, %102 : vector<10x10xf32>
    %cst_63 = arith.constant dense<0.000000e+00> : vector<10x128xf32>
    %104 = tpu.matmul %103, %89, %cst_63 {dimension_numbers = #tpu.dot_dimension_numbers<[1], [0], [0], [1], [0, 0, 1, 1], [], []>} : vector<10x10xf32>, vector<10x128xf32>, vector<10x128xf32> -> vector<10x128xf32>
    %105 = arith.addf %78, %104 : vector<10x128xf32>
    %c8_i32_64 = arith.constant 8 : i32
    %106 = vector.broadcast %c8_i32_64 : i32 to vector<1x128xi32>
    %107 = arith.cmpi sge, %4, %106 : vector<1x128xi32>
    %c16_i32 = arith.constant 16 : i32
    %108 = vector.broadcast %c16_i32 : i32 to vector<1x128xi32>
    %109 = arith.cmpi slt, %4, %108 : vector<1x128xi32>
    %110 = arith.andi %107, %109 : vector<1x128xi1>
    %111 = arith.extui %110 : vector<1x128xi1> to vector<1x128xi32>
    %112 = arith.sitofp %111 : vector<1x128xi32> to vector<1x128xf32>
    %113 = vector.broadcast %112 : vector<1x128xf32> to vector<10x128xf32>
    %114 = arith.mulf %43, %113 : vector<10x128xf32>
    %115 = vector.broadcast %112 : vector<1x128xf32> to vector<10x128xf32>
    %116 = arith.mulf %49, %115 : vector<10x128xf32>
    %cst_65 = arith.constant dense<0.000000e+00> : vector<10x10xf32>
    %117 = tpu.matmul %114, %46, %cst_65 {dimension_numbers = #tpu.dot_dimension_numbers<[1], [1], [0], [0], [0, 0, 1, 0], [], []>} : vector<10x128xf32>, vector<10x128xf32>, vector<10x10xf32> -> vector<10x10xf32>
    %cst_66 = arith.constant 0.353553385 : f32
    %118 = vector.broadcast %cst_66 : f32 to vector<10x10xf32>
    %119 = arith.mulf %117, %118 : vector<10x10xf32>
    %120 = arith.addf %119, %77 : vector<10x10xf32>
    %cst_67 = arith.constant dense<0xFF800000> : vector<10xf32>
    %121 = vector.multi_reduction <maximumf>, %120, %cst_67 [1] : vector<10x10xf32> to vector<10xf32>
    %122 = vector.shape_cast %121 : vector<10xf32> to vector<10x1xf32>
    %123 = vector.broadcast %122 : vector<10x1xf32> to vector<10x10xf32>
    %124 = arith.subf %120, %123 : vector<10x10xf32>
    %125 = math.exp %124 : vector<10x10xf32>
    %cst_68 = arith.constant dense<0.000000e+00> : vector<10xf32>
    %126 = vector.multi_reduction <add>, %125, %cst_68 [1] : vector<10x10xf32> to vector<10xf32>
    %127 = vector.shape_cast %126 : vector<10xf32> to vector<10x1xf32>
    %128 = tpu.reciprocal %127 {approx = true} : vector<10x1xf32> -> vector<10x1xf32>
    %129 = vector.broadcast %128 : vector<10x1xf32> to vector<10x10xf32>
    %130 = arith.mulf %125, %129 : vector<10x10xf32>
    %cst_69 = arith.constant dense<0.000000e+00> : vector<10x128xf32>
    %131 = tpu.matmul %130, %116, %cst_69 {dimension_numbers = #tpu.dot_dimension_numbers<[1], [0], [0], [1], [0, 0, 1, 1], [], []>} : vector<10x10xf32>, vector<10x128xf32>, vector<10x128xf32> -> vector<10x128xf32>
    %132 = arith.addf %105, %131 : vector<10x128xf32>
    %c16_i32_70 = arith.constant 16 : i32
    %133 = vector.broadcast %c16_i32_70 : i32 to vector<1x128xi32>
    %134 = arith.cmpi sge, %4, %133 : vector<1x128xi32>
    %c24_i32 = arith.constant 24 : i32
    %135 = vector.broadcast %c24_i32 : i32 to vector<1x128xi32>
    %136 = arith.cmpi slt, %4, %135 : vector<1x128xi32>
    %137 = arith.andi %134, %136 : vector<1x128xi1>
    %138 = arith.extui %137 : vector<1x128xi1> to vector<1x128xi32>
    %139 = arith.sitofp %138 : vector<1x128xi32> to vector<1x128xf32>
    %140 = vector.broadcast %139 : vector<1x128xf32> to vector<10x128xf32>
    %141 = arith.mulf %43, %140 : vector<10x128xf32>
    %142 = vector.broadcast %139 : vector<1x128xf32> to vector<10x128xf32>
    %143 = arith.mulf %49, %142 : vector<10x128xf32>
    %cst_71 = arith.constant dense<0.000000e+00> : vector<10x10xf32>
    %144 = tpu.matmul %141, %46, %cst_71 {dimension_numbers = #tpu.dot_dimension_numbers<[1], [1], [0], [0], [0, 0, 1, 0], [], []>} : vector<10x128xf32>, vector<10x128xf32>, vector<10x10xf32> -> vector<10x10xf32>
    %cst_72 = arith.constant 0.353553385 : f32
    %145 = vector.broadcast %cst_72 : f32 to vector<10x10xf32>
    %146 = arith.mulf %144, %145 : vector<10x10xf32>
    %147 = arith.addf %146, %77 : vector<10x10xf32>
    %cst_73 = arith.constant dense<0xFF800000> : vector<10xf32>
    %148 = vector.multi_reduction <maximumf>, %147, %cst_73 [1] : vector<10x10xf32> to vector<10xf32>
    %149 = vector.shape_cast %148 : vector<10xf32> to vector<10x1xf32>
    %150 = vector.broadcast %149 : vector<10x1xf32> to vector<10x10xf32>
    %151 = arith.subf %147, %150 : vector<10x10xf32>
    %152 = math.exp %151 : vector<10x10xf32>
    %cst_74 = arith.constant dense<0.000000e+00> : vector<10xf32>
    %153 = vector.multi_reduction <add>, %152, %cst_74 [1] : vector<10x10xf32> to vector<10xf32>
    %154 = vector.shape_cast %153 : vector<10xf32> to vector<10x1xf32>
    %155 = tpu.reciprocal %154 {approx = true} : vector<10x1xf32> -> vector<10x1xf32>
    %156 = vector.broadcast %155 : vector<10x1xf32> to vector<10x10xf32>
    %157 = arith.mulf %152, %156 : vector<10x10xf32>
    %cst_75 = arith.constant dense<0.000000e+00> : vector<10x128xf32>
    %158 = tpu.matmul %157, %143, %cst_75 {dimension_numbers = #tpu.dot_dimension_numbers<[1], [0], [0], [1], [0, 0, 1, 1], [], []>} : vector<10x10xf32>, vector<10x128xf32>, vector<10x128xf32> -> vector<10x128xf32>
    %159 = arith.addf %132, %158 : vector<10x128xf32>
    %c24_i32_76 = arith.constant 24 : i32
    %160 = vector.broadcast %c24_i32_76 : i32 to vector<1x128xi32>
    %161 = arith.cmpi sge, %4, %160 : vector<1x128xi32>
    %c32_i32_77 = arith.constant 32 : i32
    %162 = vector.broadcast %c32_i32_77 : i32 to vector<1x128xi32>
    %163 = arith.cmpi slt, %4, %162 : vector<1x128xi32>
    %164 = arith.andi %161, %163 : vector<1x128xi1>
    %165 = arith.extui %164 : vector<1x128xi1> to vector<1x128xi32>
    %166 = arith.sitofp %165 : vector<1x128xi32> to vector<1x128xf32>
    %167 = vector.broadcast %166 : vector<1x128xf32> to vector<10x128xf32>
    %168 = arith.mulf %43, %167 : vector<10x128xf32>
    %169 = vector.broadcast %166 : vector<1x128xf32> to vector<10x128xf32>
    %170 = arith.mulf %49, %169 : vector<10x128xf32>
    %cst_78 = arith.constant dense<0.000000e+00> : vector<10x10xf32>
    %171 = tpu.matmul %168, %46, %cst_78 {dimension_numbers = #tpu.dot_dimension_numbers<[1], [1], [0], [0], [0, 0, 1, 0], [], []>} : vector<10x128xf32>, vector<10x128xf32>, vector<10x10xf32> -> vector<10x10xf32>
    %cst_79 = arith.constant 0.353553385 : f32
    %172 = vector.broadcast %cst_79 : f32 to vector<10x10xf32>
    %173 = arith.mulf %171, %172 : vector<10x10xf32>
    %174 = arith.addf %173, %77 : vector<10x10xf32>
    %cst_80 = arith.constant dense<0xFF800000> : vector<10xf32>
    %175 = vector.multi_reduction <maximumf>, %174, %cst_80 [1] : vector<10x10xf32> to vector<10xf32>
    %176 = vector.shape_cast %175 : vector<10xf32> to vector<10x1xf32>
    %177 = vector.broadcast %176 : vector<10x1xf32> to vector<10x10xf32>
    %178 = arith.subf %174, %177 : vector<10x10xf32>
    %179 = math.exp %178 : vector<10x10xf32>
    %cst_81 = arith.constant dense<0.000000e+00> : vector<10xf32>
    %180 = vector.multi_reduction <add>, %179, %cst_81 [1] : vector<10x10xf32> to vector<10xf32>
    %181 = vector.shape_cast %180 : vector<10xf32> to vector<10x1xf32>
    %182 = tpu.reciprocal %181 {approx = true} : vector<10x1xf32> -> vector<10x1xf32>
    %183 = vector.broadcast %182 : vector<10x1xf32> to vector<10x10xf32>
    %184 = arith.mulf %179, %183 : vector<10x10xf32>
    %cst_82 = arith.constant dense<0.000000e+00> : vector<10x128xf32>
    %185 = tpu.matmul %184, %170, %cst_82 {dimension_numbers = #tpu.dot_dimension_numbers<[1], [0], [0], [1], [0, 0, 1, 1], [], []>} : vector<10x10xf32>, vector<10x128xf32>, vector<10x128xf32> -> vector<10x128xf32>
    %186 = arith.addf %159, %185 : vector<10x128xf32>
    %cst_83 = arith.constant dense<0.000000e+00> : vector<10x128xf32>
    %187 = tpu.matmul %186, %16, %cst_83 {dimension_numbers = #tpu.dot_dimension_numbers<[1], [0], [0], [1], [0, 0, 1, 1], [], []>} : vector<10x128xf32>, vector<128x128xf32>, vector<10x128xf32> -> vector<10x128xf32>
    %188 = vector.broadcast %28 : vector<1x128xf32> to vector<10x128xf32>
    %189 = arith.addf %187, %188 : vector<10x128xf32>
    %190 = arith.addf %189, %3 : vector<10x128xf32>
    %cst_84 = arith.constant dense<0.000000e+00> : vector<10xf32>
    %191 = vector.multi_reduction <add>, %190, %cst_84 [1] : vector<10x128xf32> to vector<10xf32>
    %192 = vector.shape_cast %191 : vector<10xf32> to vector<10x1xf32>
    %cst_85 = arith.constant 3.125000e-02 : f32
    %193 = vector.broadcast %cst_85 : f32 to vector<10x1xf32>
    %194 = arith.mulf %192, %193 : vector<10x1xf32>
    %195 = vector.broadcast %194 : vector<10x1xf32> to vector<10x128xf32>
    %196 = arith.subf %190, %195 : vector<10x128xf32>
    %197 = vector.broadcast %8 : vector<1x128xf32> to vector<10x128xf32>
    %198 = arith.mulf %196, %197 : vector<10x128xf32>
    %199 = arith.mulf %198, %198 : vector<10x128xf32>
    %cst_86 = arith.constant dense<0.000000e+00> : vector<10xf32>
    %200 = vector.multi_reduction <add>, %199, %cst_86 [1] : vector<10x128xf32> to vector<10xf32>
    %201 = vector.shape_cast %200 : vector<10xf32> to vector<10x1xf32>
    %cst_87 = arith.constant 3.125000e-02 : f32
    %202 = vector.broadcast %cst_87 : f32 to vector<10x1xf32>
    %203 = arith.mulf %201, %202 : vector<10x1xf32>
    %cst_88 = arith.constant 9.99999974E-6 : f32
    %204 = vector.broadcast %cst_88 : f32 to vector<10x1xf32>
    %205 = arith.addf %203, %204 : vector<10x1xf32>
    %206 = math.rsqrt %205 : vector<10x1xf32>
    %207 = vector.broadcast %206 : vector<10x1xf32> to vector<10x128xf32>
    %208 = arith.mulf %198, %207 : vector<10x128xf32>
    %209 = vector.broadcast %34 : vector<1x128xf32> to vector<10x128xf32>
    %210 = arith.mulf %208, %209 : vector<10x128xf32>
    %211 = vector.broadcast %36 : vector<1x128xf32> to vector<10x128xf32>
    %212 = arith.addf %210, %211 : vector<10x128xf32>
    %cst_89 = arith.constant dense<0.000000e+00> : vector<10x128xf32>
    %213 = tpu.matmul %212, %18, %cst_89 {dimension_numbers = #tpu.dot_dimension_numbers<[1], [0], [0], [1], [0, 0, 1, 1], [], []>} : vector<10x128xf32>, vector<128x128xf32>, vector<10x128xf32> -> vector<10x128xf32>
    %214 = vector.broadcast %30 : vector<1x128xf32> to vector<10x128xf32>
    %215 = arith.addf %213, %214 : vector<10x128xf32>
    %cst_90 = arith.constant 0.000000e+00 : f32
    %216 = vector.broadcast %cst_90 : f32 to vector<10x128xf32>
    %217 = arith.maximumf %215, %216 : vector<10x128xf32>
    %cst_91 = arith.constant dense<0.000000e+00> : vector<10x128xf32>
    %218 = tpu.matmul %217, %20, %cst_91 {dimension_numbers = #tpu.dot_dimension_numbers<[1], [0], [0], [1], [0, 0, 1, 1], [], []>} : vector<10x128xf32>, vector<128x128xf32>, vector<10x128xf32> -> vector<10x128xf32>
    %219 = vector.broadcast %32 : vector<1x128xf32> to vector<10x128xf32>
    %220 = arith.addf %218, %219 : vector<10x128xf32>
    %221 = arith.addf %220, %212 : vector<10x128xf32>
    %cst_92 = arith.constant dense<0.000000e+00> : vector<10xf32>
    %222 = vector.multi_reduction <add>, %221, %cst_92 [1] : vector<10x128xf32> to vector<10xf32>
    %223 = vector.shape_cast %222 : vector<10xf32> to vector<10x1xf32>
    %cst_93 = arith.constant 3.125000e-02 : f32
    %224 = vector.broadcast %cst_93 : f32 to vector<10x1xf32>
    %225 = arith.mulf %223, %224 : vector<10x1xf32>
    %226 = vector.broadcast %225 : vector<10x1xf32> to vector<10x128xf32>
    %227 = arith.subf %221, %226 : vector<10x128xf32>
    %228 = vector.broadcast %8 : vector<1x128xf32> to vector<10x128xf32>
    %229 = arith.mulf %227, %228 : vector<10x128xf32>
    %230 = arith.mulf %229, %229 : vector<10x128xf32>
    %cst_94 = arith.constant dense<0.000000e+00> : vector<10xf32>
    %231 = vector.multi_reduction <add>, %230, %cst_94 [1] : vector<10x128xf32> to vector<10xf32>
    %232 = vector.shape_cast %231 : vector<10xf32> to vector<10x1xf32>
    %cst_95 = arith.constant 3.125000e-02 : f32
    %233 = vector.broadcast %cst_95 : f32 to vector<10x1xf32>
    %234 = arith.mulf %232, %233 : vector<10x1xf32>
    %cst_96 = arith.constant 9.99999974E-6 : f32
    %235 = vector.broadcast %cst_96 : f32 to vector<10x1xf32>
    %236 = arith.addf %234, %235 : vector<10x1xf32>
    %237 = math.rsqrt %236 : vector<10x1xf32>
    %238 = vector.broadcast %237 : vector<10x1xf32> to vector<10x128xf32>
    %239 = arith.mulf %229, %238 : vector<10x128xf32>
    %240 = vector.broadcast %38 : vector<1x128xf32> to vector<10x128xf32>
    %241 = arith.mulf %239, %240 : vector<10x128xf32>
    %242 = vector.broadcast %40 : vector<1x128xf32> to vector<10x128xf32>
    %243 = arith.addf %241, %242 : vector<10x128xf32>
    %c0_97 = arith.constant 0 : index
    %c0_98 = arith.constant 0 : index
    %244 = vector.load %arg6[%c0_97, %c0_98] : memref<10x128xf32, #tpu.memory_space<vmem>>, vector<10x128xf32>
    tpu.vector_store %arg6[%c0_97, %c0_98], %243 {strides = array<i32>} : memref<10x128xf32, #tpu.memory_space<vmem>>, vector<10x128xf32>,
    %c0_99 = arith.constant 0 : index
    %c0_100 = arith.constant 0 : index
    %245 = vector.load %arg5[%c0_99, %c0_100] : memref<10x128xf32, #tpu.memory_space<vmem>>, vector<10x128xf32>
    tpu.vector_store %arg5[%c0_99, %c0_100], %243 {strides = array<i32>} : memref<10x128xf32, #tpu.memory_space<vmem>>, vector<10x128xf32>,
    %c1_i32 = arith.constant 1 : i32
    %246 = arith.cmpi eq, %arg0, %c1_i32 : i32
    %247 = arith.extui %246 : i1 to i32
    %c0_i32_101 = arith.constant 0 : i32
    %248 = arith.cmpi ne, %247, %c0_i32_101 : i32
    scf.if %248 {
      %249 = tpu.iota {dimensions = array<i32: 1>} : vector<1x128xi32>
      %c32_i32_102 = arith.constant 32 : i32
      %250 = vector.broadcast %c32_i32_102 : i32 to vector<1x128xi32>
      %251 = arith.cmpi slt, %249, %250 : vector<1x128xi32>
      %252 = arith.extui %251 : vector<1x128xi1> to vector<1x128xi32>
      %253 = arith.sitofp %252 : vector<1x128xi32> to vector<1x128xf32>
      %c0_103 = arith.constant 0 : index
      %c0_104 = arith.constant 0 : index
      %254 = vector.load %arg4[%c0_103, %c0_104] : memref<2x128xf32, #tpu.memory_space<vmem>>, vector<1x128xf32>
      %c1_105 = arith.constant 1 : index
      %c0_106 = arith.constant 0 : index
      %255 = vector.load %arg4[%c1_105, %c0_106] : memref<2x128xf32, #tpu.memory_space<vmem>>, vector<1x128xf32>
      %cst_107 = arith.constant dense<0.000000e+00> : vector<10xf32>
      %256 = vector.multi_reduction <add>, %243, %cst_107 [1] : vector<10x128xf32> to vector<10xf32>
      %257 = vector.shape_cast %256 : vector<10xf32> to vector<10x1xf32>
      %cst_108 = arith.constant 3.125000e-02 : f32
      %258 = vector.broadcast %cst_108 : f32 to vector<10x1xf32>
      %259 = arith.mulf %257, %258 : vector<10x1xf32>
      %260 = vector.broadcast %259 : vector<10x1xf32> to vector<10x128xf32>
      %261 = arith.subf %243, %260 : vector<10x128xf32>
      %262 = vector.broadcast %253 : vector<1x128xf32> to vector<10x128xf32>
      %263 = arith.mulf %261, %262 : vector<10x128xf32>
      %264 = arith.mulf %263, %263 : vector<10x128xf32>
      %cst_109 = arith.constant dense<0.000000e+00> : vector<10xf32>
      %265 = vector.multi_reduction <add>, %264, %cst_109 [1] : vector<10x128xf32> to vector<10xf32>
      %266 = vector.shape_cast %265 : vector<10xf32> to vector<10x1xf32>
      %cst_110 = arith.constant 3.125000e-02 : f32
      %267 = vector.broadcast %cst_110 : f32 to vector<10x1xf32>
      %268 = arith.mulf %266, %267 : vector<10x1xf32>
      %cst_111 = arith.constant 9.99999974E-6 : f32
      %269 = vector.broadcast %cst_111 : f32 to vector<10x1xf32>
      %270 = arith.addf %268, %269 : vector<10x1xf32>
      %271 = math.rsqrt %270 : vector<10x1xf32>
      %272 = vector.broadcast %271 : vector<10x1xf32> to vector<10x128xf32>
      %273 = arith.mulf %263, %272 : vector<10x128xf32>
      %274 = vector.broadcast %254 : vector<1x128xf32> to vector<10x128xf32>
      %275 = arith.mulf %273, %274 : vector<10x128xf32>
      %276 = vector.broadcast %255 : vector<1x128xf32> to vector<10x128xf32>
      %277 = arith.addf %275, %276 : vector<10x128xf32>
      %c0_112 = arith.constant 0 : index
      %c0_113 = arith.constant 0 : index
      %278 = vector.load %arg5[%c0_112, %c0_113] : memref<10x128xf32, #tpu.memory_space<vmem>>, vector<10x128xf32>
      tpu.vector_store %arg5[%c0_112, %c0_113], %277 {strides = array<i32>} : memref<10x128xf32, #tpu.memory_space<vmem>>, vector<10x128xf32>,
    } else {
    }
    return
  }
  func.func @transform_0(%arg0: i32) -> (i32, i32) {
    %c0_i32 = arith.constant 0 : i32
    %c0_i32_0 = arith.constant 0 : i32
    %c0_i32_1 = arith.constant 0 : i32
    return %c0_i32, %c0_i32_0 : i32, i32
  }
  func.func @transform_1(%arg0: i32) -> (i32, i32, i32, i32) {
    %c0_i32 = arith.constant 0 : i32
    %c0_i32_0 = arith.constant 0 : i32
    %c0_i32_1 = arith.constant 0 : i32
    %c0_i32_2 = arith.constant 0 : i32
    return %arg0, %c0_i32, %c0_i32_0, %c0_i32_1 : i32, i32, i32, i32
  }
  func.func @transform_2(%arg0: i32) -> (i32, i32, i32) {
    %c0_i32 = arith.constant 0 : i32
    %c0_i32_0 = arith.constant 0 : i32
    %c0_i32_1 = arith.constant 0 : i32
    return %arg0, %c0_i32, %c0_i32_0 : i32, i32, i32
  }
  func.func @transform_3(%arg0: i32) -> (i32, i32) {
    %c0_i32 = arith.constant 0 : i32
    %c0_i32_0 = arith.constant 0 : i32
    %c0_i32_1 = arith.constant 0 : i32
    return %c0_i32, %c0_i32_0 : i32, i32
  }
  func.func @transform_4(%arg0: i32) -> (i32, i32) {
    %c0_i32 = arith.constant 0 : i32
    %c0_i32_0 = arith.constant 0 : i32
    %c0_i32_1 = arith.constant 0 : i32
    return %c0_i32, %c0_i32_0 : i32, i32
  }
}

module attributes {stable_mosaic.version = 11 : i64} {
  func.func @kernel(%arg0: i32, %arg1: memref<32x128xf32, #tpu.memory_space<vmem>>, %arg2: memref<1x6x128x128xf32, #tpu.memory_space<vmem>>, %arg3: memref<1x16x128xf32, #tpu.memory_space<vmem>>, %arg4: memref<8x128xf32, #tpu.memory_space<vmem>>, %arg5: memref<128x128xf32, #tpu.memory_space<vmem>>, %arg6: memref<32x128xf32, #tpu.memory_space<vmem>>, %arg7: memref<32x1xf32, #tpu.memory_space<vmem>>, %arg8: memref<32x128xf32, #tpu.memory_space<vmem>>, %arg9: memref<1x128xf32, #tpu.memory_space<vmem>>, %arg10: memref<32x128xf32, #tpu.memory_space<vmem>>) attributes {dimension_semantics = [#tpu.dimension_semantics<arbitrary>], iteration_bounds = array<i64: 1>, scalar_prefetch = 0 : i64, scratch_operands = 1 : i64, tpu.core_type = #tpu.core_type<tc>, window_params = [{pipeline_mode = #tpu.pipeline_mode<synchronous>, transform_indices = @transform_0, window_bounds = array<i64: 32, 128>}, {transform_indices = @transform_1, window_bounds = array<i64: 1, 6, 128, 128>}, {transform_indices = @transform_2, window_bounds = array<i64: 1, 16, 128>}, {pipeline_mode = #tpu.pipeline_mode<synchronous>, transform_indices = @transform_3, window_bounds = array<i64: 8, 128>}, {pipeline_mode = #tpu.pipeline_mode<synchronous>, transform_indices = @transform_4, window_bounds = array<i64: 128, 128>}, {pipeline_mode = #tpu.pipeline_mode<synchronous>, transform_indices = @transform_5, window_bounds = array<i64: 32, 128>}, {pipeline_mode = #tpu.pipeline_mode<synchronous>, transform_indices = @transform_6, window_bounds = array<i64: 32, 1>}, {pipeline_mode = #tpu.pipeline_mode<synchronous>, transform_indices = @transform_7, window_bounds = array<i64: 32, 128>}, {pipeline_mode = #tpu.pipeline_mode<synchronous>, transform_indices = @transform_8, window_bounds = array<i64: 1, 128>}]} {
    %c0_i32 = arith.constant 0 : i32
    %0 = arith.cmpi eq, %arg0, %c0_i32 : i32
    %1 = arith.extui %0 : i1 to i32
    %c0_i32_0 = arith.constant 0 : i32
    %2 = arith.cmpi ne, %1, %c0_i32_0 : i32
    scf.if %2 {
      %c0_103 = arith.constant 0 : index
      %c0_104 = arith.constant 0 : index
      %248 = vector.load %arg1[%c0_103, %c0_104] : memref<32x128xf32, #tpu.memory_space<vmem>>, vector<32x128xf32>
      %c0_105 = arith.constant 0 : index
      %c0_106 = arith.constant 0 : index
      %249 = vector.load %arg10[%c0_105, %c0_106] : memref<32x128xf32, #tpu.memory_space<vmem>>, vector<32x128xf32>
      tpu.vector_store %arg10[%c0_105, %c0_106], %248 {strides = array<i32>} : memref<32x128xf32, #tpu.memory_space<vmem>>, vector<32x128xf32>,
    } else {
    }
    %c0 = arith.constant 0 : index
    %c0_1 = arith.constant 0 : index
    %3 = vector.load %arg10[%c0, %c0_1] : memref<32x128xf32, #tpu.memory_space<vmem>>, vector<32x128xf32>
    %4 = tpu.iota {dimensions = array<i32: 1>} : vector<1x128xi32>
    %c32_i32 = arith.constant 32 : i32
    %5 = vector.broadcast %c32_i32 : i32 to vector<1x128xi32>
    %6 = arith.cmpi slt, %4, %5 : vector<1x128xi32>
    %7 = arith.extui %6 : vector<1x128xi1> to vector<1x128xi32>
    %8 = arith.sitofp %7 : vector<1x128xi32> to vector<1x128xf32>
    %c0_2 = arith.constant 0 : index
    %c0_3 = arith.constant 0 : index
    %c0_4 = arith.constant 0 : index
    %c0_5 = arith.constant 0 : index
    %9 = vector.load %arg2[%c0_2, %c0_3, %c0_4, %c0_5] : memref<1x6x128x128xf32, #tpu.memory_space<vmem>>, vector<1x1x128x128xf32>
    %10 = vector.shape_cast %9 : vector<1x1x128x128xf32> to vector<128x128xf32>
    %c0_6 = arith.constant 0 : index
    %c1 = arith.constant 1 : index
    %c0_7 = arith.constant 0 : index
    %c0_8 = arith.constant 0 : index
    %11 = vector.load %arg2[%c0_6, %c1, %c0_7, %c0_8] : memref<1x6x128x128xf32, #tpu.memory_space<vmem>>, vector<1x1x128x128xf32>
    %12 = vector.shape_cast %11 : vector<1x1x128x128xf32> to vector<128x128xf32>
    %c0_9 = arith.constant 0 : index
    %c2 = arith.constant 2 : index
    %c0_10 = arith.constant 0 : index
    %c0_11 = arith.constant 0 : index
    %13 = vector.load %arg2[%c0_9, %c2, %c0_10, %c0_11] : memref<1x6x128x128xf32, #tpu.memory_space<vmem>>, vector<1x1x128x128xf32>
    %14 = vector.shape_cast %13 : vector<1x1x128x128xf32> to vector<128x128xf32>
    %c0_12 = arith.constant 0 : index
    %c3 = arith.constant 3 : index
    %c0_13 = arith.constant 0 : index
    %c0_14 = arith.constant 0 : index
    %15 = vector.load %arg2[%c0_12, %c3, %c0_13, %c0_14] : memref<1x6x128x128xf32, #tpu.memory_space<vmem>>, vector<1x1x128x128xf32>
    %16 = vector.shape_cast %15 : vector<1x1x128x128xf32> to vector<128x128xf32>
    %c0_15 = arith.constant 0 : index
    %c4 = arith.constant 4 : index
    %c0_16 = arith.constant 0 : index
    %c0_17 = arith.constant 0 : index
    %17 = vector.load %arg2[%c0_15, %c4, %c0_16, %c0_17] : memref<1x6x128x128xf32, #tpu.memory_space<vmem>>, vector<1x1x128x128xf32>
    %18 = vector.shape_cast %17 : vector<1x1x128x128xf32> to vector<128x128xf32>
    %c0_18 = arith.constant 0 : index
    %c5 = arith.constant 5 : index
    %c0_19 = arith.constant 0 : index
    %c0_20 = arith.constant 0 : index
    %19 = vector.load %arg2[%c0_18, %c5, %c0_19, %c0_20] : memref<1x6x128x128xf32, #tpu.memory_space<vmem>>, vector<1x1x128x128xf32>
    %20 = vector.shape_cast %19 : vector<1x1x128x128xf32> to vector<128x128xf32>
    %c0_21 = arith.constant 0 : index
    %c0_22 = arith.constant 0 : index
    %c0_23 = arith.constant 0 : index
    %21 = vector.load %arg3[%c0_21, %c0_22, %c0_23] : memref<1x16x128xf32, #tpu.memory_space<vmem>>, vector<1x1x128xf32>
    %22 = vector.shape_cast %21 : vector<1x1x128xf32> to vector<1x128xf32>
    %c0_24 = arith.constant 0 : index
    %c1_25 = arith.constant 1 : index
    %c0_26 = arith.constant 0 : index
    %23 = vector.load %arg3[%c0_24, %c1_25, %c0_26] : memref<1x16x128xf32, #tpu.memory_space<vmem>>, vector<1x1x128xf32>
    %24 = vector.shape_cast %23 : vector<1x1x128xf32> to vector<1x128xf32>
    %c0_27 = arith.constant 0 : index
    %c2_28 = arith.constant 2 : index
    %c0_29 = arith.constant 0 : index
    %25 = vector.load %arg3[%c0_27, %c2_28, %c0_29] : memref<1x16x128xf32, #tpu.memory_space<vmem>>, vector<1x1x128xf32>
    %26 = vector.shape_cast %25 : vector<1x1x128xf32> to vector<1x128xf32>
    %c0_30 = arith.constant 0 : index
    %c3_31 = arith.constant 3 : index
    %c0_32 = arith.constant 0 : index
    %27 = vector.load %arg3[%c0_30, %c3_31, %c0_32] : memref<1x16x128xf32, #tpu.memory_space<vmem>>, vector<1x1x128xf32>
    %28 = vector.shape_cast %27 : vector<1x1x128xf32> to vector<1x128xf32>
    %c0_33 = arith.constant 0 : index
    %c4_34 = arith.constant 4 : index
    %c0_35 = arith.constant 0 : index
    %29 = vector.load %arg3[%c0_33, %c4_34, %c0_35] : memref<1x16x128xf32, #tpu.memory_space<vmem>>, vector<1x1x128xf32>
    %30 = vector.shape_cast %29 : vector<1x1x128xf32> to vector<1x128xf32>
    %c0_36 = arith.constant 0 : index
    %c5_37 = arith.constant 5 : index
    %c0_38 = arith.constant 0 : index
    %31 = vector.load %arg3[%c0_36, %c5_37, %c0_38] : memref<1x16x128xf32, #tpu.memory_space<vmem>>, vector<1x1x128xf32>
    %32 = vector.shape_cast %31 : vector<1x1x128xf32> to vector<1x128xf32>
    %c0_39 = arith.constant 0 : index
    %c6 = arith.constant 6 : index
    %c0_40 = arith.constant 0 : index
    %33 = vector.load %arg3[%c0_39, %c6, %c0_40] : memref<1x16x128xf32, #tpu.memory_space<vmem>>, vector<1x1x128xf32>
    %34 = vector.shape_cast %33 : vector<1x1x128xf32> to vector<1x128xf32>
    %c0_41 = arith.constant 0 : index
    %c7 = arith.constant 7 : index
    %c0_42 = arith.constant 0 : index
    %35 = vector.load %arg3[%c0_41, %c7, %c0_42] : memref<1x16x128xf32, #tpu.memory_space<vmem>>, vector<1x1x128xf32>
    %36 = vector.shape_cast %35 : vector<1x1x128xf32> to vector<1x128xf32>
    %c0_43 = arith.constant 0 : index
    %c8 = arith.constant 8 : index
    %c0_44 = arith.constant 0 : index
    %37 = vector.load %arg3[%c0_43, %c8, %c0_44] : memref<1x16x128xf32, #tpu.memory_space<vmem>>, vector<1x1x128xf32>
    %38 = vector.shape_cast %37 : vector<1x1x128xf32> to vector<1x128xf32>
    %c0_45 = arith.constant 0 : index
    %c9 = arith.constant 9 : index
    %c0_46 = arith.constant 0 : index
    %39 = vector.load %arg3[%c0_45, %c9, %c0_46] : memref<1x16x128xf32, #tpu.memory_space<vmem>>, vector<1x1x128xf32>
    %40 = vector.shape_cast %39 : vector<1x1x128xf32> to vector<1x128xf32>
    %cst = arith.constant dense<0.000000e+00> : vector<32x128xf32>
    %41 = tpu.matmul %3, %10, %cst {dimension_numbers = #tpu.dot_dimension_numbers<[1], [0], [0], [1], [0, 0, 1, 1], [], []>} : vector<32x128xf32>, vector<128x128xf32>, vector<32x128xf32> -> vector<32x128xf32>
    %42 = vector.broadcast %22 : vector<1x128xf32> to vector<32x128xf32>
    %43 = arith.addf %41, %42 : vector<32x128xf32>
    %cst_47 = arith.constant dense<0.000000e+00> : vector<32x128xf32>
    %44 = tpu.matmul %3, %12, %cst_47 {dimension_numbers = #tpu.dot_dimension_numbers<[1], [0], [0], [1], [0, 0, 1, 1], [], []>} : vector<32x128xf32>, vector<128x128xf32>, vector<32x128xf32> -> vector<32x128xf32>
    %45 = vector.broadcast %24 : vector<1x128xf32> to vector<32x128xf32>
    %46 = arith.addf %44, %45 : vector<32x128xf32>
    %cst_48 = arith.constant dense<0.000000e+00> : vector<32x128xf32>
    %47 = tpu.matmul %3, %14, %cst_48 {dimension_numbers = #tpu.dot_dimension_numbers<[1], [0], [0], [1], [0, 0, 1, 1], [], []>} : vector<32x128xf32>, vector<128x128xf32>, vector<32x128xf32> -> vector<32x128xf32>
    %48 = vector.broadcast %26 : vector<1x128xf32> to vector<32x128xf32>
    %49 = arith.addf %47, %48 : vector<32x128xf32>
    %50 = tpu.iota {dimensions = array<i32: 0>} : vector<32x32xi32>
    %51 = tpu.iota {dimensions = array<i32: 1>} : vector<32x32xi32>
    %c0_i32_49 = arith.constant 0 : i32
    %52 = vector.broadcast %c0_i32_49 : i32 to vector<32x32xi32>
    %53 = arith.cmpi sge, %50, %52 : vector<32x32xi32>
    %c16_i32 = arith.constant 16 : i32
    %54 = vector.broadcast %c16_i32 : i32 to vector<32x32xi32>
    %55 = arith.cmpi slt, %50, %54 : vector<32x32xi32>
    %56 = arith.andi %53, %55 : vector<32x32xi1>
    %c0_i32_50 = arith.constant 0 : i32
    %57 = vector.broadcast %c0_i32_50 : i32 to vector<32x32xi32>
    %58 = arith.cmpi sge, %51, %57 : vector<32x32xi32>
    %c16_i32_51 = arith.constant 16 : i32
    %59 = vector.broadcast %c16_i32_51 : i32 to vector<32x32xi32>
    %60 = arith.cmpi slt, %51, %59 : vector<32x32xi32>
    %61 = arith.andi %58, %60 : vector<32x32xi1>
    %62 = arith.andi %56, %61 : vector<32x32xi1>
    %c16_i32_52 = arith.constant 16 : i32
    %63 = vector.broadcast %c16_i32_52 : i32 to vector<32x32xi32>
    %64 = arith.cmpi sge, %50, %63 : vector<32x32xi32>
    %c32_i32_53 = arith.constant 32 : i32
    %65 = vector.broadcast %c32_i32_53 : i32 to vector<32x32xi32>
    %66 = arith.cmpi slt, %50, %65 : vector<32x32xi32>
    %67 = arith.andi %64, %66 : vector<32x32xi1>
    %c16_i32_54 = arith.constant 16 : i32
    %68 = vector.broadcast %c16_i32_54 : i32 to vector<32x32xi32>
    %69 = arith.cmpi sge, %51, %68 : vector<32x32xi32>
    %c32_i32_55 = arith.constant 32 : i32
    %70 = vector.broadcast %c32_i32_55 : i32 to vector<32x32xi32>
    %71 = arith.cmpi slt, %51, %70 : vector<32x32xi32>
    %72 = arith.andi %69, %71 : vector<32x32xi1>
    %73 = arith.andi %67, %72 : vector<32x32xi1>
    %74 = arith.ori %62, %73 : vector<32x32xi1>
    %cst_56 = arith.constant 0.000000e+00 : f32
    %cst_57 = arith.constant -1.000000e+30 : f32
    %75 = vector.broadcast %cst_56 : f32 to vector<32x32xf32>
    %76 = vector.broadcast %cst_57 : f32 to vector<32x32xf32>
    %77 = arith.select %74, %75, %76 : vector<32x32xi1>, vector<32x32xf32>
    %cst_58 = arith.constant 0.000000e+00 : f32
    %78 = vector.broadcast %cst_58 : f32 to vector<32x128xf32>
    %c0_i32_59 = arith.constant 0 : i32
    %79 = vector.broadcast %c0_i32_59 : i32 to vector<1x128xi32>
    %80 = arith.cmpi sge, %4, %79 : vector<1x128xi32>
    %c8_i32 = arith.constant 8 : i32
    %81 = vector.broadcast %c8_i32 : i32 to vector<1x128xi32>
    %82 = arith.cmpi slt, %4, %81 : vector<1x128xi32>
    %83 = arith.andi %80, %82 : vector<1x128xi1>
    %84 = arith.extui %83 : vector<1x128xi1> to vector<1x128xi32>
    %85 = arith.sitofp %84 : vector<1x128xi32> to vector<1x128xf32>
    %86 = vector.broadcast %85 : vector<1x128xf32> to vector<32x128xf32>
    %87 = arith.mulf %43, %86 : vector<32x128xf32>
    %88 = vector.broadcast %85 : vector<1x128xf32> to vector<32x128xf32>
    %89 = arith.mulf %49, %88 : vector<32x128xf32>
    %cst_60 = arith.constant dense<0.000000e+00> : vector<32x32xf32>
    %90 = tpu.matmul %87, %46, %cst_60 {dimension_numbers = #tpu.dot_dimension_numbers<[1], [1], [0], [0], [0, 0, 1, 0], [], []>} : vector<32x128xf32>, vector<32x128xf32>, vector<32x32xf32> -> vector<32x32xf32>
    %cst_61 = arith.constant 0.353553385 : f32
    %91 = vector.broadcast %cst_61 : f32 to vector<32x32xf32>
    %92 = arith.mulf %90, %91 : vector<32x32xf32>
    %93 = arith.addf %92, %77 : vector<32x32xf32>
    %cst_62 = arith.constant dense<0xFF800000> : vector<32xf32>
    %94 = vector.multi_reduction <maximumf>, %93, %cst_62 [1] : vector<32x32xf32> to vector<32xf32>
    %95 = vector.shape_cast %94 : vector<32xf32> to vector<32x1xf32>
    %96 = vector.broadcast %95 : vector<32x1xf32> to vector<32x32xf32>
    %97 = arith.subf %93, %96 : vector<32x32xf32>
    %98 = math.exp %97 : vector<32x32xf32>
    %cst_63 = arith.constant dense<0.000000e+00> : vector<32xf32>
    %99 = vector.multi_reduction <add>, %98, %cst_63 [1] : vector<32x32xf32> to vector<32xf32>
    %100 = vector.shape_cast %99 : vector<32xf32> to vector<32x1xf32>
    %101 = tpu.reciprocal %100 {approx = true} : vector<32x1xf32> -> vector<32x1xf32>
    %102 = vector.broadcast %101 : vector<32x1xf32> to vector<32x32xf32>
    %103 = arith.mulf %98, %102 : vector<32x32xf32>
    %cst_64 = arith.constant dense<0.000000e+00> : vector<32x128xf32>
    %104 = tpu.matmul %103, %89, %cst_64 {dimension_numbers = #tpu.dot_dimension_numbers<[1], [0], [0], [1], [0, 0, 1, 1], [], []>} : vector<32x32xf32>, vector<32x128xf32>, vector<32x128xf32> -> vector<32x128xf32>
    %105 = arith.addf %78, %104 : vector<32x128xf32>
    %c8_i32_65 = arith.constant 8 : i32
    %106 = vector.broadcast %c8_i32_65 : i32 to vector<1x128xi32>
    %107 = arith.cmpi sge, %4, %106 : vector<1x128xi32>
    %c16_i32_66 = arith.constant 16 : i32
    %108 = vector.broadcast %c16_i32_66 : i32 to vector<1x128xi32>
    %109 = arith.cmpi slt, %4, %108 : vector<1x128xi32>
    %110 = arith.andi %107, %109 : vector<1x128xi1>
    %111 = arith.extui %110 : vector<1x128xi1> to vector<1x128xi32>
    %112 = arith.sitofp %111 : vector<1x128xi32> to vector<1x128xf32>
    %113 = vector.broadcast %112 : vector<1x128xf32> to vector<32x128xf32>
    %114 = arith.mulf %43, %113 : vector<32x128xf32>
    %115 = vector.broadcast %112 : vector<1x128xf32> to vector<32x128xf32>
    %116 = arith.mulf %49, %115 : vector<32x128xf32>
    %cst_67 = arith.constant dense<0.000000e+00> : vector<32x32xf32>
    %117 = tpu.matmul %114, %46, %cst_67 {dimension_numbers = #tpu.dot_dimension_numbers<[1], [1], [0], [0], [0, 0, 1, 0], [], []>} : vector<32x128xf32>, vector<32x128xf32>, vector<32x32xf32> -> vector<32x32xf32>
    %cst_68 = arith.constant 0.353553385 : f32
    %118 = vector.broadcast %cst_68 : f32 to vector<32x32xf32>
    %119 = arith.mulf %117, %118 : vector<32x32xf32>
    %120 = arith.addf %119, %77 : vector<32x32xf32>
    %cst_69 = arith.constant dense<0xFF800000> : vector<32xf32>
    %121 = vector.multi_reduction <maximumf>, %120, %cst_69 [1] : vector<32x32xf32> to vector<32xf32>
    %122 = vector.shape_cast %121 : vector<32xf32> to vector<32x1xf32>
    %123 = vector.broadcast %122 : vector<32x1xf32> to vector<32x32xf32>
    %124 = arith.subf %120, %123 : vector<32x32xf32>
    %125 = math.exp %124 : vector<32x32xf32>
    %cst_70 = arith.constant dense<0.000000e+00> : vector<32xf32>
    %126 = vector.multi_reduction <add>, %125, %cst_70 [1] : vector<32x32xf32> to vector<32xf32>
    %127 = vector.shape_cast %126 : vector<32xf32> to vector<32x1xf32>
    %128 = tpu.reciprocal %127 {approx = true} : vector<32x1xf32> -> vector<32x1xf32>
    %129 = vector.broadcast %128 : vector<32x1xf32> to vector<32x32xf32>
    %130 = arith.mulf %125, %129 : vector<32x32xf32>
    %cst_71 = arith.constant dense<0.000000e+00> : vector<32x128xf32>
    %131 = tpu.matmul %130, %116, %cst_71 {dimension_numbers = #tpu.dot_dimension_numbers<[1], [0], [0], [1], [0, 0, 1, 1], [], []>} : vector<32x32xf32>, vector<32x128xf32>, vector<32x128xf32> -> vector<32x128xf32>
    %132 = arith.addf %105, %131 : vector<32x128xf32>
    %c16_i32_72 = arith.constant 16 : i32
    %133 = vector.broadcast %c16_i32_72 : i32 to vector<1x128xi32>
    %134 = arith.cmpi sge, %4, %133 : vector<1x128xi32>
    %c24_i32 = arith.constant 24 : i32
    %135 = vector.broadcast %c24_i32 : i32 to vector<1x128xi32>
    %136 = arith.cmpi slt, %4, %135 : vector<1x128xi32>
    %137 = arith.andi %134, %136 : vector<1x128xi1>
    %138 = arith.extui %137 : vector<1x128xi1> to vector<1x128xi32>
    %139 = arith.sitofp %138 : vector<1x128xi32> to vector<1x128xf32>
    %140 = vector.broadcast %139 : vector<1x128xf32> to vector<32x128xf32>
    %141 = arith.mulf %43, %140 : vector<32x128xf32>
    %142 = vector.broadcast %139 : vector<1x128xf32> to vector<32x128xf32>
    %143 = arith.mulf %49, %142 : vector<32x128xf32>
    %cst_73 = arith.constant dense<0.000000e+00> : vector<32x32xf32>
    %144 = tpu.matmul %141, %46, %cst_73 {dimension_numbers = #tpu.dot_dimension_numbers<[1], [1], [0], [0], [0, 0, 1, 0], [], []>} : vector<32x128xf32>, vector<32x128xf32>, vector<32x32xf32> -> vector<32x32xf32>
    %cst_74 = arith.constant 0.353553385 : f32
    %145 = vector.broadcast %cst_74 : f32 to vector<32x32xf32>
    %146 = arith.mulf %144, %145 : vector<32x32xf32>
    %147 = arith.addf %146, %77 : vector<32x32xf32>
    %cst_75 = arith.constant dense<0xFF800000> : vector<32xf32>
    %148 = vector.multi_reduction <maximumf>, %147, %cst_75 [1] : vector<32x32xf32> to vector<32xf32>
    %149 = vector.shape_cast %148 : vector<32xf32> to vector<32x1xf32>
    %150 = vector.broadcast %149 : vector<32x1xf32> to vector<32x32xf32>
    %151 = arith.subf %147, %150 : vector<32x32xf32>
    %152 = math.exp %151 : vector<32x32xf32>
    %cst_76 = arith.constant dense<0.000000e+00> : vector<32xf32>
    %153 = vector.multi_reduction <add>, %152, %cst_76 [1] : vector<32x32xf32> to vector<32xf32>
    %154 = vector.shape_cast %153 : vector<32xf32> to vector<32x1xf32>
    %155 = tpu.reciprocal %154 {approx = true} : vector<32x1xf32> -> vector<32x1xf32>
    %156 = vector.broadcast %155 : vector<32x1xf32> to vector<32x32xf32>
    %157 = arith.mulf %152, %156 : vector<32x32xf32>
    %cst_77 = arith.constant dense<0.000000e+00> : vector<32x128xf32>
    %158 = tpu.matmul %157, %143, %cst_77 {dimension_numbers = #tpu.dot_dimension_numbers<[1], [0], [0], [1], [0, 0, 1, 1], [], []>} : vector<32x32xf32>, vector<32x128xf32>, vector<32x128xf32> -> vector<32x128xf32>
    %159 = arith.addf %132, %158 : vector<32x128xf32>
    %c24_i32_78 = arith.constant 24 : i32
    %160 = vector.broadcast %c24_i32_78 : i32 to vector<1x128xi32>
    %161 = arith.cmpi sge, %4, %160 : vector<1x128xi32>
    %c32_i32_79 = arith.constant 32 : i32
    %162 = vector.broadcast %c32_i32_79 : i32 to vector<1x128xi32>
    %163 = arith.cmpi slt, %4, %162 : vector<1x128xi32>
    %164 = arith.andi %161, %163 : vector<1x128xi1>
    %165 = arith.extui %164 : vector<1x128xi1> to vector<1x128xi32>
    %166 = arith.sitofp %165 : vector<1x128xi32> to vector<1x128xf32>
    %167 = vector.broadcast %166 : vector<1x128xf32> to vector<32x128xf32>
    %168 = arith.mulf %43, %167 : vector<32x128xf32>
    %169 = vector.broadcast %166 : vector<1x128xf32> to vector<32x128xf32>
    %170 = arith.mulf %49, %169 : vector<32x128xf32>
    %cst_80 = arith.constant dense<0.000000e+00> : vector<32x32xf32>
    %171 = tpu.matmul %168, %46, %cst_80 {dimension_numbers = #tpu.dot_dimension_numbers<[1], [1], [0], [0], [0, 0, 1, 0], [], []>} : vector<32x128xf32>, vector<32x128xf32>, vector<32x32xf32> -> vector<32x32xf32>
    %cst_81 = arith.constant 0.353553385 : f32
    %172 = vector.broadcast %cst_81 : f32 to vector<32x32xf32>
    %173 = arith.mulf %171, %172 : vector<32x32xf32>
    %174 = arith.addf %173, %77 : vector<32x32xf32>
    %cst_82 = arith.constant dense<0xFF800000> : vector<32xf32>
    %175 = vector.multi_reduction <maximumf>, %174, %cst_82 [1] : vector<32x32xf32> to vector<32xf32>
    %176 = vector.shape_cast %175 : vector<32xf32> to vector<32x1xf32>
    %177 = vector.broadcast %176 : vector<32x1xf32> to vector<32x32xf32>
    %178 = arith.subf %174, %177 : vector<32x32xf32>
    %179 = math.exp %178 : vector<32x32xf32>
    %cst_83 = arith.constant dense<0.000000e+00> : vector<32xf32>
    %180 = vector.multi_reduction <add>, %179, %cst_83 [1] : vector<32x32xf32> to vector<32xf32>
    %181 = vector.shape_cast %180 : vector<32xf32> to vector<32x1xf32>
    %182 = tpu.reciprocal %181 {approx = true} : vector<32x1xf32> -> vector<32x1xf32>
    %183 = vector.broadcast %182 : vector<32x1xf32> to vector<32x32xf32>
    %184 = arith.mulf %179, %183 : vector<32x32xf32>
    %cst_84 = arith.constant dense<0.000000e+00> : vector<32x128xf32>
    %185 = tpu.matmul %184, %170, %cst_84 {dimension_numbers = #tpu.dot_dimension_numbers<[1], [0], [0], [1], [0, 0, 1, 1], [], []>} : vector<32x32xf32>, vector<32x128xf32>, vector<32x128xf32> -> vector<32x128xf32>
    %186 = arith.addf %159, %185 : vector<32x128xf32>
    %cst_85 = arith.constant dense<0.000000e+00> : vector<32x128xf32>
    %187 = tpu.matmul %186, %16, %cst_85 {dimension_numbers = #tpu.dot_dimension_numbers<[1], [0], [0], [1], [0, 0, 1, 1], [], []>} : vector<32x128xf32>, vector<128x128xf32>, vector<32x128xf32> -> vector<32x128xf32>
    %188 = vector.broadcast %28 : vector<1x128xf32> to vector<32x128xf32>
    %189 = arith.addf %187, %188 : vector<32x128xf32>
    %190 = arith.addf %189, %3 : vector<32x128xf32>
    %cst_86 = arith.constant dense<0.000000e+00> : vector<32xf32>
    %191 = vector.multi_reduction <add>, %190, %cst_86 [1] : vector<32x128xf32> to vector<32xf32>
    %192 = vector.shape_cast %191 : vector<32xf32> to vector<32x1xf32>
    %cst_87 = arith.constant 3.125000e-02 : f32
    %193 = vector.broadcast %cst_87 : f32 to vector<32x1xf32>
    %194 = arith.mulf %192, %193 : vector<32x1xf32>
    %195 = vector.broadcast %194 : vector<32x1xf32> to vector<32x128xf32>
    %196 = arith.subf %190, %195 : vector<32x128xf32>
    %197 = vector.broadcast %8 : vector<1x128xf32> to vector<32x128xf32>
    %198 = arith.mulf %196, %197 : vector<32x128xf32>
    %199 = arith.mulf %198, %198 : vector<32x128xf32>
    %cst_88 = arith.constant dense<0.000000e+00> : vector<32xf32>
    %200 = vector.multi_reduction <add>, %199, %cst_88 [1] : vector<32x128xf32> to vector<32xf32>
    %201 = vector.shape_cast %200 : vector<32xf32> to vector<32x1xf32>
    %cst_89 = arith.constant 3.125000e-02 : f32
    %202 = vector.broadcast %cst_89 : f32 to vector<32x1xf32>
    %203 = arith.mulf %201, %202 : vector<32x1xf32>
    %cst_90 = arith.constant 9.99999974E-6 : f32
    %204 = vector.broadcast %cst_90 : f32 to vector<32x1xf32>
    %205 = arith.addf %203, %204 : vector<32x1xf32>
    %206 = math.rsqrt %205 : vector<32x1xf32>
    %207 = vector.broadcast %206 : vector<32x1xf32> to vector<32x128xf32>
    %208 = arith.mulf %198, %207 : vector<32x128xf32>
    %209 = vector.broadcast %34 : vector<1x128xf32> to vector<32x128xf32>
    %210 = arith.mulf %208, %209 : vector<32x128xf32>
    %211 = vector.broadcast %36 : vector<1x128xf32> to vector<32x128xf32>
    %212 = arith.addf %210, %211 : vector<32x128xf32>
    %cst_91 = arith.constant dense<0.000000e+00> : vector<32x128xf32>
    %213 = tpu.matmul %212, %18, %cst_91 {dimension_numbers = #tpu.dot_dimension_numbers<[1], [0], [0], [1], [0, 0, 1, 1], [], []>} : vector<32x128xf32>, vector<128x128xf32>, vector<32x128xf32> -> vector<32x128xf32>
    %214 = vector.broadcast %30 : vector<1x128xf32> to vector<32x128xf32>
    %215 = arith.addf %213, %214 : vector<32x128xf32>
    %cst_92 = arith.constant 0.000000e+00 : f32
    %216 = vector.broadcast %cst_92 : f32 to vector<32x128xf32>
    %217 = arith.maximumf %215, %216 : vector<32x128xf32>
    %cst_93 = arith.constant dense<0.000000e+00> : vector<32x128xf32>
    %218 = tpu.matmul %217, %20, %cst_93 {dimension_numbers = #tpu.dot_dimension_numbers<[1], [0], [0], [1], [0, 0, 1, 1], [], []>} : vector<32x128xf32>, vector<128x128xf32>, vector<32x128xf32> -> vector<32x128xf32>
    %219 = vector.broadcast %32 : vector<1x128xf32> to vector<32x128xf32>
    %220 = arith.addf %218, %219 : vector<32x128xf32>
    %221 = arith.addf %220, %212 : vector<32x128xf32>
    %cst_94 = arith.constant dense<0.000000e+00> : vector<32xf32>
    %222 = vector.multi_reduction <add>, %221, %cst_94 [1] : vector<32x128xf32> to vector<32xf32>
    %223 = vector.shape_cast %222 : vector<32xf32> to vector<32x1xf32>
    %cst_95 = arith.constant 3.125000e-02 : f32
    %224 = vector.broadcast %cst_95 : f32 to vector<32x1xf32>
    %225 = arith.mulf %223, %224 : vector<32x1xf32>
    %226 = vector.broadcast %225 : vector<32x1xf32> to vector<32x128xf32>
    %227 = arith.subf %221, %226 : vector<32x128xf32>
    %228 = vector.broadcast %8 : vector<1x128xf32> to vector<32x128xf32>
    %229 = arith.mulf %227, %228 : vector<32x128xf32>
    %230 = arith.mulf %229, %229 : vector<32x128xf32>
    %cst_96 = arith.constant dense<0.000000e+00> : vector<32xf32>
    %231 = vector.multi_reduction <add>, %230, %cst_96 [1] : vector<32x128xf32> to vector<32xf32>
    %232 = vector.shape_cast %231 : vector<32xf32> to vector<32x1xf32>
    %cst_97 = arith.constant 3.125000e-02 : f32
    %233 = vector.broadcast %cst_97 : f32 to vector<32x1xf32>
    %234 = arith.mulf %232, %233 : vector<32x1xf32>
    %cst_98 = arith.constant 9.99999974E-6 : f32
    %235 = vector.broadcast %cst_98 : f32 to vector<32x1xf32>
    %236 = arith.addf %234, %235 : vector<32x1xf32>
    %237 = math.rsqrt %236 : vector<32x1xf32>
    %238 = vector.broadcast %237 : vector<32x1xf32> to vector<32x128xf32>
    %239 = arith.mulf %229, %238 : vector<32x128xf32>
    %240 = vector.broadcast %38 : vector<1x128xf32> to vector<32x128xf32>
    %241 = arith.mulf %239, %240 : vector<32x128xf32>
    %242 = vector.broadcast %40 : vector<1x128xf32> to vector<32x128xf32>
    %243 = arith.addf %241, %242 : vector<32x128xf32>
    %c0_99 = arith.constant 0 : index
    %c0_100 = arith.constant 0 : index
    %244 = vector.load %arg10[%c0_99, %c0_100] : memref<32x128xf32, #tpu.memory_space<vmem>>, vector<32x128xf32>
    tpu.vector_store %arg10[%c0_99, %c0_100], %243 {strides = array<i32>} : memref<32x128xf32, #tpu.memory_space<vmem>>, vector<32x128xf32>,
    %c0_i32_101 = arith.constant 0 : i32
    %245 = arith.cmpi eq, %arg0, %c0_i32_101 : i32
    %246 = arith.extui %245 : i1 to i32
    %c0_i32_102 = arith.constant 0 : i32
    %247 = arith.cmpi ne, %246, %c0_i32_102 : i32
    scf.if %247 {
      %248 = tpu.iota {dimensions = array<i32: 1>} : vector<1x128xi32>
      %c32_i32_103 = arith.constant 32 : i32
      %249 = vector.broadcast %c32_i32_103 : i32 to vector<1x128xi32>
      %250 = arith.cmpi slt, %248, %249 : vector<1x128xi32>
      %251 = arith.extui %250 : vector<1x128xi1> to vector<1x128xi32>
      %252 = arith.sitofp %251 : vector<1x128xi32> to vector<1x128xf32>
      %c0_104 = arith.constant 0 : index
      %c0_105 = arith.constant 0 : index
      %253 = vector.load %arg4[%c0_104, %c0_105] : memref<8x128xf32, #tpu.memory_space<vmem>>, vector<1x128xf32>
      %c1_106 = arith.constant 1 : index
      %c0_107 = arith.constant 0 : index
      %254 = vector.load %arg4[%c1_106, %c0_107] : memref<8x128xf32, #tpu.memory_space<vmem>>, vector<1x128xf32>
      %cst_108 = arith.constant dense<0.000000e+00> : vector<32xf32>
      %255 = vector.multi_reduction <add>, %243, %cst_108 [1] : vector<32x128xf32> to vector<32xf32>
      %256 = vector.shape_cast %255 : vector<32xf32> to vector<32x1xf32>
      %cst_109 = arith.constant 3.125000e-02 : f32
      %257 = vector.broadcast %cst_109 : f32 to vector<32x1xf32>
      %258 = arith.mulf %256, %257 : vector<32x1xf32>
      %259 = vector.broadcast %258 : vector<32x1xf32> to vector<32x128xf32>
      %260 = arith.subf %243, %259 : vector<32x128xf32>
      %261 = vector.broadcast %252 : vector<1x128xf32> to vector<32x128xf32>
      %262 = arith.mulf %260, %261 : vector<32x128xf32>
      %263 = arith.mulf %262, %262 : vector<32x128xf32>
      %cst_110 = arith.constant dense<0.000000e+00> : vector<32xf32>
      %264 = vector.multi_reduction <add>, %263, %cst_110 [1] : vector<32x128xf32> to vector<32xf32>
      %265 = vector.shape_cast %264 : vector<32xf32> to vector<32x1xf32>
      %cst_111 = arith.constant 3.125000e-02 : f32
      %266 = vector.broadcast %cst_111 : f32 to vector<32x1xf32>
      %267 = arith.mulf %265, %266 : vector<32x1xf32>
      %cst_112 = arith.constant 9.99999974E-6 : f32
      %268 = vector.broadcast %cst_112 : f32 to vector<32x1xf32>
      %269 = arith.addf %267, %268 : vector<32x1xf32>
      %270 = math.rsqrt %269 : vector<32x1xf32>
      %271 = vector.broadcast %270 : vector<32x1xf32> to vector<32x128xf32>
      %272 = arith.mulf %262, %271 : vector<32x128xf32>
      %273 = vector.broadcast %253 : vector<1x128xf32> to vector<32x128xf32>
      %274 = arith.mulf %272, %273 : vector<32x128xf32>
      %275 = vector.broadcast %254 : vector<1x128xf32> to vector<32x128xf32>
      %276 = arith.addf %274, %275 : vector<32x128xf32>
      %c0_113 = arith.constant 0 : index
      %c0_114 = arith.constant 0 : index
      %277 = vector.load %arg5[%c0_113, %c0_114] : memref<128x128xf32, #tpu.memory_space<vmem>>, vector<128x128xf32>
      %cst_115 = arith.constant dense<0.000000e+00> : vector<32x128xf32>
      %278 = tpu.matmul %276, %277, %cst_115 {dimension_numbers = #tpu.dot_dimension_numbers<[1], [0], [0], [1], [0, 0, 1, 1], [], []>} : vector<32x128xf32>, vector<128x128xf32>, vector<32x128xf32> -> vector<32x128xf32>
      %c2_116 = arith.constant 2 : index
      %c0_117 = arith.constant 0 : index
      %279 = vector.load %arg4[%c2_116, %c0_117] : memref<8x128xf32, #tpu.memory_space<vmem>>, vector<1x128xf32>
      %280 = vector.broadcast %279 : vector<1x128xf32> to vector<32x128xf32>
      %281 = arith.addf %278, %280 : vector<32x128xf32>
      %c0_118 = arith.constant 0 : index
      %c0_119 = arith.constant 0 : index
      %282 = vector.load %arg8[%c0_118, %c0_119] : memref<32x128xf32, #tpu.memory_space<vmem>>, vector<32x128xf32>
      tpu.vector_store %arg8[%c0_118, %c0_119], %281 {strides = array<i32>} : memref<32x128xf32, #tpu.memory_space<vmem>>, vector<32x128xf32>,
      %c0_120 = arith.constant 0 : index
      %c0_121 = arith.constant 0 : index
      %283 = vector.load %arg6[%c0_120, %c0_121] : memref<32x128xf32, #tpu.memory_space<vmem>>, vector<32x128xf32>
      %284 = arith.subf %281, %283 : vector<32x128xf32>
      %285 = arith.mulf %284, %284 : vector<32x128xf32>
      %c0_122 = arith.constant 0 : index
      %c0_123 = arith.constant 0 : index
      %286 = vector.load %arg7[%c0_122, %c0_123] : memref<32x1xf32, #tpu.memory_space<vmem>>, vector<32x1xf32>
      %287 = vector.broadcast %286 : vector<32x1xf32> to vector<32x128xf32>
      %288 = arith.mulf %285, %287 : vector<32x128xf32>
      %289 = vector.shape_cast %288 : vector<32x128xf32> to vector<1x32x128xf32>
      %cst_124 = arith.constant dense<0.000000e+00> : vector<1xf32>
      %290 = vector.multi_reduction <add>, %289, %cst_124 [1, 2] : vector<1x32x128xf32> to vector<1xf32>
      %291 = vector.shape_cast %290 : vector<1xf32> to vector<1x1x1xf32>
      %292 = vector.extract %291[0, 0, 0] : f32 from vector<1x1x1xf32>
      %c0_125 = arith.constant 0 : index
      %c0_126 = arith.constant 0 : index
      %293 = vector.load %arg7[%c0_125, %c0_126] : memref<32x1xf32, #tpu.memory_space<vmem>>, vector<32x1xf32>
      %294 = vector.shape_cast %293 : vector<32x1xf32> to vector<1x32x1xf32>
      %cst_127 = arith.constant dense<0.000000e+00> : vector<1xf32>
      %295 = vector.multi_reduction <add>, %294, %cst_127 [1, 2] : vector<1x32x1xf32> to vector<1xf32>
      %296 = vector.shape_cast %295 : vector<1xf32> to vector<1x1x1xf32>
      %297 = vector.extract %296[0, 0, 0] : f32 from vector<1x1x1xf32>
      %cst_128 = arith.constant 6.400000e+01 : f32
      %298 = arith.mulf %297, %cst_128 : f32
      %299 = arith.divf %292, %298 : f32
      %cst_129 = arith.constant 0.000000e+00 : f32
      %300 = vector.broadcast %cst_129 : f32 to vector<1x128xf32>
      %301 = vector.broadcast %299 : f32 to vector<1x128xf32>
      %302 = arith.addf %300, %301 : vector<1x128xf32>
      %c0_130 = arith.constant 0 : index
      %c0_131 = arith.constant 0 : index
      %303 = vector.load %arg9[%c0_130, %c0_131] : memref<1x128xf32, #tpu.memory_space<vmem>>, vector<1x128xf32>
      tpu.vector_store %arg9[%c0_130, %c0_131], %302 {strides = array<i32>} : memref<1x128xf32, #tpu.memory_space<vmem>>, vector<1x128xf32>,
    } else {
    }
    return
  }
  func.func @transform_0(%arg0: i32) -> (i32, i32) {
    %c0_i32 = arith.constant 0 : i32
    %c0_i32_0 = arith.constant 0 : i32
    %c0_i32_1 = arith.constant 0 : i32
    return %c0_i32, %c0_i32_0 : i32, i32
  }
  func.func @transform_1(%arg0: i32) -> (i32, i32, i32, i32) {
    %c0_i32 = arith.constant 0 : i32
    %c0_i32_0 = arith.constant 0 : i32
    %c0_i32_1 = arith.constant 0 : i32
    %c0_i32_2 = arith.constant 0 : i32
    return %arg0, %c0_i32, %c0_i32_0, %c0_i32_1 : i32, i32, i32, i32
  }
  func.func @transform_2(%arg0: i32) -> (i32, i32, i32) {
    %c0_i32 = arith.constant 0 : i32
    %c0_i32_0 = arith.constant 0 : i32
    %c0_i32_1 = arith.constant 0 : i32
    return %arg0, %c0_i32, %c0_i32_0 : i32, i32, i32
  }
  func.func @transform_3(%arg0: i32) -> (i32, i32) {
    %c0_i32 = arith.constant 0 : i32
    %c0_i32_0 = arith.constant 0 : i32
    %c0_i32_1 = arith.constant 0 : i32
    return %c0_i32, %c0_i32_0 : i32, i32
  }
  func.func @transform_4(%arg0: i32) -> (i32, i32) {
    %c0_i32 = arith.constant 0 : i32
    %c0_i32_0 = arith.constant 0 : i32
    %c0_i32_1 = arith.constant 0 : i32
    return %c0_i32, %c0_i32_0 : i32, i32
  }
  func.func @transform_5(%arg0: i32) -> (i32, i32) {
    %c0_i32 = arith.constant 0 : i32
    %c0_i32_0 = arith.constant 0 : i32
    %c0_i32_1 = arith.constant 0 : i32
    return %c0_i32, %c0_i32_0 : i32, i32
  }
  func.func @transform_6(%arg0: i32) -> (i32, i32) {
    %c0_i32 = arith.constant 0 : i32
    %c0_i32_0 = arith.constant 0 : i32
    %c0_i32_1 = arith.constant 0 : i32
    return %c0_i32, %c0_i32_0 : i32, i32
  }
  func.func @transform_7(%arg0: i32) -> (i32, i32) {
    %c0_i32 = arith.constant 0 : i32
    %c0_i32_0 = arith.constant 0 : i32
    %c0_i32_1 = arith.constant 0 : i32
    return %c0_i32, %c0_i32_0 : i32, i32
  }
  func.func @transform_8(%arg0: i32) -> (i32, i32) {
    %c0_i32 = arith.constant 0 : i32
    %c0_i32_0 = arith.constant 0 : i32
    %c0_i32_1 = arith.constant 0 : i32
    return %c0_i32, %c0_i32_0 : i32, i32
  }
}

</mosaic_0001>

<bundles_post_ra>
// kernel: _lambda_.3
= control target key start
LH: loop header
LB: loop body
LE: loop exit
PB: predicated region body
PF: predicated region fallthrough
CT: control target
= control target key end

     0   :  { %vm34_vm0 = vcmask 523264   ;;  %s301_s1 = inlined_call_operand.vmem [shape: f32[64,128], index: 1, kind: input, shape index: {}]   ;;  %s302_s0 = inlined_call_operand.vmem [shape: f32[32,64], index: 0, kind: input, shape index: {}]   ;;  %s303_s2 = inlined_call_operand.vmem [shape: f32[2,128], index: 2, kind: input, shape index: {}]   ;;  %s304_s4 = inlined_call_operand.vmem [shape: f32[34,128], index: 4, kind: output, shape index: {}]   ;;  %s305_s3 = inlined_call_operand.vmem [shape: f32[16,128], index: 3, kind: input, shape index: {}]  }
   0x1   :  { %v28_v0 = vld [vmem:[%s301_s1 + $0x38] sm:$0xff]  ;;  %v27_v1 = vld [vmem:[%s301_s1 + $0x30] sm:$0xff]  ;;  %v26_v2 = vld [vmem:[%s301_s1 + $0x28] sm:$0xff] }
   0x2   :  { %169 = vmatprep.subr.mxu0 %v28_v0  ;;  %191 = vmatprep.subr.mxu1 %v28_v0  ;;  %v25_v3 = vld [vmem:[%s301_s1 + $0x20] sm:$0xff]  ;;  %v24_v4 = vld [vmem:[%s301_s1 + $0x18] sm:$0xff]  ;;  %v23_v5 = vld [vmem:[%s301_s1 + $0x10] sm:$0xff] }
   0x3   :  { %170 = vmatpush3.msra.mxu0 %v28_v0  ;;  %199 = vmatpush3.msra.mxu1 %v28_v0  ;;  %v22_v6 = vld [vmem:[%s301_s1 + $0x8] sm:$0xff]  ;;  %v21_v7 = vld [vmem:[%s301_s1] sm:$0xff]  ;;  %v19_v9 = vld [vmem:[%s302_s0 + $0x10] sm:$0xff] }
   0x4   :  { %171 = vmatprep.subr.mxu0 %v27_v1  ;;  %192 = vmatprep.subr.mxu1 %v27_v1  ;;  %v17_v8 = vld [vmem:[%s302_s0] sm:$0xff]  ;;  %v18_v10 = vld [vmem:[%s302_s0 + $0x8] sm:$0xff]  ;;  %v20_v11 = vld [vmem:[%s302_s0 + $0x18] sm:$0xff] }
   0x5   :  { %172 = vmatpush3.msra.mxu0 %v27_v1  ;;  %200 = vmatpush3.msra.mxu1 %v27_v1  ;;  %v132_v12 = vld [vmem:[%s303_s2 + $0x1] sm:$0x1]  ;;  %v152_v14 = vld [vmem:[%s303_s2] ss:$0 sm:$0xff]  ;;  %v135_v16 = vld [vmem:[%s305_s3 + $0x8] sm:$0xff] }
   0x6   :  { %173 = vmatprep.subr.mxu0 %v26_v2  ;;  %193 = vmatprep.subr.mxu1 %v26_v2  ;;  %133 = vst [vmem:[%s304_s4] sm:$0x1] %v132_v12  ;;  %v140_v13 = vld [vmem:[%s303_s2 + $0x1] sm:$0x1] }
   0x7   :  { %174 = vmatpush3.msra.mxu0 %v26_v2  ;;  %201 = vmatpush3.msra.mxu1 %v26_v2  ;;  %141 = vst [vmem:[%s304_s4 + $0x11] sm:$0x1] %v140_v13  ;;  %v134_v21 = vld [vmem:[%s305_s3] sm:$0xff] }
   0x8   :  { %175 = vmatprep.subr.mxu0 %v25_v3  ;;  %194 = vmatprep.subr.mxu1 %v25_v3 }
   0x9   :  { %176 = vmatpush3.msra.mxu0 %v25_v3  ;;  %202 = vmatpush3.msra.mxu1 %v25_v3 }
   0xa   :  { %177 = vmatprep.subr.mxu0 %v24_v4  ;;  %195 = vmatprep.subr.mxu1 %v24_v4 }
   0xb   :  { %178 = vmatpush3.msra.mxu0 %v24_v4  ;;  %203 = vmatpush3.msra.mxu1 %v24_v4 }
   0xc   :  { %179 = vmatprep.subr.mxu0 %v23_v5  ;;  %196 = vmatprep.subr.mxu1 %v23_v5 }
   0xd   :  { %180 = vmatpush3.msra.mxu0 %v23_v5  ;;  %204 = vmatpush3.msra.mxu1 %v23_v5 }
   0xe   :  { %181 = vmatprep.subr.mxu0 %v22_v6  ;;  %197 = vmatprep.subr.mxu1 %v22_v6 }
   0xf   :  { %182 = vmatpush3.msra.mxu0 %v22_v6  ;;  %205 = vmatpush3.msra.mxu1 %v22_v6 }
  0x10   :  { %183 = vmatprep.subr.mxu0 %v21_v7  ;;  %198 = vmatprep.subr.mxu1 %v21_v7 }
  0x11   :  { %184 = vmatpush3.msra.mxu0 %v21_v7  ;;  %206 = vmatpush3.msra.mxu1 %v21_v7 }
  0x12   :  { %185 = vmatprep.mubr.msk.f32.mxu0 %vm34_vm0, %v17_v8  ;;  %188 = vmatprep.mubr.msk.f32.mxu1 %vm34_vm0, %v19_v9 }
  0x13   :  { %186 = vmatmul.mubr.msk.f32.vlgmr.msra.gmra.mxu0 %vm34_vm0, %v18_v10  ;;  %189 = vmatmul.mubr.msk.f32.vlgmr.msra.gmra.mxu1 %vm34_vm0, %v20_v11 }
  0xd3   :  { %v187_v15 = vpop.f32.mrf.mxu0  ;;  %v190_v17 = vpop.f32.mrf.mxu1 }
  0xd4   :  { %v119_v18 = vadd.f32 %v187_v15, %v152_v14  ;;  %v129_v19 = vadd.f32 %v190_v17, %v152_v14 }
  0xd5   :  { %v113_v20 = vpop.f32.mrf.mxu0  ;;  %v123_v22 = vpop.f32.mrf.mxu1 }
  0xd6   :  { %v137_v23 = vadd.f32 %v135_v16, %v119_v18  ;;  %v145_v24 = vadd.f32 %v135_v16, %v129_v19  ;;  %v114_v25 = vadd.f32 %v152_v14, %v113_v20  ;;  %v124_v26 = vadd.f32 %v152_v14, %v123_v22 }
  0xd8   :  { %139 = vst [vmem:[%s304_s4 + $0x9] sm:$0xff] %v137_v23  ;;  %147 = vst [vmem:[%s304_s4 + $0x1a] sm:$0xff] %v145_v24  ;;  %v136_v27 = vadd.f32 %v134_v21, %v114_v25  ;;  %v144_v28 = vadd.f32 %v134_v21, %v124_v26 }
  0xda   :  { %138 = vst [vmem:[%s304_s4 + $0x1] sm:$0xff] %v136_v27  ;;  %146 = vst [vmem:[%s304_s4 + $0x12] sm:$0xff] %v144_v28 }

// kernel: _lambda_.4
= control target key start
LH: loop header
LB: loop body
LE: loop exit
PB: predicated region body
PF: predicated region fallthrough
CT: control target
= control target key end

     0   :  { %s2402_s15 = smov 0   ;;  %s2724_s0 = inlined_call_operand.vmem [shape: f32[10,128], index: 0, kind: input, shape index: {}]   ;;  %s2725_s1 = inlined_call_operand.vmem [shape: f32[2,6,128,128], index: 1, kind: input, shape index: {}]   ;;  %s2726_s2 = inlined_call_operand.vmem [shape: f32[2,16,128], index: 2, kind: input, shape index: {}]   ;;  %s2727_s3 = inlined_call_operand.vmem [shape: f32[2,128], index: 3, kind: input, shape index: {}]   ;;  %s2728_s4 = inlined_call_operand.vmem [shape: f32[10,128], index: 4, kind: output, shape index: {}]  }
   0x1 LB: > { %s2408_s16 = sadd.s32 4294967295, %s2373_s15   ;;  %p1788_p0 = scmp.ge.s32.totalorder %s2373_s15, 1  ;;  %s2373_s15 = sphi %s2402_s15, %s14_s15  }
   0x2   : > { %p167_p1 = scmp.lt.s32.totalorder %s2373_s15, 3 }
   0x4   : > { %p168_p2 = pnand %p1788_p0, %p167_p1 }
   0x5   : > { %p193_p3 = scmp.lt.s32.totalorder (!%p168_p2), %s2408_s16, 1  ;;  %p1792_p4 = scmp.ne.s32.totalorder (!%p168_p2), %s2408_s16, 0 }
   0x6   : > { %171 = sbr.rel (%p168_p2) target bundleno = 3557 (0xde5), region = 36 }
   0xb   : > { %s194_s17 = scalar_select %p193_p3, %s2408_s16, 1 }
   0xc   : > { %206 = sbr.rel (%p1792_p4) target bundleno = 19 (0x13), region = 40 }
   0xd   : > { %s2312_s18 = smul.u32 768, %s194_s17  ;;  %s1905_s19 = sshll.u32 %s194_s17, 4 }
   0xe   : > { %s2417_s22 = scalar_lea.vmem %s2726_s2, %s1905_s19 }
   0xf   : > { %s2422_s25 = scalar_lea.vmem %s2725_s1, %s2312_s18 }
  0x11   : > { %v207_v0 = vld [vmem:[%s2724_s0] sm:$0xff]  ;;  %v208_v1 = vld [vmem:[%s2724_s0 + $0x8] sm:$0x3] }
  0x12   : > { %209 = vst [vmem:[#allocation2] sm:$0xff] %v207_v0  ;;  %210 = vst [vmem:[#allocation2 + $0x8] sm:$0x3] %v208_v1 }
  0x13 PF: > { %v1809_v2 = vld [vmem:[%s2422_s25 + $0xf8] sm:$0xff]  ;;  %v1808_v4 = vld [vmem:[%s2422_s25 + $0xf0] sm:$0xff]  ;;  %v1807_v6 = vld [vmem:[%s2422_s25 + $0xe8] sm:$0xff]  ;;  %v213_v36 = vlaneseq  ;;  %v2375_v46 = vmov 0.0   ;;  %vm682_vm15 = vcmask 80896   ;;  %p1900_p5 = scmp.ne.s32.totalorder %s2408_s16, 1 }
  0x14   : > { %v233_v3 = vld [vmem:[%s2422_s25 + $0x78] sm:$0xff]  ;;  %2081 = vmatprep.subr.mxu1 %v1809_v2  ;;  %v232_v5 = vld [vmem:[%s2422_s25 + $0x70] sm:$0xff]  ;;  %v231_v7 = vld [vmem:[%s2422_s25 + $0x68] sm:$0xff] }
  0x15   : > { %2046 = vmatprep.subr.mxu0 %v233_v3  ;;  %2082 = vmatpush3.msra.mxu1 %v1809_v2  ;;  %v1806_v8 = vld [vmem:[%s2422_s25 + $0xe0] sm:$0xff]  ;;  %v1805_v10 = vld [vmem:[%s2422_s25 + $0xd8] sm:$0xff]  ;;  %v1804_v12 = vld [vmem:[%s2422_s25 + $0xd0] sm:$0xff]  ;;  %v2473_v37 = vand.u32 127, %v213_v36 }
  0x16   : > { %2047 = vmatpush3.msra.mxu0 %v233_v3  ;;  %2083 = vmatprep.subr.mxu1 %v1808_v4  ;;  %v230_v9 = vld [vmem:[%s2422_s25 + $0x60] sm:$0xff]  ;;  %v229_v11 = vld [vmem:[%s2422_s25 + $0x58] sm:$0xff]  ;;  %v228_v13 = vld [vmem:[%s2422_s25 + $0x50] sm:$0xff] }
  0x17   : > { %2048 = vmatprep.subr.mxu0 %v232_v5  ;;  %2084 = vmatpush3.msra.mxu1 %v1808_v4  ;;  %v1803_v14 = vld [vmem:[%s2422_s25 + $0xc8] sm:$0xff]  ;;  %v1802_v16 = vld [vmem:[%s2422_s25 + $0xc0] sm:$0xff]  ;;  %v1801_v18 = vld [vmem:[%s2422_s25 + $0xb8] sm:$0xff]  ;;  %vm706_vm0 = vcmp.ge.s32.totalorder %v2473_v37, 8  ;;  %vm595_vm1 = vcmp.lt.s32.totalorder %v2473_v37, 8  ;;  %vm707_vm2 = vcmp.lt.s32.totalorder %v2473_v37, 16 }
  0x18   : > { %2049 = vmatpush3.msra.mxu0 %v232_v5  ;;  %2085 = vmatprep.subr.mxu1 %v1807_v6  ;;  %v227_v15 = vld [vmem:[%s2422_s25 + $0x48] sm:$0xff]  ;;  %v226_v17 = vld [vmem:[%s2422_s25 + $0x40] sm:$0xff]  ;;  %v225_v19 = vld [vmem:[%s2422_s25 + $0x38] sm:$0xff]  ;;  %v2487_v47 = vsel %vm595_vm1, 1.0, %v2375_v46  ;;  %vm586_vm4 = vcmp.ge.s32.totalorder %v2473_v37, 5  ;;  %vm587_vm5 = vcmp.lt.s32.totalorder %v2473_v37, 10 }
  0x19   : > { %2050 = vmatprep.subr.mxu0 %v231_v7  ;;  %2086 = vmatpush3.msra.mxu1 %v1807_v6  ;;  %v1800_v20 = vld [vmem:[%s2422_s25 + $0xb0] sm:$0xff]  ;;  %v1799_v22 = vld [vmem:[%s2422_s25 + $0xa8] sm:$0xff]  ;;  %v1798_v24 = vld [vmem:[%s2422_s25 + $0xa0] sm:$0xff]  ;;  %vm576_vm7 = vcmp.lt.s32.totalorder %v2473_v37, 5  ;;  %vm822_vm1 = vcmask 1041408  }
  0x1a   : > { %2051 = vmatpush3.msra.mxu0 %v231_v7  ;;  %2087 = vmatprep.subr.mxu1 %v1806_v8  ;;  %v224_v21 = vld [vmem:[%s2422_s25 + $0x30] sm:$0xff]  ;;  %v223_v23 = vld [vmem:[%s2422_s25 + $0x28] sm:$0xff]  ;;  %v222_v25 = vld [vmem:[%s2422_s25 + $0x20] sm:$0xff]  ;;  %v567_v7 = vshrl.u32 %v213_v36, 7 }
  0x1b   : > { %2052 = vmatprep.subr.mxu0 %v230_v9  ;;  %2088 = vmatpush3.msra.mxu1 %v1806_v8  ;;  %v1797_v26 = vld [vmem:[%s2422_s25 + $0x98] sm:$0xff]  ;;  %v1796_v28 = vld [vmem:[%s2422_s25 + $0x90] sm:$0xff]  ;;  %v1795_v30 = vld [vmem:[%s2422_s25 + $0x88] sm:$0xff] }
  0x1c   : > { %2053 = vmatpush3.msra.mxu0 %v230_v9  ;;  %2089 = vmatprep.subr.mxu1 %v1805_v10  ;;  %v221_v27 = vld [vmem:[%s2422_s25 + $0x18] sm:$0xff]  ;;  %v220_v29 = vld [vmem:[%s2422_s25 + $0x10] sm:$0xff]  ;;  %v219_v31 = vld [vmem:[%s2422_s25 + $0x8] sm:$0xff]  ;;  %vm571_vm6 = vcmp.lt.s32.totalorder %v567_v7, 5  ;;  %vm580_vm8 = vcmp.ge.s32.totalorder %v567_v7, 5  ;;  %v568_v8 = vadd.s32 8, %v567_v7 }
  0x1d   : > { %2054 = vmatprep.subr.mxu0 %v229_v11  ;;  %2090 = vmatpush3.msra.mxu1 %v1805_v10  ;;  %v1794_v32 = vld [vmem:[%s2422_s25 + $0x80] sm:$0xff]  ;;  %v2465_v35 = vld [vmem:[#allocation2 + $0x8] sm:$0x3]  ;;  %vm708_vm3 = vmand %vm706_vm0, %vm707_vm2  ;;  %vm686_vm0 = vcmask 74752   ;;  %vm985_vm2 = vcmp.ge.s32.totalorder %v2473_v37, 16 }
  0x1e   : > { %2055 = vmatpush3.msra.mxu0 %v229_v11  ;;  %2091 = vmatprep.subr.mxu1 %v1804_v12  ;;  %v2462_v33 = vld [vmem:[#allocation2] sm:$0xff]  ;;  %v2497_v51 = vsel %vm708_vm3, 1.0, %v2375_v46  ;;  %v1825_v55 = vld [vmem:[%s2422_s25 + $0x178] sm:$0xff]  ;;  %v1824_v56 = vld [vmem:[%s2422_s25 + $0x170] sm:$0xff]  ;;  %vm583_vm12 = vcmp.lt.s32.totalorder %v568_v8, 10  ;;  %vm986_vm3 = vcmp.lt.s32.totalorder %v2473_v37, 24 }
  0x1f   : > { %2056 = vmatprep.subr.mxu0 %v228_v13  ;;  %2092 = vmatpush3.msra.mxu1 %v1804_v12  ;;  %v218_v34 = vld [vmem:[%s2422_s25] sm:$0xff]  ;;  %v1823_v57 = vld [vmem:[%s2422_s25 + $0x168] sm:$0xff]  ;;  %v1821_v59 = vld [vmem:[%s2422_s25 + $0x158] sm:$0xff]  ;;  %v2376_v11 = vmov -1e+30  }
  0x20   : > { %2057 = vmatpush3.msra.mxu0 %v228_v13  ;;  %2093 = vmatprep.subr.mxu1 %v1803_v14  ;;  %v1875_v38 = vld [vmem:[%s2417_s22 + $0x1] ss:$0 sm:$0xff]  ;;  %v1874_v42 = vld [vmem:[%s2417_s22] ss:$0 sm:$0xff]  ;;  %v1820_v60 = vld [vmem:[%s2422_s25 + $0x150] sm:$0xff] }
  0x21   : > { %2058 = vmatprep.subr.mxu0 %v227_v15  ;;  %2094 = vmatpush3.msra.mxu1 %v1803_v14  ;;  %v1822_v58 = vld [vmem:[%s2422_s25 + $0x160] sm:$0xff]  ;;  %v1819_v61 = vld [vmem:[%s2422_s25 + $0x148] sm:$0xff]  ;;  %v1817_v63 = vld [vmem:[%s2422_s25 + $0x138] sm:$0xff] }
  0x22   : > { %2059 = vmatpush3.msra.mxu0 %v227_v15  ;;  %2095 = vmatprep.subr.mxu1 %v1802_v16  ;;  %v1818_v62 = vld [vmem:[%s2422_s25 + $0x140] sm:$0xff]  ;;  %v1816_v0 = vld [vmem:[%s2422_s25 + $0x130] sm:$0xff]  ;;  %v1815_v1 = vld [vmem:[%s2422_s25 + $0x128] sm:$0xff] }
  0x23   : > { %2060 = vmatprep.subr.mxu0 %v226_v17  ;;  %2096 = vmatpush3.msra.mxu1 %v1802_v16  ;;  %v1814_v2 = vld [vmem:[%s2422_s25 + $0x120] sm:$0xff]  ;;  %v1813_v3 = vld [vmem:[%s2422_s25 + $0x118] sm:$0xff]  ;;  %v1812_v4 = vld [vmem:[%s2422_s25 + $0x110] sm:$0xff] }
  0x24   : > { %2061 = vmatpush3.msra.mxu0 %v226_v17  ;;  %2097 = vmatprep.subr.mxu1 %v1801_v18  ;;  %v1811_v5 = vld [vmem:[%s2422_s25 + $0x108] sm:$0xff]  ;;  %v1810_v6 = vld [vmem:[%s2422_s25 + $0x100] sm:$0xff]  ;;  %vm588_vm9 = vmand %vm586_vm4, %vm587_vm5  ;;  %vm215_vm5 = vcmp.lt.s32.totalorder %v2473_v37, 32 }
  0x25   : > { %2062 = vmatprep.subr.mxu0 %v225_v19  ;;  %2098 = vmatpush3.msra.mxu1 %v1801_v18  ;;  %vm578_vm10 = vmand %vm571_vm6, %vm576_vm7  ;;  %vm1181_vm6 = vcmp.ge.s32.totalorder %v2473_v37, 24 }
  0x26   : > { %2063 = vmatpush3.msra.mxu0 %v225_v19  ;;  %2099 = vmatprep.subr.mxu1 %v1800_v20  ;;  %vm589_vm11 = vmand %vm580_vm8, %vm588_vm9 }
  0x27   : > { %2064 = vmatprep.subr.mxu0 %v224_v21  ;;  %2100 = vmatpush3.msra.mxu1 %v1800_v20  ;;  %vm591_vm13 = vmor %vm578_vm10, %vm589_vm11 }
  0x28   : > { %2065 = vmatpush3.msra.mxu0 %v224_v21  ;;  %2101 = vmatprep.subr.mxu1 %v1799_v22  ;;  %vm590_vm14 = vmand %vm583_vm12, %vm588_vm9  ;;  %v2531_v12 = vsel %vm591_vm13, 0.0, %v2376_v11 }
  0x29   : > { %2066 = vmatprep.subr.mxu0 %v223_v23  ;;  %2102 = vmatpush3.msra.mxu1 %v1799_v22  ;;  %v2533_v15 = vsel %vm590_vm14, 0.0, %v2376_v11  ;;  %vm987_vm4 = vmand %vm985_vm2, %vm986_vm3 }
  0x2a   : > { %2067 = vmatpush3.msra.mxu0 %v223_v23  ;;  %2103 = vmatprep.subr.mxu1 %v1798_v24  ;;  %vm1182_vm7 = vmand %vm1181_vm6, %vm215_vm5 }
  0x2b   : > { %2068 = vmatprep.subr.mxu0 %v222_v25  ;;  %2104 = vmatpush3.msra.mxu1 %v1798_v24 }
  0x2c   : > { %2069 = vmatpush3.msra.mxu0 %v222_v25  ;;  %2105 = vmatprep.subr.mxu1 %v1797_v26 }
  0x2d   : > { %2070 = vmatprep.subr.mxu0 %v221_v27  ;;  %2106 = vmatpush3.msra.mxu1 %v1797_v26 }
  0x2e   : > { %2071 = vmatpush3.msra.mxu0 %v221_v27  ;;  %2107 = vmatprep.subr.mxu1 %v1796_v28 }
  0x2f   : > { %2072 = vmatprep.subr.mxu0 %v220_v29  ;;  %2108 = vmatpush3.msra.mxu1 %v1796_v28 }
  0x30   : > { %2073 = vmatpush3.msra.mxu0 %v220_v29  ;;  %2109 = vmatprep.subr.mxu1 %v1795_v30 }
  0x31   : > { %2074 = vmatprep.subr.mxu0 %v219_v31  ;;  %2110 = vmatpush3.msra.mxu1 %v1795_v30 }
  0x32   : > { %2075 = vmatpush3.msra.mxu0 %v219_v31  ;;  %2111 = vmatprep.subr.mxu1 %v1794_v32 }
  0x33   : > { %2113 = vmatprep.mubr.f32.mxu1 %v2462_v33  ;;  %2112 = vmatpush3.msra.mxu1 %v1794_v32 }
  0x34   : > { %2076 = vmatprep.subr.mxu0 %v218_v34  ;;  %2114 = vmatmul.mubr.f32.vlgmr.msra.gmra.mxu1 %v2465_v35 }
  0x35   : > { %2077 = vmatpush3.msra.mxu0 %v218_v34  ;;  %2078 = vmatprep.mubr.f32.mxu0 %v2462_v33 }
  0x36   : > { %2079 = vmatmul.mubr.f32.vlgmr.msra.gmra.mxu0 %v2465_v35  ;;  %2116 = vmatprep.subr.mxu0 %v1825_v55 }
  0x37   : > { %2148 = vmatprep.mubr.f32.mxu0 %v2462_v33  ;;  %2117 = vmatpush3.msra.mxu0 %v1825_v55 }
  0x38   : > { %2118 = vmatprep.subr.mxu0 %v1824_v56 }
  0x39   : > { %2119 = vmatpush3.msra.mxu0 %v1824_v56 }
  0x3a   : > { %2120 = vmatprep.subr.mxu0 %v1823_v57 }
  0x3b   : > { %2121 = vmatpush3.msra.mxu0 %v1823_v57 }
  0x3c   : > { %2122 = vmatprep.subr.mxu0 %v1822_v58 }
  0x3d   : > { %2123 = vmatpush3.msra.mxu0 %v1822_v58 }
  0x3e   : > { %2124 = vmatprep.subr.mxu0 %v1821_v59 }
  0x3f   : > { %2125 = vmatpush3.msra.mxu0 %v1821_v59  ;;  %v1876_v59 = vld [vmem:[%s2417_s22 + $0x2] ss:$0 sm:$0xff] }
  0x40   : > { %2126 = vmatprep.subr.mxu0 %v1820_v60 }
  0x41   : > { %2127 = vmatpush3.msra.mxu0 %v1820_v60 }
  0x42   : > { %2128 = vmatprep.subr.mxu0 %v1819_v61 }
  0x43   : > { %2129 = vmatpush3.msra.mxu0 %v1819_v61 }
  0x44   : > { %2130 = vmatprep.subr.mxu0 %v1818_v62 }
  0x45   : > { %2131 = vmatpush3.msra.mxu0 %v1818_v62 }
  0x46   : > { %2132 = vmatprep.subr.mxu0 %v1817_v63 }
  0x47   : > { %2133 = vmatpush3.msra.mxu0 %v1817_v63 }
  0x48   : > { %2134 = vmatprep.subr.mxu0 %v1816_v0 }
  0x49   : > { %2135 = vmatpush3.msra.mxu0 %v1816_v0 }
  0x4a   : > { %2136 = vmatprep.subr.mxu0 %v1815_v1 }
  0x4b   : > { %2137 = vmatpush3.msra.mxu0 %v1815_v1 }
  0x4c   : > { %2138 = vmatprep.subr.mxu0 %v1814_v2 }
  0x4d   : > { %2139 = vmatpush3.msra.mxu0 %v1814_v2 }
  0x4e   : > { %2140 = vmatprep.subr.mxu0 %v1813_v3 }
  0x4f   : > { %2141 = vmatpush3.msra.mxu0 %v1813_v3 }
  0x50   : > { %2142 = vmatprep.subr.mxu0 %v1812_v4 }
  0x51   : > { %2143 = vmatpush3.msra.mxu0 %v1812_v4 }
  0x52   : > { %2144 = vmatprep.subr.mxu0 %v1811_v5 }
  0x53   : > { %2145 = vmatpush3.msra.mxu0 %v1811_v5 }
  0x54   : > { %2146 = vmatprep.subr.mxu0 %v1810_v6 }
  0x55   : > { %2147 = vmatpush3.msra.mxu0 %v1810_v6 }
  0x56   : > { %2149 = vmatmul.mubr.f32.vlgmr.msra.gmra.mxu0 %v2465_v35 }
  0xf4   : > { %v2115_v39 = vpop.f32.mrf.mxu1 }
  0xf5   : > { %v2477_v40 = vadd.f32 %v2115_v39, %v1875_v38 }
  0xf6   : > { %v2080_v41 = vpop.f32.mrf.mxu0  ;;  %v478_v43 = vpop.f32.mrf.mxu1 }
  0xf7   : > { %v2482_v44 = vadd.f32 %v1875_v38, %v478_v43  ;;  %2151 = vmatprep.subr.mxu1 %v2477_v40  ;;  %v2489_v48 = vadd.f32 %v2080_v41, %v1874_v42 }
  0xf8   : > { %v399_v45 = vpop.f32.mrf.mxu0  ;;  %2152 = vmatpush3.xpose.msra.mxu1 %v2477_v40 }
  0xf9   : > { %v2491_v49 = vadd.f32 %v1874_v42, %v399_v45  ;;  %2153 = vmatprep.subr.mxu1 %v2482_v44  ;;  %v600_v52 = vmul.f32 %v2487_v47, %v2489_v48  ;;  %v712_v54 = vmul.f32 %v2497_v51, %v2489_v48 }
  0xfb   : > { %v599_v50 = vmul.f32 %v2487_v47, %v2491_v49  ;;  %v711_v53 = vmul.f32 %v2497_v51, %v2491_v49 }
  0xfc   : > { %2154 = vmatpush3.xpose.msra.mxu1 %v2482_v44 }
  0xfd   : > { %2155 = vmatprep.mubr.f32.mxu1 %v599_v50  ;;  %2158 = vmatprep.subr.mxu1 %v2477_v40 }
  0xff   : > { %2156 = vmatmul.mubr.f32.vlgmr.msra.gmra.mxu1 %v600_v52 }
 0x100   : > { %2159 = vmatpush3.xpose.msra.mxu1 %v2477_v40  ;;  %2162 = vmatprep.mubr.f32.mxu1 %v711_v53 }
 0x101   : > { %2160 = vmatprep.subr.mxu1 %v2482_v44 }
 0x104   : > { %2161 = vmatpush3.xpose.msra.mxu1 %v2482_v44 }
 0x107   : > { %2163 = vmatmul.mubr.f32.vlgmr.msra.gmra.mxu1 %v712_v54 }
 0x116   : > { %v2150_v58 = vpop.f32.mrf.mxu0 }
 0x117   : > { %v2548_v60 = vadd.f32 %v2150_v58, %v1876_v59  ;;  %v1889_v58 = vsel %vm1182_vm7, 1.0, %v2375_v46 }
 0x118   : > { %v557_v61 = vpop.f32.mrf.mxu0 }
 0x119   : > { %v714_v62 = vmul.f32 %v2497_v51, %v2548_v60  ;;  %v2552_v63 = vadd.f32 %v1876_v59, %v557_v61  ;;  %v602_v1 = vmul.f32 %v2487_v47, %v2548_v60 }
 0x11b   : > { %2165 = vmatprep.subr.msk.mxu1 %vm822_vm1, %v714_v62  ;;  %v713_v0 = vmul.f32 %v2497_v51, %v2552_v63 }
 0x11c   : > { %2166 = vmatpush3.msk.msra.mxu1 %vm822_vm1, %v714_v62  ;;  %v1185_v62 = vmul.f32 %v1889_v58, %v2491_v49 }
 0x11d   : > { %2167 = vmatprep.subr.mxu1 %v713_v0 }
 0x11e   : > { %2168 = vmatpush3.msra.mxu1 %v713_v0  ;;  %v1188_v0 = vmul.f32 %v1889_v58, %v2548_v60 }
 0x11f   : > { %2172 = vmatprep.subr.msk.mxu1 %vm822_vm1, %v602_v1 }
 0x1bf   : > { %v2157_v9 = vpop.f32.mrf.mxu1 }
 0x1c0   : > { %v679_v13 = vmul.f32 0.35355338, %v2157_v9 }
 0x1c1   : > { %v669_v10 = vpop.f32.mrf.mxu1 }
 0x1c2   : > { %v678_v14 = vmul.f32 0.35355338, %v669_v10  ;;  %v681_v18 = vadd.f32 %v679_v13, %v2533_v15  ;;  %v601_v13 = vmul.f32 %v2487_v47, %v2552_v63 }
 0x1c4   : > { %v680_v16 = vadd.f32 %v678_v14, %v2531_v12  ;;  %v687_v23 = vsel %vm686_vm0, %v681_v18, -inf  ;;  %v1885_v14 = vsel %vm987_vm4, 1.0, %v2375_v46 }
 0x1c5   : > { %v993_v47 = vmul.f32 %v1885_v14, %v2548_v60 }
 0x1c6   : > { %v683_v17 = vsel %vm682_vm15, %v680_v16, -inf }
 0x1c7   : > { %v2164_v19 = vpop.f32.mrf.mxu1  ;;  %684 = vmax.xlane.f32.xlu1 %v683_v17  ;;  %v990_v17 = vmul.f32 %v1885_v14, %v2491_v49 }
 0x1c8   : > { %v791_v21 = vmul.f32 0.35355338, %v2164_v19  ;;  %v992_v19 = vmul.f32 %v1885_v14, %v2552_v63 }
 0x1c9   : > { %v781_v20 = vpop.f32.mrf.mxu1 }
 0x1ca   : > { %v790_v22 = vmul.f32 0.35355338, %v781_v20  ;;  %v793_v26 = vadd.f32 %v791_v21, %v2533_v15 }
 0x1cb   : > { %688 = vmax.xlane.f32.xlu1 %v687_v23 }
 0x1cc   : > { %v792_v24 = vadd.f32 %v790_v22, %v2531_v12  ;;  %v797_v27 = vsel %vm686_vm0, %v793_v26, -inf }
 0x1ce   : > { %v794_v25 = vsel %vm682_vm15, %v792_v24, -inf }
 0x1cf   : > { %795 = vmax.xlane.f32.xlu0 %v794_v25 }
 0x1d3   : > { %798 = vmax.xlane.f32.xlu0 %v797_v27 }
 0x250   : > { %v685_v28 = vpop.xlane.xlu1 %684 }
 0x251   : > { %v690_v29 = vsub.f32 %v680_v16, %v685_v28 }
 0x253   : > { %v692_v34 = vmul.f32 1.442695, %v690_v29 }
 0x254   : > { %v689_v30 = vpop.xlane.xlu1 %688 }
 0x255   : > { %v691_v36 = vsub.f32 %v681_v18, %v689_v30  ;;  %v991_v18 = vmul.f32 %v1885_v14, %v2489_v48 }
 0x257   : > { %v694_v42 = vmul.f32 1.442695, %v691_v36 }
 0x258   : > { %v796_v31 = vpop.xlane.xlu0 %795 }
 0x259   : > { %v800_v32 = vsub.f32 %v792_v24, %v796_v31 }
 0x25b   : > { %v802_v38 = vmul.f32 1.442695, %v800_v32 }
 0x25c   : > { %v799_v39 = vpop.xlane.xlu0 %798 }
 0x25d   : > { %2323 = vpow2.f32 %v802_v38  ;;  %v801_v41 = vsub.f32 %v793_v26, %v799_v39 }
 0x25e   : > { %2325 = vpow2.f32 %v692_v34 }
 0x25f   : > { %v804_v43 = vmul.f32 1.442695, %v801_v41 }
 0x261   : > { %2327 = vpow2.f32 %v804_v43 }
 0x262   : > { %2329 = vpow2.f32 %v694_v42 }
 0x26a   : > { %v2324_v45 = vpop.eup %2323 }
 0x26b   : > { %v806_v50 = vsel %vm682_vm15, %v2324_v45, 0.0  ;;  %v2326_v52 = vpop.eup %2325 }
 0x26c   : > { %807 = vadd.xlane.f32.xlu0 %v806_v50  ;;  %v696_v55 = vsel %vm682_vm15, %v2326_v52, 0.0 }
 0x26e   : > { %v2328_v53 = vpop.eup %2327 }
 0x26f   : > { %v809_v54 = vsel %vm686_vm0, %v2328_v53, 0.0  ;;  %v2330_v56 = vpop.eup %2329 }
 0x270   : > { %810 = vadd.xlane.f32.xlu1 %v809_v54  ;;  %697 = vadd.xlane.f32.xlu0 %v696_v55  ;;  %v699_v57 = vsel %vm686_vm0, %v2330_v56, 0.0 }
 0x274   : > { %700 = vadd.xlane.f32.xlu1 %v699_v57 }
 0x2f5   : > { %v808_v2 = vpop.xlane.xlu0 %807 }
 0x2f6   : > { %2331 = vrcp.f32 %v808_v2  ;;  %v1187_v2 = vmul.f32 %v1889_v58, %v2552_v63 }
 0x2f9   : > { %v698_v3 = vpop.xlane.xlu0 %697  ;;  %v811_v4 = vpop.xlane.xlu1 %810 }
 0x2fa   : > { %2333 = vrcp.f32 %v698_v3 }
 0x2fb   : > { %2335 = vrcp.f32 %v811_v4 }
 0x2fd   : > { %v701_v5 = vpop.xlane.xlu1 %700 }
 0x2fe   : > { %2337 = vrcp.f32 %v701_v5 }
 0x303   : > { %v2332_v6 = vpop.eup %2331 }
 0x304   : > { %v814_v7 = vmul.f32 %v2332_v6, %v2324_v45 }
 0x306   : > { %2169 = vmatprep.mubr.msk.f32.mxu1 %vm682_vm15, %v814_v7 }
 0x307   : > { %v2334_v51 = vpop.eup %2333 }
 0x308   : > { %v2336_v8 = vpop.eup %2335  ;;  %v704_v9 = vmul.f32 %v2334_v51, %v2326_v52 }
 0x309   : > { %v815_v10 = vmul.f32 %v2336_v8, %v2328_v53 }
 0x30b   : > { %v2338_v11 = vpop.eup %2337  ;;  %2170 = vmatmul.mubr.msk.f32.vlgmr.msra.gmra.mxu1 %vm682_vm15, %v815_v10 }
 0x30c   : > { %2173 = vmatpush3.msk.msra.mxu1 %vm822_vm1, %v602_v1  ;;  %2176 = vmatprep.mubr.msk.f32.mxu1 %vm682_vm15, %v704_v9  ;;  %v705_v16 = vmul.f32 %v2338_v11, %v2330_v56  ;;  %v1186_v1 = vmul.f32 %v1889_v58, %v2489_v48 }
 0x30d   : > { %2174 = vmatprep.subr.mxu1 %v601_v13 }
 0x30e   : > { %2175 = vmatpush3.msra.mxu1 %v601_v13 }
 0x30f   : > { %2179 = vmatprep.subr.mxu1 %v2477_v40  ;;  %2177 = vmatmul.mubr.msk.f32.vlgmr.msra.gmra.mxu1 %vm682_vm15, %v705_v16 }
 0x310   : > { %2180 = vmatpush3.xpose.msra.mxu1 %v2477_v40  ;;  %2183 = vmatprep.mubr.f32.mxu1 %v990_v17 }
 0x311   : > { %2181 = vmatprep.subr.mxu1 %v2482_v44 }
 0x314   : > { %2182 = vmatpush3.xpose.msra.mxu1 %v2482_v44 }
 0x315   : > { %2186 = vmatprep.subr.msk.mxu1 %vm822_vm1, %v993_v47 }
 0x317   : > { %2184 = vmatmul.mubr.f32.vlgmr.msra.gmra.mxu1 %v991_v18  ;;  %v1840_v18 = vld [vmem:[%s2422_s25 + $0x1f0] sm:$0xff] }
 0x318   : > { %2187 = vmatpush3.msk.msra.mxu1 %vm822_vm1, %v993_v47  ;;  %v1841_v47 = vld [vmem:[%s2422_s25 + $0x1f8] sm:$0xff] }
 0x319   : > { %2188 = vmatprep.subr.mxu1 %v992_v19  ;;  %2207 = vmatprep.subr.mxu0 %v1841_v47 }
 0x31a   : > { %2189 = vmatpush3.msra.mxu1 %v992_v19  ;;  %2208 = vmatpush3.msra.mxu0 %v1841_v47  ;;  %v1839_v19 = vld [vmem:[%s2422_s25 + $0x1e8] sm:$0xff] }
 0x31b   : > { %2193 = vmatprep.subr.mxu1 %v2477_v40  ;;  %2209 = vmatprep.subr.mxu0 %v1840_v18  ;;  %v1871_v47 = vld [vmem:[%s2422_s25 + $0x2e8] sm:$0xff] }
 0x31c   : > { %2210 = vmatpush3.msra.mxu0 %v1840_v18  ;;  %v1870_v18 = vld [vmem:[%s2422_s25 + $0x2e0] sm:$0xff] }
 0x31d   : > { %2211 = vmatprep.subr.mxu0 %v1839_v19 }
 0x31e   : > { %2212 = vmatpush3.msra.mxu0 %v1839_v19  ;;  %v1869_v19 = vld [vmem:[%s2422_s25 + $0x2d8] sm:$0xff] }
 0x3cb   : > { %v2171_v20 = vpop.f32.mrf.mxu1 }
 0x3cd   : > { %v892_v21 = vpop.f32.mrf.mxu1 }
 0x3cf   : > { %v2178_v22 = vpop.f32.mrf.mxu1 }
 0x3d0   : > { %v982_v23 = vadd.f32 %v2178_v22, %v2171_v20  ;;  %v1838_v20 = vld [vmem:[%s2422_s25 + $0x1e0] sm:$0xff]  ;;  %v1836_v22 = vld [vmem:[%s2422_s25 + $0x1d0] sm:$0xff] }
 0x3d1   : > { %v976_v24 = vpop.f32.mrf.mxu1  ;;  %2213 = vmatprep.subr.mxu0 %v1838_v20 }
 0x3d2   : > { %v977_v25 = vadd.f32 %v976_v24, %v892_v21  ;;  %v1837_v21 = vld [vmem:[%s2422_s25 + $0x1d8] sm:$0xff]  ;;  %2214 = vmatpush3.msra.mxu0 %v1838_v20  ;;  %v1834_v24 = vld [vmem:[%s2422_s25 + $0x1c0] sm:$0xff]  ;;  %v1868_v20 = vld [vmem:[%s2422_s25 + $0x2d0] sm:$0xff] }
 0x3d3   : > { %2215 = vmatprep.subr.mxu0 %v1837_v21 }
 0x3d4   : > { %2216 = vmatpush3.msra.mxu0 %v1837_v21  ;;  %v1867_v21 = vld [vmem:[%s2422_s25 + $0x2c8] sm:$0xff] }
 0x3d5   : > { %2217 = vmatprep.subr.mxu0 %v1836_v22 }
 0x3d6   : > { %2218 = vmatpush3.msra.mxu0 %v1836_v22  ;;  %v1866_v22 = vld [vmem:[%s2422_s25 + $0x2c0] sm:$0xff] }
 0x3d7   : > { %v2185_v26 = vpop.f32.mrf.mxu1 }
 0x3d8   : > { %v1070_v27 = vmul.f32 0.35355338, %v2185_v26  ;;  %v1832_v26 = vld [vmem:[%s2422_s25 + $0x1b0] sm:$0xff] }
 0x3d9   : > { %v1060_v28 = vpop.f32.mrf.mxu1 }
 0x3da   : > { %v1069_v29 = vmul.f32 0.35355338, %v1060_v28  ;;  %v1072_v30 = vadd.f32 %v1070_v27, %v2533_v15  ;;  %v1831_v27 = vld [vmem:[%s2422_s25 + $0x1a8] sm:$0xff]  ;;  %v1830_v28 = vld [vmem:[%s2422_s25 + $0x1a0] sm:$0xff] }
 0x3dc   : > { %v1076_v31 = vsel %vm686_vm0, %v1072_v30, -inf  ;;  %v1071_v32 = vadd.f32 %v1069_v29, %v2531_v12  ;;  %v1829_v29 = vld [vmem:[%s2422_s25 + $0x198] sm:$0xff] }
 0x3dd   : > { %1077 = vmax.xlane.f32.xlu1 %v1076_v31 }
 0x3de   : > { %v1073_v34 = vsel %vm682_vm15, %v1071_v32, -inf }
 0x3df   : > { %1074 = vmax.xlane.f32.xlu0 %v1073_v34 }
 0x466   : > { %v1078_v36 = vpop.xlane.xlu1 %1077 }
 0x467   : > { %v1080_v38 = vsub.f32 %v1072_v30, %v1078_v36 }
 0x468   : > { %v1075_v39 = vpop.xlane.xlu0 %1074 }
 0x469   : > { %v1083_v41 = vmul.f32 1.442695, %v1080_v38  ;;  %v1079_v42 = vsub.f32 %v1071_v32, %v1075_v39  ;;  %v1828_v39 = vld [vmem:[%s2422_s25 + $0x190] sm:$0xff] }
 0x46b   : > { %2339 = vpow2.f32 %v1083_v41  ;;  %v1081_v43 = vmul.f32 1.442695, %v1079_v42  ;;  %v1827_v41 = vld [vmem:[%s2422_s25 + $0x188] sm:$0xff]  ;;  %v1826_v42 = vld [vmem:[%s2422_s25 + $0x180] sm:$0xff] }
 0x46d   : > { %2341 = vpow2.f32 %v1081_v43 }
 0x478   : > { %v2340_v45 = vpop.eup %2339 }
 0x479   : > { %v1088_v50 = vsel %vm686_vm0, %v2340_v45, 0.0 }
 0x47a   : > { %v2342_v52 = vpop.eup %2341  ;;  %1089 = vadd.xlane.f32.xlu1 %v1088_v50 }
 0x47b   : > { %v1085_v53 = vsel %vm682_vm15, %v2342_v52, 0.0 }
 0x47c   : > { %1086 = vadd.xlane.f32.xlu0 %v1085_v53  ;;  %v1893_v53 = vld [vmem:[%s2417_s22 + $0x3] ss:$0 sm:$0xff] }
 0x503   : > { %v1090_v54 = vpop.xlane.xlu1 %1089 }
 0x504   : > { %2343 = vrcp.f32 %v1090_v54 }
 0x505   : > { %v1087_v55 = vpop.xlane.xlu0 %1086 }
 0x506   : > { %2345 = vrcp.f32 %v1087_v55 }
 0x511   : > { %v2344_v56 = vpop.eup %2343 }
 0x512   : > { %v1094_v61 = vmul.f32 %v2344_v56, %v2340_v45 }
 0x513   : > { %v2346_v57 = vpop.eup %2345 }
 0x514   : > { %v1093_v59 = vmul.f32 %v2346_v57, %v2342_v52 }
 0x516   : > { %2190 = vmatprep.mubr.msk.f32.mxu1 %vm682_vm15, %v1093_v59 }
 0x517   : > { %2191 = vmatmul.mubr.msk.f32.vlgmr.msra.gmra.mxu1 %vm682_vm15, %v1094_v61 }
 0x518   : > { %2194 = vmatpush3.xpose.msra.mxu1 %v2477_v40  ;;  %2197 = vmatprep.mubr.f32.mxu1 %v1185_v62  ;;  %v1857_v62 = vld [vmem:[%s2422_s25 + $0x278] sm:$0xff] }
 0x519   : > { %2195 = vmatprep.subr.mxu1 %v2482_v44 }
 0x51c   : > { %2196 = vmatpush3.xpose.msra.mxu1 %v2482_v44 }
 0x51d   : > { %2200 = vmatprep.subr.msk.mxu1 %vm822_vm1, %v1188_v0 }
 0x51f   : > { %2198 = vmatmul.mubr.f32.vlgmr.msra.gmra.mxu1 %v1186_v1  ;;  %v1855_v1 = vld [vmem:[%s2422_s25 + $0x268] sm:$0xff] }
 0x520   : > { %2201 = vmatpush3.msk.msra.mxu1 %vm822_vm1, %v1188_v0  ;;  %v1856_v0 = vld [vmem:[%s2422_s25 + $0x270] sm:$0xff] }
 0x521   : > { %2202 = vmatprep.subr.mxu1 %v1187_v2 }
 0x522   : > { %2203 = vmatpush3.msra.mxu1 %v1187_v2  ;;  %v1854_v2 = vld [vmem:[%s2422_s25 + $0x260] sm:$0xff] }
 0x523   : > { %2242 = vmatprep.subr.mxu1 %v1857_v62 }
 0x5d7   : > { %v2192_v49 = vpop.f32.mrf.mxu1 }
 0x5d8   : > { %v2604_v40 = vadd.f32 %v2192_v49, %v982_v23  ;;  %v1835_v23 = vld [vmem:[%s2422_s25 + $0x1c8] sm:$0xff] }
 0x5d9   : > { %v1170_v3 = vpop.f32.mrf.mxu1  ;;  %2219 = vmatprep.subr.mxu0 %v1835_v23 }
 0x5da   : > { %v2606_v4 = vadd.f32 %v1170_v3, %v977_v25  ;;  %2220 = vmatpush3.msra.mxu0 %v1835_v23  ;;  %v1833_v25 = vld [vmem:[%s2422_s25 + $0x1b8] sm:$0xff]  ;;  %v2645_v3 = vsel %vm215_vm5, 1.0, %v2375_v46 }
 0x5db   : > { %2221 = vmatprep.subr.mxu0 %v1834_v24  ;;  %v1853_v46 = vld [vmem:[%s2422_s25 + $0x258] sm:$0xff] }
 0x5dc   : > { %2222 = vmatpush3.msra.mxu0 %v1834_v24  ;;  %v1865_v23 = vld [vmem:[%s2422_s25 + $0x2b8] sm:$0xff]  ;;  %v1864_v24 = vld [vmem:[%s2422_s25 + $0x2b0] sm:$0xff] }
 0x5dd   : > { %2223 = vmatprep.subr.mxu0 %v1833_v25 }
 0x5de   : > { %2224 = vmatpush3.msra.mxu0 %v1833_v25  ;;  %v1863_v25 = vld [vmem:[%s2422_s25 + $0x2a8] sm:$0xff] }
 0x5df   : > { %v2199_v60 = vpop.f32.mrf.mxu1  ;;  %2225 = vmatprep.subr.mxu0 %v1832_v26 }
 0x5e0   : > { %v1265_v5 = vmul.f32 0.35355338, %v2199_v60  ;;  %2226 = vmatpush3.msra.mxu0 %v1832_v26  ;;  %v1862_v26 = vld [vmem:[%s2422_s25 + $0x2a0] sm:$0xff] }
 0x5e1   : > { %v1255_v44 = vpop.f32.mrf.mxu1  ;;  %2227 = vmatprep.subr.mxu0 %v1831_v27 }
 0x5e2   : > { %v1264_v6 = vmul.f32 0.35355338, %v1255_v44  ;;  %v1267_v7 = vadd.f32 %v1265_v5, %v2533_v15  ;;  %2228 = vmatpush3.msra.mxu0 %v1831_v27 }
 0x5e3   : > { %2229 = vmatprep.subr.mxu0 %v1830_v28 }
 0x5e4   : > { %v1271_v48 = vsel %vm686_vm0, %v1267_v7, -inf  ;;  %v1266_v63 = vadd.f32 %v1264_v6, %v2531_v12  ;;  %2230 = vmatpush3.msra.mxu0 %v1830_v28 }
 0x5e5   : > { %1272 = vmax.xlane.f32.xlu1 %v1271_v48  ;;  %2231 = vmatprep.subr.mxu0 %v1829_v29  ;;  %v1852_v48 = vld [vmem:[%s2422_s25 + $0x250] sm:$0xff] }
 0x5e6   : > { %v1268_v51 = vsel %vm682_vm15, %v1266_v63, -inf  ;;  %2232 = vmatpush3.msra.mxu0 %v1829_v29 }
 0x5e7   : > { %1269 = vmax.xlane.f32.xlu0 %v1268_v51  ;;  %2233 = vmatprep.subr.mxu0 %v1828_v39  ;;  %v1850_v51 = vld [vmem:[%s2422_s25 + $0x240] sm:$0xff] }
 0x5e8   : > { %2234 = vmatpush3.msra.mxu0 %v1828_v39 }
 0x5e9   : > { %2235 = vmatprep.subr.mxu0 %v1827_v41 }
 0x5ea   : > { %2236 = vmatpush3.msra.mxu0 %v1827_v41  ;;  %v1895_v41 = vld [vmem:[%s2417_s22 + $0x7] ss:$0 sm:$0xff] }
 0x5eb   : > { %2237 = vmatprep.subr.mxu0 %v1826_v42 }
 0x5ec   : > { %2238 = vmatpush3.msra.mxu0 %v1826_v42 }
 0x66e   : > { %v1273_v8 = vpop.xlane.xlu1 %1272 }
 0x66f   : > { %v1275_v9 = vsub.f32 %v1267_v7, %v1273_v8  ;;  %v1849_v8 = vld [vmem:[%s2422_s25 + $0x238] sm:$0xff] }
 0x670   : > { %v1270_v10 = vpop.xlane.xlu0 %1269 }
 0x671   : > { %v1278_v11 = vmul.f32 1.442695, %v1275_v9  ;;  %v1274_v13 = vsub.f32 %v1266_v63, %v1270_v10  ;;  %v1851_v63 = vld [vmem:[%s2422_s25 + $0x248] sm:$0xff]  ;;  %v1848_v9 = vld [vmem:[%s2422_s25 + $0x230] sm:$0xff] }
 0x672   : > { %v1847_v10 = vld [vmem:[%s2422_s25 + $0x228] sm:$0xff] }
 0x673   : > { %2347 = vpow2.f32 %v1278_v11  ;;  %v1276_v14 = vmul.f32 1.442695, %v1274_v13  ;;  %v1846_v11 = vld [vmem:[%s2422_s25 + $0x220] sm:$0xff]  ;;  %v1845_v13 = vld [vmem:[%s2422_s25 + $0x218] sm:$0xff] }
 0x675   : > { %2349 = vpow2.f32 %v1276_v14  ;;  %v1844_v14 = vld [vmem:[%s2422_s25 + $0x210] sm:$0xff] }
 0x680   : > { %v2348_v15 = vpop.eup %2347 }
 0x681   : > { %v1283_v12 = vsel %vm686_vm0, %v2348_v15, 0.0 }
 0x682   : > { %v2350_v16 = vpop.eup %2349  ;;  %1284 = vadd.xlane.f32.xlu1 %v1283_v12  ;;  %v1842_v12 = vld [vmem:[%s2422_s25 + $0x200] sm:$0xff] }
 0x683   : > { %v1280_v17 = vsel %vm682_vm15, %v2350_v16, 0.0 }
 0x684   : > { %1281 = vadd.xlane.f32.xlu0 %v1280_v17  ;;  %v1872_v17 = vld [vmem:[%s2422_s25 + $0x2f0] sm:$0xff] }
 0x70b   : > { %v1285_v30 = vpop.xlane.xlu1 %1284 }
 0x70c   : > { %2351 = vrcp.f32 %v1285_v30 }
 0x70d   : > { %v1282_v31 = vpop.xlane.xlu0 %1281 }
 0x70e   : > { %2353 = vrcp.f32 %v1282_v31 }
 0x719   : > { %v2352_v32 = vpop.eup %2351 }
 0x71a   : > { %v1289_v38 = vmul.f32 %v2352_v32, %v2348_v15  ;;  %v1843_v15 = vld [vmem:[%s2422_s25 + $0x208] sm:$0xff] }
 0x71b   : > { %v2354_v34 = vpop.eup %2353 }
 0x71c   : > { %v1288_v36 = vmul.f32 %v2354_v34, %v2350_v16  ;;  %v1873_v16 = vld [vmem:[%s2422_s25 + $0x2f8] sm:$0xff] }
 0x71d   : > { %2277 = vmatprep.subr.mxu0 %v1873_v16 }
 0x71e   : > { %2204 = vmatprep.mubr.msk.f32.mxu1 %vm682_vm15, %v1288_v36  ;;  %v1894_v36 = vld [vmem:[%s2417_s22 + $0x6] ss:$0 sm:$0xff] }
 0x71f   : > { %2205 = vmatmul.mubr.msk.f32.vlgmr.msra.gmra.mxu1 %vm682_vm15, %v1289_v38 }
 0x720   : > { %2243 = vmatpush3.msra.mxu1 %v1857_v62 }
 0x721   : > { %2244 = vmatprep.subr.mxu1 %v1856_v0 }
 0x722   : > { %2245 = vmatpush3.msra.mxu1 %v1856_v0 }
 0x723   : > { %2246 = vmatprep.subr.mxu1 %v1855_v1 }
 0x724   : > { %2247 = vmatpush3.msra.mxu1 %v1855_v1 }
 0x725   : > { %2248 = vmatprep.subr.mxu1 %v1854_v2 }
 0x726   : > { %2249 = vmatpush3.msra.mxu1 %v1854_v2  ;;  %v1897_v2 = vld [vmem:[%s2417_s22 + $0x5] ss:$0 sm:$0xff] }
 0x727   : > { %2250 = vmatprep.subr.mxu1 %v1853_v46 }
 0x728   : > { %2251 = vmatpush3.msra.mxu1 %v1853_v46 }
 0x729   : > { %2252 = vmatprep.subr.mxu1 %v1852_v48 }
 0x72a   : > { %2253 = vmatpush3.msra.mxu1 %v1852_v48 }
 0x72b   : > { %2254 = vmatprep.subr.mxu1 %v1851_v63 }
 0x72c   : > { %2255 = vmatpush3.msra.mxu1 %v1851_v63 }
 0x72d   : > { %2256 = vmatprep.subr.mxu1 %v1850_v51 }
 0x72e   : > { %2257 = vmatpush3.msra.mxu1 %v1850_v51 }
 0x72f   : > { %2258 = vmatprep.subr.mxu1 %v1849_v8 }
 0x730   : > { %2259 = vmatpush3.msra.mxu1 %v1849_v8 }
 0x731   : > { %2260 = vmatprep.subr.mxu1 %v1848_v9 }
 0x732   : > { %2261 = vmatpush3.msra.mxu1 %v1848_v9 }
 0x733   : > { %2262 = vmatprep.subr.mxu1 %v1847_v10 }
 0x734   : > { %2263 = vmatpush3.msra.mxu1 %v1847_v10 }
 0x735   : > { %2264 = vmatprep.subr.mxu1 %v1846_v11 }
 0x736   : > { %2265 = vmatpush3.msra.mxu1 %v1846_v11 }
 0x737   : > { %2266 = vmatprep.subr.mxu1 %v1845_v13 }
 0x738   : > { %2267 = vmatpush3.msra.mxu1 %v1845_v13 }
 0x739   : > { %2268 = vmatprep.subr.mxu1 %v1844_v14 }
 0x73a   : > { %2269 = vmatpush3.msra.mxu1 %v1844_v14 }
 0x73b   : > { %2270 = vmatprep.subr.mxu1 %v1843_v15 }
 0x73c   : > { %2271 = vmatpush3.msra.mxu1 %v1843_v15 }
 0x73d   : > { %2272 = vmatprep.subr.mxu1 %v1842_v12 }
 0x73e   : > { %2273 = vmatpush3.msra.mxu1 %v1842_v12 }
 0x7df   : > { %v2206_v43 = vpop.f32.mrf.mxu1 }
 0x7e0   : > { %v1375_v52 = vadd.f32 %v2206_v43, %v2604_v40 }
 0x7e1   : > { %v1365_v45 = vpop.f32.mrf.mxu1 }
 0x7e2   : > { %v1374_v50 = vadd.f32 %v1365_v45, %v2606_v4 }
 0x7e4   : > { %2239 = vmatprep.mubr.f32.mxu0 %v1374_v50 }
 0x7e5   : > { %2240 = vmatmul.mubr.f32.vlgmr.msra.gmra.mxu0 %v1375_v52 }
 0x7e6   : > { %2278 = vmatpush3.msra.mxu0 %v1873_v16 }
 0x7e7   : > { %2279 = vmatprep.subr.mxu0 %v1872_v17 }
 0x7e8   : > { %2280 = vmatpush3.msra.mxu0 %v1872_v17 }
 0x7e9   : > { %2281 = vmatprep.subr.mxu0 %v1871_v47 }
 0x7ea   : > { %2282 = vmatpush3.msra.mxu0 %v1871_v47  ;;  %v1898_v47 = vld [vmem:[%s2417_s22 + $0x8] ss:$0 sm:$0xff] }
 0x7eb   : > { %2283 = vmatprep.subr.mxu0 %v1870_v18 }
 0x7ec   : > { %2284 = vmatpush3.msra.mxu0 %v1870_v18 }
 0x7ed   : > { %2285 = vmatprep.subr.mxu0 %v1869_v19 }
 0x7ee   : > { %2286 = vmatpush3.msra.mxu0 %v1869_v19 }
 0x7ef   : > { %2287 = vmatprep.subr.mxu0 %v1868_v20 }
 0x7f0   : > { %2288 = vmatpush3.msra.mxu0 %v1868_v20  ;;  %v1899_v20 = vld [vmem:[%s2417_s22 + $0x9] ss:$0 sm:$0xff] }
 0x7f1   : > { %2289 = vmatprep.subr.mxu0 %v1867_v21 }
 0x7f2   : > { %2290 = vmatpush3.msra.mxu0 %v1867_v21 }
 0x7f3   : > { %2291 = vmatprep.subr.mxu0 %v1866_v22 }
 0x7f4   : > { %2292 = vmatpush3.msra.mxu0 %v1866_v22 }
 0x7f5   : > { %2293 = vmatprep.subr.mxu0 %v1865_v23 }
 0x7f6   : > { %2294 = vmatpush3.msra.mxu0 %v1865_v23 }
 0x7f7   : > { %2295 = vmatprep.subr.mxu0 %v1864_v24 }
 0x7f8   : > { %2296 = vmatpush3.msra.mxu0 %v1864_v24 }
 0x7f9   : > { %2297 = vmatprep.subr.mxu0 %v1863_v25 }
 0x7fa   : > { %2298 = vmatpush3.msra.mxu0 %v1863_v25 }
 0x7fb   : > { %2299 = vmatprep.subr.mxu0 %v1862_v26 }
 0x7fc   : > { %2300 = vmatpush3.msra.mxu0 %v1862_v26 }
 0x8a5   : > { %v2241_v54 = vpop.f32.mrf.mxu0 }
 0x8a6   : > { %v1452_v55 = vadd.f32 %v2241_v54, %v1893_v53  ;;  %v1860_v54 = vld [vmem:[%s2422_s25 + $0x290] sm:$0xff] }
 0x8a7   : > { %v1446_v56 = vpop.f32.mrf.mxu0 }
 0x8a8   : > { %v1447_v57 = vadd.f32 %v1893_v53, %v1446_v56  ;;  %v1456_v58 = vadd.f32 %v1452_v55, %v2465_v35  ;;  %v1861_v53 = vld [vmem:[%s2422_s25 + $0x298] sm:$0xff]  ;;  %v1859_v55 = vld [vmem:[%s2422_s25 + $0x288] sm:$0xff]  ;;  %v1858_v56 = vld [vmem:[%s2422_s25 + $0x280] sm:$0xff] }
 0x8a9   : > { %2301 = vmatprep.subr.mxu0 %v1861_v53 }
 0x8aa   : > { %v1459_v59 = vsel %vm822_vm1, %v1456_v58, 0.0  ;;  %v1455_v61 = vadd.f32 %v1447_v57, %v2462_v33  ;;  %2302 = vmatpush3.msra.mxu0 %v1861_v53  ;;  %v1896_v57 = vld [vmem:[%s2417_s22 + $0x4] ss:$0 sm:$0xff] }
 0x8ab   : > { %1460 = vadd.xlane.f32.xlu1 %v1459_v59  ;;  %2303 = vmatprep.subr.mxu0 %v1860_v54 }
 0x8ac   : > { %1457 = vadd.xlane.f32.xlu0 %v1455_v61  ;;  %2304 = vmatpush3.msra.mxu0 %v1860_v54 }
 0x8ad   : > { %2305 = vmatprep.subr.mxu0 %v1859_v55 }
 0x8ae   : > { %2306 = vmatpush3.msra.mxu0 %v1859_v55 }
 0x8af   : > { %2307 = vmatprep.subr.mxu0 %v1858_v56 }
 0x8b0   : > { %2308 = vmatpush3.msra.mxu0 %v1858_v56 }
 0x934   : > { %v1461_v35 = vpop.xlane.xlu1 %1460 }
 0x935   : > { %v1463_v49 = vmul.f32 0.03125, %v1461_v35  ;;  %v1458_v40 = vpop.xlane.xlu0 %1457 }
 0x936   : > { %v1462_v33 = vmul.f32 0.03125, %v1458_v40 }
 0x937   : > { %v1465_v4 = vsub.f32 %v1456_v58, %v1463_v49 }
 0x938   : > { %v1464_v60 = vsub.f32 %v1455_v61, %v1462_v33 }
 0x939   : > { %v2648_v5 = vmul.f32 %v2645_v3, %v1465_v4 }
 0x93a   : > { %v2651_v44 = vmul.f32 %v2645_v3, %v1464_v60 }
 0x93b   : > { %v1469_v6 = vmul.f32 %v2648_v5, %v2648_v5 }
 0x93c   : > { %v1468_v7 = vmul.f32 %v2651_v44, %v2651_v44 }
 0x93d   : > { %v1472_v37 = vsel %vm822_vm1, %v1469_v6, 0.0 }
 0x93e   : > { %1473 = vadd.xlane.f32.xlu1 %v1472_v37  ;;  %1470 = vadd.xlane.f32.xlu0 %v1468_v7 }
 0x9c7   : > { %v1474_v27 = vpop.xlane.xlu1 %1473  ;;  %v1471_v28 = vpop.xlane.xlu0 %1470 }
 0x9c8   : > { %v1476_v29 = vmul.f32 0.03125, %v1474_v27  ;;  %v1475_v30 = vmul.f32 0.03125, %v1471_v28 }
 0x9ca   : > { %v1478_v31 = vadd.f32 1e-05, %v1476_v29  ;;  %v1477_v32 = vadd.f32 1e-05, %v1475_v30 }
 0x9cc   : > { %2355 = vrsqrt.f32 %v1478_v31 }
 0x9cd   : > { %2357 = vrsqrt.f32 %v1477_v32 }
 0x9d9   : > { %v2356_v34 = vpop.eup %2355 }
 0x9da   : > { %v2358_v38 = vpop.eup %2357  ;;  %v1482_v39 = vmul.f32 %v2356_v34, %v2648_v5 }
 0x9db   : > { %v1481_v42 = vmul.f32 %v2358_v38, %v2651_v44 }
 0x9dc   : > { %v1488_v43 = vmul.f32 %v1894_v36, %v1482_v39 }
 0x9dd   : > { %v1487_v45 = vmul.f32 %v1894_v36, %v1481_v42 }
 0x9de   : > { %v1494_v50 = vadd.f32 %v1895_v41, %v1488_v43 }
 0x9df   : > { %v1493_v52 = vadd.f32 %v1895_v41, %v1487_v45 }
 0x9e1   : > { %2274 = vmatprep.mubr.f32.mxu1 %v1493_v52 }
 0x9e2   : > { %2275 = vmatmul.mubr.f32.vlgmr.msra.gmra.mxu1 %v1494_v50 }
 0xaa2   : > { %v2276_v58 = vpop.f32.mrf.mxu1 }
 0xaa3   : > { %v1571_v59 = vadd.f32 %v2276_v58, %v1896_v57 }
 0xaa4   : > { %v1565_v61 = vpop.f32.mrf.mxu1 }
 0xaa5   : > { %v1566_v62 = vadd.f32 %v1896_v57, %v1565_v61  ;;  %v1575_v1 = vmax.f32 %v1571_v59, 0.0 }
 0xaa7   : > { %v1574_v0 = vmax.f32 %v1566_v62, 0.0 }
 0xaa9   : > { %2309 = vmatprep.mubr.f32.mxu0 %v1574_v0 }
 0xaaa   : > { %2310 = vmatmul.mubr.f32.vlgmr.msra.gmra.mxu0 %v1575_v1 }
 0xb6a   : > { %v2311_v35 = vpop.f32.mrf.mxu0 }
 0xb6b   : > { %v1652_v49 = vadd.f32 %v2311_v35, %v1897_v2 }
 0xb6c   : > { %v1646_v40 = vpop.f32.mrf.mxu0 }
 0xb6d   : > { %v1647_v33 = vadd.f32 %v1897_v2, %v1646_v40  ;;  %v1656_v4 = vadd.f32 %v1652_v49, %v1494_v50 }
 0xb6f   : > { %v1659_v60 = vsel %vm822_vm1, %v1656_v4, 0.0  ;;  %v1655_v5 = vadd.f32 %v1647_v33, %v1493_v52 }
 0xb70   : > { %1660 = vadd.xlane.f32.xlu0 %v1659_v60 }
 0xb71   : > { %1657 = vadd.xlane.f32.xlu1 %v1655_v5 }
 0xbf9   : > { %v1661_v44 = vpop.xlane.xlu0 %1660 }
 0xbfa   : > { %v1663_v6 = vmul.f32 0.03125, %v1661_v44  ;;  %v1658_v7 = vpop.xlane.xlu1 %1657 }
 0xbfb   : > { %v1662_v37 = vmul.f32 0.03125, %v1658_v7 }
 0xbfc   : > { %v1665_v46 = vsub.f32 %v1656_v4, %v1663_v6 }
 0xbfd   : > { %v1664_v48 = vsub.f32 %v1655_v5, %v1662_v37 }
 0xbfe   : > { %v1667_v63 = vmul.f32 %v2645_v3, %v1665_v46 }
 0xbff   : > { %v1666_v51 = vmul.f32 %v2645_v3, %v1664_v48 }
 0xc00   : > { %v1669_v8 = vmul.f32 %v1667_v63, %v1667_v63 }
 0xc01   : > { %v1668_v9 = vmul.f32 %v1666_v51, %v1666_v51 }
 0xc02   : > { %v1672_v10 = vsel %vm822_vm1, %v1669_v8, 0.0 }
 0xc03   : > { %1673 = vadd.xlane.f32.xlu1 %v1672_v10  ;;  %1670 = vadd.xlane.f32.xlu0 %v1668_v9 }
 0xc8c   : > { %v1671_v11 = vpop.xlane.xlu0 %1670  ;;  %v1674_v13 = vpop.xlane.xlu1 %1673 }
 0xc8d   : > { %v1675_v14 = vmul.f32 0.03125, %v1671_v11  ;;  %v1676_v15 = vmul.f32 0.03125, %v1674_v13 }
 0xc8f   : > { %v1677_v12 = vadd.f32 1e-05, %v1675_v14  ;;  %v1678_v16 = vadd.f32 1e-05, %v1676_v15 }
 0xc91   : > { %2359 = vrsqrt.f32 %v1677_v12 }
 0xc92   : > { %2361 = vrsqrt.f32 %v1678_v16 }
 0xc9e   : > { %v2360_v17 = vpop.eup %2359 }
 0xc9f   : > { %v2362_v18 = vpop.eup %2361  ;;  %v1681_v19 = vmul.f32 %v2360_v17, %v1666_v51 }
 0xca0   : > { %v1682_v21 = vmul.f32 %v2362_v18, %v1667_v63 }
 0xca1   : > { %v1687_v22 = vmul.f32 %v1898_v47, %v1681_v19 }
 0xca2   : > { %v1688_v23 = vmul.f32 %v1898_v47, %v1682_v21  ;;  %1702 = sbr.rel (%p1900_p5) target bundleno = 3557 (0xde5), region = 44 }
 0xca3   : > { %v1693_v24 = vadd.f32 %v1899_v20, %v1687_v22 }
 0xca4   : > { %v1694_v25 = vadd.f32 %v1899_v20, %v1688_v23 }
 0xca5   : > { %1695 = vst [vmem:[#allocation2] sm:$0xff] %v1693_v24  ;;  %1697 = vst [vmem:[%s2728_s4] sm:$0xff] %v1693_v24 }
 0xca6   : > { %1696 = vst [vmem:[#allocation2 + $0x8] sm:$0x3] %v1694_v25  ;;  %1698 = vst [vmem:[%s2728_s4 + $0x8] sm:$0x3] %v1694_v25 }
 0xca7   : > { %v1707_v26 = vsel %vm822_vm1, %v1694_v25, 0.0  ;;  %v1901_v55 = vld [vmem:[%s2727_s3] ss:$0 sm:$0xff]  ;;  %v1902_v56 = vld [vmem:[%s2727_s3 + $0x1] ss:$0 sm:$0xff] }
 0xca8   : > { %1708 = vadd.xlane.f32.xlu0 %v1707_v26 }
 0xcac   : > { %1705 = vadd.xlane.f32.xlu0 %v1693_v24 }
 0xd31   : > { %v1709_v27 = vpop.xlane.xlu0 %1708 }
 0xd32   : > { %v1711_v28 = vmul.f32 0.03125, %v1709_v27 }
 0xd34   : > { %v1713_v29 = vsub.f32 %v1694_v25, %v1711_v28 }
 0xd35   : > { %v1706_v30 = vpop.xlane.xlu0 %1705 }
 0xd36   : > { %v1710_v31 = vmul.f32 0.03125, %v1706_v30  ;;  %v1715_v34 = vmul.f32 %v2645_v3, %v1713_v29 }
 0xd38   : > { %v1712_v32 = vsub.f32 %v1693_v24, %v1710_v31  ;;  %v1717_v39 = vmul.f32 %v1715_v34, %v1715_v34 }
 0xd3a   : > { %v1714_v36 = vmul.f32 %v2645_v3, %v1712_v32  ;;  %v1720_v41 = vsel %vm822_vm1, %v1717_v39, 0.0 }
 0xd3c   : > { %v1716_v38 = vmul.f32 %v1714_v36, %v1714_v36 }
 0xd3e   : > { %1718 = vadd.xlane.f32.xlu1 %v1716_v38 }
 0xd42   : > { %1721 = vadd.xlane.f32.xlu1 %v1720_v41 }
 0xdc7   : > { %v1719_v42 = vpop.xlane.xlu1 %1718 }
 0xdc8   : > { %v1723_v43 = vmul.f32 0.03125, %v1719_v42 }
 0xdca   : > { %v1725_v45 = vadd.f32 1e-05, %v1723_v43 }
 0xdcb   : > { %v1722_v50 = vpop.xlane.xlu1 %1721 }
 0xdcc   : > { %2363 = vrsqrt.f32 %v1725_v45  ;;  %v1724_v52 = vmul.f32 0.03125, %v1722_v50 }
 0xdce   : > { %v1726_v53 = vadd.f32 1e-05, %v1724_v52 }
 0xdd0   : > { %2365 = vrsqrt.f32 %v1726_v53 }
 0xdd9   : > { %v2364_v54 = vpop.eup %2363 }
 0xdda   : > { %v1729_v3 = vmul.f32 %v2364_v54, %v1714_v36 }
 0xddc   : > { %v1735_v57 = vmul.f32 %v1901_v55, %v1729_v3 }
 0xddd   : > { %v2366_v58 = vpop.eup %2365 }
 0xdde   : > { %v1741_v59 = vadd.f32 %v1902_v56, %v1735_v57  ;;  %v1730_v61 = vmul.f32 %v2366_v58, %v1715_v34 }
 0xde0   : > { %1743 = vst [vmem:[%s2728_s4] sm:$0xff] %v1741_v59  ;;  %v1736_v62 = vmul.f32 %v1901_v55, %v1730_v61 }
 0xde2   : > { %v1742_v0 = vadd.f32 %v1902_v56, %v1736_v62 }
 0xde4   : > { %1744 = vst [vmem:[%s2728_s4 + $0x8] sm:$0x3] %v1742_v0 }
 0xde5 PF: > { %s14_s15 = sadd.s32 1, %s2373_s15  }
 0xde6   : > { %p11_p6 = scmp.ge.s32.totalorder %s14_s15, 4  }
 0xde8   :  { %13 = sbr.rel (!%p11_p6) target bundleno = 1 (0x1), region = 78 }

// kernel: _lambda_.5
= control target key start
LH: loop header
LB: loop body
LE: loop exit
PB: predicated region body
PF: predicated region fallthrough
CT: control target
= control target key end

     0   :  { %14 = vsyncpa [#allocation4], 0  ;;  %s3818_s0 = inlined_call_operand.vmem [shape: f32[32,128], index: 0, kind: input, shape index: {}]   ;;  %s3819_s1 = inlined_call_operand.vmem [shape: f32[1,6,128,128], index: 1, kind: input, shape index: {}]   ;;  %s3820_s2 = inlined_call_operand.vmem [shape: f32[1,16,128], index: 2, kind: input, shape index: {}]   ;;  %s3821_s3 = inlined_call_operand.vmem [shape: f32[8,128], index: 3, kind: input, shape index: {}]   ;;  %s3822_s4 = inlined_call_operand.vmem [shape: f32[128,128], index: 4, kind: input, shape index: {}]   ;;  %s3823_s5 = inlined_call_operand.vmem [shape: f32[32,128], index: 5, kind: input, shape index: {}]   ;;  %s3824_s6 = inlined_call_operand.vmem [shape: f32[32,1], index: 6, kind: input, shape index: {}]   ;;  %s3825_s7 = inlined_call_operand.hbm [shape: f32[32,128], index: 7, kind: output, shape index: {0}]   ;;  %s3826_s8 = inlined_call_operand.hbm [shape: f32[1,128], index: 8, kind: output, shape index: {1}]  }
   0x1   :  { %v66_v0 = vld [vmem:[%s3819_s1 + $0x78] sm:$0xff]  ;;  %v65_v2 = vld [vmem:[%s3819_s1 + $0x70] sm:$0xff]  ;;  %v64_v4 = vld [vmem:[%s3819_s1 + $0x68] sm:$0xff] }
   0x2   :  { %v2185_v1 = vld [vmem:[%s3819_s1 + $0xf8] sm:$0xff]  ;;  %2487 = vmatprep.subr.mxu0 %v66_v0  ;;  %v2184_v3 = vld [vmem:[%s3819_s1 + $0xf0] sm:$0xff]  ;;  %v2183_v5 = vld [vmem:[%s3819_s1 + $0xe8] sm:$0xff] }
   0x3   :  { %2525 = vmatprep.subr.mxu1 %v2185_v1  ;;  %2488 = vmatpush3.msra.mxu0 %v66_v0  ;;  %v63_v6 = vld [vmem:[%s3819_s1 + $0x60] sm:$0xff]  ;;  %v62_v8 = vld [vmem:[%s3819_s1 + $0x58] sm:$0xff]  ;;  %v61_v10 = vld [vmem:[%s3819_s1 + $0x50] sm:$0xff] }
   0x4   :  { %2526 = vmatpush3.msra.mxu1 %v2185_v1  ;;  %2489 = vmatprep.subr.mxu0 %v65_v2  ;;  %v2182_v7 = vld [vmem:[%s3819_s1 + $0xe0] sm:$0xff]  ;;  %v2181_v9 = vld [vmem:[%s3819_s1 + $0xd8] sm:$0xff]  ;;  %v2180_v11 = vld [vmem:[%s3819_s1 + $0xd0] sm:$0xff] }
   0x5   :  { %2527 = vmatprep.subr.mxu1 %v2184_v3  ;;  %2490 = vmatpush3.msra.mxu0 %v65_v2  ;;  %v60_v12 = vld [vmem:[%s3819_s1 + $0x48] sm:$0xff]  ;;  %v59_v14 = vld [vmem:[%s3819_s1 + $0x40] sm:$0xff]  ;;  %v58_v16 = vld [vmem:[%s3819_s1 + $0x38] sm:$0xff] }
   0x6   :  { %2528 = vmatpush3.msra.mxu1 %v2184_v3  ;;  %2491 = vmatprep.subr.mxu0 %v64_v4  ;;  %v2179_v13 = vld [vmem:[%s3819_s1 + $0xc8] sm:$0xff]  ;;  %v2178_v15 = vld [vmem:[%s3819_s1 + $0xc0] sm:$0xff]  ;;  %v2177_v17 = vld [vmem:[%s3819_s1 + $0xb8] sm:$0xff] }
   0x7   :  { %2529 = vmatprep.subr.mxu1 %v2183_v5  ;;  %2492 = vmatpush3.msra.mxu0 %v64_v4  ;;  %v57_v18 = vld [vmem:[%s3819_s1 + $0x30] sm:$0xff] }
   0x8   :  { %2530 = vmatpush3.msra.mxu1 %v2183_v5  ;;  %2493 = vmatprep.subr.mxu0 %v63_v6  ;;  %v2176_v19 = vld [vmem:[%s3819_s1 + $0xb0] sm:$0xff] }
   0x9   :  { %2531 = vmatprep.subr.mxu1 %v2182_v7  ;;  %2494 = vmatpush3.msra.mxu0 %v63_v6 }
   0xa   :  { %2532 = vmatpush3.msra.mxu1 %v2182_v7  ;;  %2495 = vmatprep.subr.mxu0 %v62_v8 }
   0xb   :  { %2533 = vmatprep.subr.mxu1 %v2181_v9  ;;  %2496 = vmatpush3.msra.mxu0 %v62_v8 }
   0xc   :  { %2534 = vmatpush3.msra.mxu1 %v2181_v9  ;;  %2497 = vmatprep.subr.mxu0 %v61_v10 }
   0xd   :  { %2535 = vmatprep.subr.mxu1 %v2180_v11  ;;  %2498 = vmatpush3.msra.mxu0 %v61_v10 }
   0xe   :  { %2536 = vmatpush3.msra.mxu1 %v2180_v11  ;;  %2499 = vmatprep.subr.mxu0 %v60_v12 }
   0xf   :  { %2537 = vmatprep.subr.mxu1 %v2179_v13  ;;  %2500 = vmatpush3.msra.mxu0 %v60_v12 }
  0x10   :  { %2538 = vmatpush3.msra.mxu1 %v2179_v13  ;;  %2501 = vmatprep.subr.mxu0 %v59_v14 }
  0x11   :  { %2539 = vmatprep.subr.mxu1 %v2178_v15  ;;  %2502 = vmatpush3.msra.mxu0 %v59_v14 }
  0x12   :  { %2540 = vmatpush3.msra.mxu1 %v2178_v15  ;;  %2503 = vmatprep.subr.mxu0 %v58_v16 }
  0x13   :  { %2541 = vmatprep.subr.mxu1 %v2177_v17 }
  0x14   :  { %15 = vsyncpa [#allocation6], 0  ;;  %2504 = vmatpush3.msra.mxu0 %v58_v16  ;;  %2542 = vmatpush3.msra.mxu1 %v2177_v17  ;;  %v56_v20 = vld [vmem:[%s3819_s1 + $0x28] sm:$0xff]  ;;  %v55_v22 = vld [vmem:[%s3819_s1 + $0x20] sm:$0xff]  ;;  %v46_v52 = vlaneseq  ;;  %v3018_v54 = vmov 0.0   ;;  %vm584_vm11 = vcmask 261120  }
  0x15   :  { %v2175_v21 = vld [vmem:[%s3819_s1 + $0xa8] sm:$0xff]  ;;  %2505 = vmatprep.subr.mxu0 %v57_v18  ;;  %2543 = vmatprep.subr.mxu1 %v2176_v19  ;;  %v2174_v23 = vld [vmem:[%s3819_s1 + $0xa0] sm:$0xff]  ;;  %v54_v24 = vld [vmem:[%s3819_s1 + $0x18] sm:$0xff]  ;;  %vm2114_vm12 = vcmask 7168  }
  0x16   :  { %2506 = vmatpush3.msra.mxu0 %v57_v18  ;;  %2544 = vmatpush3.msra.mxu1 %v2176_v19  ;;  %v2173_v25 = vld [vmem:[%s3819_s1 + $0x98] sm:$0xff]  ;;  %v53_v26 = vld [vmem:[%s3819_s1 + $0x10] sm:$0xff]  ;;  %v52_v28 = vld [vmem:[%s3819_s1 + $0x8] sm:$0xff]  ;;  %v3226_v53 = vand.u32 127, %v46_v52 }
  0x17   :  { %2507 = vmatprep.subr.mxu0 %v56_v20  ;;  %2545 = vmatprep.subr.mxu1 %v2175_v21  ;;  %v2172_v27 = vld [vmem:[%s3819_s1 + $0x90] sm:$0xff]  ;;  %v2171_v29 = vld [vmem:[%s3819_s1 + $0x88] sm:$0xff]  ;;  %v51_v30 = vld [vmem:[%s3819_s1] sm:$0xff] }
  0x18   :  { %2508 = vmatpush3.msra.mxu0 %v56_v20  ;;  %2546 = vmatpush3.msra.mxu1 %v2175_v21  ;;  %v2170_v31 = vld [vmem:[%s3819_s1 + $0x80] sm:$0xff]  ;;  %v35_v33 = vld [vmem:[%s3818_s0 + $0x8] sm:$0xff]  ;;  %v2201_v34 = vld [vmem:[%s3819_s1 + $0x178] sm:$0xff]  ;;  %vm465_vm0 = vcmp.ge.s32.totalorder %v3226_v53, 16  ;;  %vm48_vm1 = vcmp.lt.s32.totalorder %v3226_v53, 32  ;;  %vm972_vm2 = vcmp.lt.s32.totalorder %v3226_v53, 24 }
  0x19   :  { %2509 = vmatprep.subr.mxu0 %v55_v22  ;;  %2547 = vmatprep.subr.mxu1 %v2174_v23  ;;  %v34_v32 = vld [vmem:[%s3818_s0] sm:$0xff]  ;;  %v36_v35 = vld [vmem:[%s3818_s0 + $0x10] sm:$0xff]  ;;  %v37_v37 = vld [vmem:[%s3818_s0 + $0x18] sm:$0xff]  ;;  %vm1222_vm3 = vcmp.ge.s32.totalorder %v3226_v53, 24  ;;  %vm479_vm6 = vcmp.lt.s32.totalorder %v3226_v53, 8  ;;  %vm447_vm7 = vcmp.lt.s32.totalorder %v3226_v53, 16 }
  0x1a   :  { %2510 = vmatpush3.msra.mxu0 %v55_v22  ;;  %2548 = vmatpush3.msra.mxu1 %v2174_v23  ;;  %v2200_v36 = vld [vmem:[%s3819_s1 + $0x170] sm:$0xff]  ;;  %v2199_v38 = vld [vmem:[%s3819_s1 + $0x168] sm:$0xff]  ;;  %v2198_v39 = vld [vmem:[%s3819_s1 + $0x160] sm:$0xff]  ;;  %v3250_v0 = vsel %vm479_vm6, 1.0, %v3018_v54  ;;  %vm629_vm8 = vcmp.ge.s32.totalorder %v3226_v53, 8 }
  0x1b   :  { %2511 = vmatprep.subr.mxu0 %v54_v24  ;;  %2549 = vmatprep.subr.mxu1 %v2173_v25  ;;  %v2197_v40 = vld [vmem:[%s3819_s1 + $0x158] sm:$0xff]  ;;  %v2196_v41 = vld [vmem:[%s3819_s1 + $0x150] sm:$0xff]  ;;  %v2195_v42 = vld [vmem:[%s3819_s1 + $0x148] sm:$0xff] }
  0x1c   :  { %2512 = vmatpush3.msra.mxu0 %v54_v24  ;;  %2550 = vmatpush3.msra.mxu1 %v2173_v25  ;;  %v2194_v43 = vld [vmem:[%s3819_s1 + $0x140] sm:$0xff]  ;;  %v2193_v44 = vld [vmem:[%s3819_s1 + $0x138] sm:$0xff]  ;;  %v2192_v45 = vld [vmem:[%s3819_s1 + $0x130] sm:$0xff] }
  0x1d   :  { %2513 = vmatprep.subr.mxu0 %v53_v26  ;;  %2551 = vmatprep.subr.mxu1 %v2172_v27  ;;  %v2191_v46 = vld [vmem:[%s3819_s1 + $0x128] sm:$0xff]  ;;  %v2190_v47 = vld [vmem:[%s3819_s1 + $0x120] sm:$0xff]  ;;  %v2189_v48 = vld [vmem:[%s3819_s1 + $0x118] sm:$0xff] }
  0x1e   :  { %2514 = vmatpush3.msra.mxu0 %v53_v26  ;;  %2552 = vmatpush3.msra.mxu1 %v2172_v27  ;;  %v2188_v49 = vld [vmem:[%s3819_s1 + $0x110] sm:$0xff]  ;;  %v2187_v50 = vld [vmem:[%s3819_s1 + $0x108] sm:$0xff]  ;;  %v2186_v51 = vld [vmem:[%s3819_s1 + $0x100] sm:$0xff] }
  0x1f   :  { %2515 = vmatprep.subr.mxu0 %v52_v28  ;;  %2553 = vmatprep.subr.mxu1 %v2171_v29  ;;  %vm973_vm4 = vmand %vm465_vm0, %vm972_vm2  ;;  %v2250_v60 = vld [vmem:[%s3820_s2] ss:$0 sm:$0xff]  ;;  %v2251_v62 = vld [vmem:[%s3820_s2 + $0x1] ss:$0 sm:$0xff] }
  0x20   :  { %2516 = vmatpush3.msra.mxu0 %v52_v28  ;;  %2554 = vmatpush3.msra.mxu1 %v2171_v29  ;;  %v3235_v55 = vsel %vm973_vm4, 1.0, %v3018_v54  ;;  %vm1223_vm5 = vmand %vm1222_vm3, %vm48_vm1  ;;  %v2252_v19 = vld [vmem:[%s3820_s2 + $0x2] ss:$0 sm:$0xff] }
  0x21   :  { %2517 = vmatprep.subr.mxu0 %v51_v30  ;;  %2555 = vmatprep.subr.mxu1 %v2170_v31  ;;  %v3240_v56 = vsel %vm1223_vm5, 1.0, %v3018_v54  ;;  %vm630_vm9 = vmand %vm629_vm8, %vm447_vm7 }
  0x22   :  { %2518 = vmatpush3.msra.mxu0 %v51_v30  ;;  %2556 = vmatpush3.msra.mxu1 %v2170_v31  ;;  %v2254_v15 = vsel %vm630_vm9, 1.0, %v3018_v54  ;;  %vm466_vm10 = vmand %vm465_vm0, %vm48_vm1 }
  0x23   :  { %2557 = vmatprep.mubr.f32.mxu1 %v34_v32  ;;  %2519 = vmatprep.mubr.f32.mxu0 %v34_v32 }
  0x24   :  { %2558 = vmatmul.mubr.f32.vlgmr.msra.gmra.mxu1 %v35_v33  ;;  %2563 = vmatprep.subr.mxu0 %v2201_v34 }
  0x25   :  { %2520 = vmatmul.mubr.f32.vlgmr.msra.gmra.mxu0 %v35_v33  ;;  %2560 = vmatprep.mubr.f32.mxu1 %v36_v35 }
  0x26   :  { %2564 = vmatpush3.msra.mxu0 %v2201_v34  ;;  %2522 = vmatprep.mubr.f32.mxu0 %v36_v35 }
  0x27   :  { %2565 = vmatprep.subr.mxu0 %v2200_v36 }
  0x28   :  { %2566 = vmatpush3.msra.mxu0 %v2200_v36  ;;  %2561 = vmatmul.mubr.f32.gmra.mxu1 %v37_v37 }
  0x29   :  { %2567 = vmatprep.subr.mxu0 %v2199_v38  ;;  %2523 = vmatmul.mubr.f32.gmra.mxu0 %v37_v37 }
  0x2a   :  { %2568 = vmatpush3.msra.mxu0 %v2199_v38  ;;  %2595 = vmatprep.mubr.f32.mxu0 %v34_v32 }
  0x2b   :  { %2569 = vmatprep.subr.mxu0 %v2198_v39 }
  0x2c   :  { %2570 = vmatpush3.msra.mxu0 %v2198_v39 }
  0x2d   :  { %2571 = vmatprep.subr.mxu0 %v2197_v40 }
  0x2e   :  { %2572 = vmatpush3.msra.mxu0 %v2197_v40 }
  0x2f   :  { %2573 = vmatprep.subr.mxu0 %v2196_v41 }
  0x30   :  { %2574 = vmatpush3.msra.mxu0 %v2196_v41 }
  0x31   :  { %2575 = vmatprep.subr.mxu0 %v2195_v42 }
  0x32   :  { %2576 = vmatpush3.msra.mxu0 %v2195_v42 }
  0x33   :  { %2577 = vmatprep.subr.mxu0 %v2194_v43 }
  0x34   :  { %2578 = vmatpush3.msra.mxu0 %v2194_v43  ;;  %v3019_v43 = vmov -1e+30  }
  0x35   :  { %2579 = vmatprep.subr.mxu0 %v2193_v44 }
  0x36   :  { %2580 = vmatpush3.msra.mxu0 %v2193_v44  ;;  %v3319_v44 = vsel %vm447_vm7, 0.0, %v3019_v43 }
  0x37   :  { %2581 = vmatprep.subr.mxu0 %v2192_v45 }
  0x38   :  { %2582 = vmatpush3.msra.mxu0 %v2192_v45 }
  0x39   :  { %2583 = vmatprep.subr.mxu0 %v2191_v46 }
  0x3a   :  { %2584 = vmatpush3.msra.mxu0 %v2191_v46 }
  0x3b   :  { %2585 = vmatprep.subr.mxu0 %v2190_v47 }
  0x3c   :  { %2586 = vmatpush3.msra.mxu0 %v2190_v47 }
  0x3d   :  { %2587 = vmatprep.subr.mxu0 %v2189_v48 }
  0x3e   :  { %2588 = vmatpush3.msra.mxu0 %v2189_v48 }
  0x3f   :  { %2589 = vmatprep.subr.mxu0 %v2188_v49 }
  0x40   :  { %2590 = vmatpush3.msra.mxu0 %v2188_v49 }
  0x41   :  { %2591 = vmatprep.subr.mxu0 %v2187_v50 }
  0x42   :  { %2592 = vmatpush3.msra.mxu0 %v2187_v50 }
  0x43   :  { %2593 = vmatprep.subr.mxu0 %v2186_v51 }
  0x44   :  { %2594 = vmatpush3.msra.mxu0 %v2186_v51  ;;  %v3328_v51 = vsel %vm466_vm10, 0.0, %v3019_v43 }
  0x45   :  { %2596 = vmatmul.mubr.f32.vlgmr.msra.gmra.mxu0 %v35_v33 }
  0x46   :  { %2598 = vmatprep.mubr.f32.mxu0 %v36_v35 }
  0x49   :  { %2599 = vmatmul.mubr.f32.gmra.mxu0 %v37_v37 }
  0xe4   :  { %v2559_v57 = vpop.f32.mrf.mxu1 }
  0xe5   :  { %v2521_v58 = vpop.f32.mrf.mxu0  ;;  %v3263_v7 = vadd.f32 %v2559_v57, %v2251_v62 }
  0xe6   :  { %v321_v59 = vpop.f32.mrf.mxu1  ;;  %v3272_v11 = vadd.f32 %v2521_v58, %v2250_v60 }
  0xe7   :  { %v232_v61 = vpop.f32.mrf.mxu0  ;;  %v3267_v9 = vadd.f32 %v2251_v62, %v321_v59 }
  0xe8   :  { %v2562_v63 = vpop.f32.mrf.mxu1  ;;  %v3254_v2 = vadd.f32 %v2250_v60, %v232_v61  ;;  %v484_v14 = vmul.f32 %v3250_v0, %v3272_v11  ;;  %v634_v21 = vmul.f32 %v2254_v15, %v3272_v11 }
  0xe9   :  { %v3252_v1 = vadd.f32 %v2562_v63, %v2251_v62  ;;  %v2524_v6 = vpop.f32.mrf.mxu0 }
  0xea   :  { %v331_v3 = vpop.f32.mrf.mxu1  ;;  %v483_v5 = vmul.f32 %v3250_v0, %v3254_v2  ;;  %v3277_v12 = vadd.f32 %v2524_v6, %v2250_v60  ;;  %v633_v17 = vmul.f32 %v2254_v15, %v3254_v2 }
  0xeb   :  { %v3256_v4 = vadd.f32 %v2251_v62, %v331_v3  ;;  %2601 = vmatprep.subr.mxu1 %v3252_v1  ;;  %v242_v8 = vpop.f32.mrf.mxu0 }
  0xec   :  { %2602 = vmatpush3.xpose.msra.mxu1 %v3252_v1  ;;  %2609 = vmatprep.mubr.f32.mxu1 %v483_v5  ;;  %v3270_v10 = vadd.f32 %v2250_v60, %v242_v8  ;;  %v486_v16 = vmul.f32 %v3250_v0, %v3277_v12  ;;  %v636_v30 = vmul.f32 %v2254_v15, %v3277_v12 }
  0xed   :  { %2603 = vmatprep.subr.mxu1 %v3256_v4 }
  0xee   :  { %v485_v13 = vmul.f32 %v3250_v0, %v3270_v10  ;;  %v635_v25 = vmul.f32 %v2254_v15, %v3270_v10 }
  0xf0   :  { %2604 = vmatpush3.xpose.msra.mxu1 %v3256_v4 }
  0xf1   :  { %2605 = vmatprep.subr.mxu1 %v3263_v7 }
  0xf4   :  { %2606 = vmatpush3.xpose.msra.mxu1 %v3263_v7 }
  0xf5   :  { %2607 = vmatprep.subr.mxu1 %v3267_v9 }
  0xf8   :  { %2608 = vmatpush3.xpose.msra.mxu1 %v3267_v9 }
  0xf9   :  { %2615 = vmatprep.subr.mxu1 %v3252_v1 }
  0xfb   :  { %2610 = vmatmul.mubr.f32.vlgmr.msra.gmra.mxu1 %v484_v14 }
  0xfc   :  { %2616 = vmatpush3.xpose.msra.mxu1 %v3252_v1  ;;  %2612 = vmatprep.mubr.f32.mxu1 %v485_v13 }
  0xfd   :  { %2617 = vmatprep.subr.mxu1 %v3256_v4 }
  0xff   :  { %2613 = vmatmul.mubr.f32.gmra.mxu1 %v486_v16 }
 0x100   :  { %2618 = vmatpush3.xpose.msra.mxu1 %v3256_v4  ;;  %2623 = vmatprep.mubr.f32.mxu1 %v633_v17 }
 0x101   :  { %2619 = vmatprep.subr.mxu1 %v3263_v7 }
 0x104   :  { %2620 = vmatpush3.xpose.msra.mxu1 %v3263_v7 }
 0x105   :  { %v2597_v18 = vpop.f32.mrf.mxu0  ;;  %2621 = vmatprep.subr.mxu1 %v3267_v9 }
 0x106   :  { %v3302_v23 = vadd.f32 %v2597_v18, %v2252_v19 }
 0x107   :  { %v410_v20 = vpop.f32.mrf.mxu0 }
 0x108   :  { %2622 = vmatpush3.xpose.msra.mxu1 %v3267_v9  ;;  %v3307_v27 = vadd.f32 %v2252_v19, %v410_v20  ;;  %v638_v32 = vmul.f32 %v2254_v15, %v3302_v23  ;;  %v488_v43 = vmul.f32 %v3250_v0, %v3302_v23 }
 0x109   :  { %v2600_v22 = vpop.f32.mrf.mxu0 }
 0x10a   :  { %v3304_v24 = vadd.f32 %v2600_v22, %v2252_v19  ;;  %v637_v33 = vmul.f32 %v2254_v15, %v3307_v27 }
 0x10b   :  { %v420_v26 = vpop.f32.mrf.mxu0  ;;  %2624 = vmatmul.mubr.f32.vlgmr.msra.gmra.mxu1 %v634_v21 }
 0x10c   :  { %v3309_v28 = vadd.f32 %v2252_v19, %v420_v26  ;;  %2626 = vmatprep.mubr.f32.mxu1 %v635_v25  ;;  %v640_v29 = vmul.f32 %v2254_v15, %v3304_v24 }
 0x10e   :  { %2629 = vmatprep.subr.mxu0 %v640_v29  ;;  %v639_v31 = vmul.f32 %v2254_v15, %v3309_v28 }
 0x10f   :  { %2630 = vmatpush3.msra.mxu0 %v640_v29  ;;  %2627 = vmatmul.mubr.f32.gmra.mxu1 %v636_v30 }
 0x110   :  { %2631 = vmatprep.subr.mxu0 %v639_v31 }
 0x111   :  { %2632 = vmatpush3.msra.mxu0 %v639_v31 }
 0x112   :  { %2633 = vmatprep.subr.mxu0 %v638_v32 }
 0x113   :  { %2634 = vmatpush3.msra.mxu0 %v638_v32 }
 0x114   :  { %2635 = vmatprep.subr.mxu0 %v637_v33 }
 0x115   :  { %2636 = vmatpush3.msra.mxu0 %v637_v33 }
 0x116   :  { %2657 = vmatprep.subr.mxu0 %v3252_v1 }
 0x1bb   :  { %v2611_v34 = vpop.f32.mrf.mxu1 }
 0x1bc   :  { %v577_v25 = vmul.f32 0.35355338, %v2611_v34 }
 0x1bd   :  { %v557_v35 = vpop.f32.mrf.mxu1 }
 0x1be   :  { %v576_v20 = vmul.f32 0.35355338, %v557_v35  ;;  %v3343_v35 = vadd.f32 %v577_v25, %v3319_v44 }
 0x1bf   :  { %v2614_v36 = vpop.f32.mrf.mxu1 }
 0x1c0   :  { %v3339_v31 = vadd.f32 %v576_v20, %v3319_v44  ;;  %v579_v33 = vmul.f32 0.35355338, %v2614_v36  ;;  %v588_v36 = vsel %vm584_vm11, %v3343_v35, -inf }
 0x1c1   :  { %v567_v37 = vpop.f32.mrf.mxu1 }
 0x1c2   :  { %v578_v29 = vmul.f32 0.35355338, %v567_v37  ;;  %v585_v34 = vsel %vm584_vm11, %v3339_v31, -inf }
 0x1c4   :  { %v3348_v37 = vadd.f32 %v578_v29, %v3328_v51 }
 0x1cb   :  { %v2625_v38 = vpop.f32.mrf.mxu1 }
 0x1cc   :  { %v727_v40 = vmul.f32 0.35355338, %v2625_v38 }
 0x1cd   :  { %v707_v39 = vpop.f32.mrf.mxu1 }
 0x1ce   :  { %v726_v41 = vmul.f32 0.35355338, %v707_v39  ;;  %v731_v50 = vadd.f32 %v727_v40, %v3319_v44  ;;  %v490_v39 = vmul.f32 %v3250_v0, %v3304_v24  ;;  %v489_v40 = vmul.f32 %v3250_v0, %v3309_v28 }
 0x1cf   :  { %v2628_v42 = vpop.f32.mrf.mxu1 }
 0x1d0   :  { %v730_v45 = vadd.f32 %v726_v41, %v3319_v44  ;;  %v729_v47 = vmul.f32 0.35355338, %v2628_v42  ;;  %v737_v57 = vsel %vm584_vm11, %v731_v50, -inf  ;;  %v3357_v41 = vadd.f32 %v579_v33, %v3328_v51  ;;  %2643 = vmatprep.subr.mxu1 %v490_v39 }
 0x1d1   :  { %v717_v46 = vpop.f32.mrf.mxu1  ;;  %v591_v42 = vsel %vm584_vm11, %v3348_v37, -inf  ;;  %2644 = vmatpush3.msra.mxu1 %v490_v39 }
 0x1d2   :  { %v728_v48 = vmul.f32 0.35355338, %v717_v46  ;;  %v734_v49 = vsel %vm584_vm11, %v730_v45, -inf  ;;  %v733_v59 = vadd.f32 %v729_v47, %v3328_v51  ;;  %2645 = vmatprep.subr.mxu1 %v489_v40  ;;  %v487_v46 = vmul.f32 %v3250_v0, %v3307_v27 }
 0x1d3   :  { %735 = vmax.xlane.f32.xlu0 %v734_v49  ;;  %2646 = vmatpush3.msra.mxu1 %v489_v40  ;;  %v3369_v47 = vmul.f32 %v3235_v55, %v3304_v24 }
 0x1d4   :  { %v732_v52 = vadd.f32 %v728_v48, %v3328_v51  ;;  %v743_v60 = vsel %vm584_vm11, %v733_v59, -inf  ;;  %2647 = vmatprep.subr.mxu1 %v488_v43 }
 0x1d5   :  { %2648 = vmatpush3.msra.mxu1 %v488_v43 }
 0x1d6   :  { %v740_v58 = vsel %vm584_vm11, %v732_v52, -inf  ;;  %2649 = vmatprep.subr.mxu1 %v487_v46 }
 0x1d7   :  { %738 = vmax.xlane.f32.xlu0 %v737_v57  ;;  %741 = vmax.xlane.f32.xlu1 %v740_v58 }
 0x1d8   :  { %2650 = vmatpush3.msra.mxu1 %v487_v46 }
 0x1d9   :  { %2671 = vmatprep.subr.mxu1 %v3369_v47 }
 0x1db   :  { %744 = vmax.xlane.f32.xlu1 %v743_v60 }
 0x25c   :  { %v736_v61 = vpop.xlane.xlu0 %735 }
 0x25d   :  { %v746_v62 = vsub.f32 %v730_v45, %v736_v61  ;;  %v594_v45 = vsel %vm584_vm11, %v3357_v41, -inf }
 0x25f   :  { %v750_v63 = vmul.f32 1.442695, %v746_v62 }
 0x260   :  { %v739_v3 = vpop.xlane.xlu0 %738  ;;  %v742_v5 = vpop.xlane.xlu1 %741 }
 0x261   :  { %2880 = vpow2.f32 %v750_v63  ;;  %v747_v6 = vsub.f32 %v731_v50, %v739_v3  ;;  %v748_v8 = vsub.f32 %v732_v52, %v742_v5  ;;  %v976_v3 = vmul.f32 %v3235_v55, %v3254_v2 }
 0x262   :  { %v1233_v5 = vmul.f32 %v3240_v56, %v3304_v24  ;;  %v1231_v24 = vmul.f32 %v3240_v56, %v3302_v23 }
 0x263   :  { %v752_v13 = vmul.f32 1.442695, %v747_v6  ;;  %v754_v14 = vmul.f32 1.442695, %v748_v8  ;;  %v977_v6 = vmul.f32 %v3235_v55, %v3272_v11  ;;  %v978_v8 = vmul.f32 %v3235_v55, %v3270_v10 }
 0x264   :  { %v745_v15 = vpop.xlane.xlu1 %744 }
 0x265   :  { %2882 = vpow2.f32 %v752_v13  ;;  %v749_v16 = vsub.f32 %v733_v59, %v745_v15  ;;  %v1232_v13 = vmul.f32 %v3240_v56, %v3309_v28  ;;  %v1230_v15 = vmul.f32 %v3240_v56, %v3307_v27 }
 0x266   :  { %2884 = vpow2.f32 %v754_v14  ;;  %v979_v14 = vmul.f32 %v3235_v55, %v3277_v12 }
 0x267   :  { %v756_v17 = vmul.f32 1.442695, %v749_v16 }
 0x269   :  { %2886 = vpow2.f32 %v756_v17 }
 0x26e   :  { %v2881_v18 = vpop.eup %2880 }
 0x26f   :  { %v758_v19 = vsel %vm584_vm11, %v2881_v18, 0.0 }
 0x270   :  { %759 = vadd.xlane.f32.xlu0 %v758_v19 }
 0x272   :  { %v2883_v21 = vpop.eup %2882 }
 0x273   :  { %v2885_v22 = vpop.eup %2884  ;;  %v761_v26 = vsel %vm584_vm11, %v2883_v21, 0.0 }
 0x274   :  { %762 = vadd.xlane.f32.xlu1 %v761_v26  ;;  %v764_v30 = vsel %vm584_vm11, %v2885_v22, 0.0 }
 0x275   :  { %765 = vadd.xlane.f32.xlu0 %v764_v30 }
 0x276   :  { %v2887_v32 = vpop.eup %2886 }
 0x277   :  { %v767_v38 = vsel %vm584_vm11, %v2887_v32, 0.0 }
 0x278   :  { %768 = vadd.xlane.f32.xlu1 %v767_v38 }
 0x279   :  { %586 = vmax.xlane.f32.xlu0 %v585_v34 }
 0x27c   :  { %589 = vmax.xlane.f32.xlu1 %v588_v36 }
 0x27d   :  { %592 = vmax.xlane.f32.xlu0 %v591_v42 }
 0x280   :  { %595 = vmax.xlane.f32.xlu1 %v594_v45 }
 0x2f9   :  { %v760_v48 = vpop.xlane.xlu0 %759 }
 0x2fa   :  { %2888 = vrcp.f32 %v760_v48 }
 0x2fd   :  { %v763_v49 = vpop.xlane.xlu1 %762 }
 0x2fe   :  { %v766_v50 = vpop.xlane.xlu0 %765  ;;  %2890 = vrcp.f32 %v763_v49 }
 0x2ff   :  { %2892 = vrcp.f32 %v766_v50 }
 0x301   :  { %v769_v52 = vpop.xlane.xlu1 %768 }
 0x302   :  { %2894 = vrcp.f32 %v769_v52  ;;  %v587_v17 = vpop.xlane.xlu0 %586 }
 0x305   :  { %v590_v16 = vpop.xlane.xlu1 %589 }
 0x306   :  { %v598_v19 = vsub.f32 %v3343_v35, %v590_v16  ;;  %v593_v25 = vpop.xlane.xlu0 %592 }
 0x307   :  { %v2889_v57 = vpop.eup %2888  ;;  %v599_v33 = vsub.f32 %v3348_v37, %v593_v25 }
 0x308   :  { %v774_v0 = vmul.f32 %v2889_v57, %v2881_v18  ;;  %v603_v26 = vmul.f32 1.442695, %v598_v19 }
 0x309   :  { %v596_v20 = vpop.xlane.xlu1 %595  ;;  %v605_v35 = vmul.f32 1.442695, %v599_v33 }
 0x30a   :  { %2637 = vmatprep.mubr.msk.f32.mxu0 %vm584_vm11, %v774_v0  ;;  %v600_v29 = vsub.f32 %v3357_v41, %v596_v20  ;;  %2896 = vpow2.f32 %v603_v26 }
 0x30b   :  { %v2891_v58 = vpop.eup %2890 }
 0x30c   :  { %v2893_v59 = vpop.eup %2892  ;;  %v775_v60 = vmul.f32 %v2891_v58, %v2883_v21  ;;  %v607_v38 = vmul.f32 1.442695, %v600_v29 }
 0x30d   :  { %v776_v61 = vmul.f32 %v2893_v59, %v2885_v22  ;;  %v597_v22 = vsub.f32 %v3339_v31, %v587_v17 }
 0x30e   :  { %2638 = vmatmul.mubr.msk.f32.vlgmr.msra.gmra.mxu0 %vm584_vm11, %v775_v60 }
 0x30f   :  { %v2895_v62 = vpop.eup %2894  ;;  %2658 = vmatpush3.xpose.msra.mxu0 %v3252_v1  ;;  %2640 = vmatprep.mubr.msk.f32.mxu0 %vm584_vm11, %v776_v61 }
 0x310   :  { %2659 = vmatprep.subr.mxu0 %v3256_v4  ;;  %v777_v63 = vmul.f32 %v2895_v62, %v2887_v32  ;;  %v601_v32 = vmul.f32 1.442695, %v597_v22 }
 0x312   :  { %2641 = vmatmul.mubr.msk.f32.gmra.mxu0 %vm584_vm11, %v777_v63  ;;  %2898 = vpow2.f32 %v601_v32 }
 0x313   :  { %2660 = vmatpush3.xpose.msra.mxu0 %v3256_v4  ;;  %2665 = vmatprep.mubr.f32.mxu0 %v976_v3  ;;  %2900 = vpow2.f32 %v607_v38 }
 0x314   :  { %2661 = vmatprep.subr.mxu0 %v3263_v7  ;;  %2902 = vpow2.f32 %v605_v35 }
 0x317   :  { %2662 = vmatpush3.xpose.msra.mxu0 %v3263_v7  ;;  %v2897_v0 = vpop.eup %2896 }
 0x318   :  { %2663 = vmatprep.subr.mxu0 %v3267_v9  ;;  %v612_v60 = vsel %vm584_vm11, %v2897_v0, 0.0 }
 0x31b   :  { %2664 = vmatpush3.xpose.msra.mxu0 %v3267_v9 }
 0x31c   :  { %2699 = vmatprep.subr.mxu0 %v1233_v5 }
 0x31e   :  { %2666 = vmatmul.mubr.f32.vlgmr.msra.gmra.mxu0 %v977_v6 }
 0x31f   :  { %2668 = vmatprep.mubr.f32.mxu0 %v978_v8  ;;  %2700 = vmatpush3.msra.mxu0 %v1233_v5  ;;  %v2899_v59 = vpop.eup %2898 }
 0x320   :  { %2701 = vmatprep.subr.mxu0 %v1232_v13  ;;  %v2901_v61 = vpop.eup %2900  ;;  %v609_v62 = vsel %vm584_vm11, %v2899_v59, 0.0 }
 0x321   :  { %2702 = vmatpush3.msra.mxu0 %v1232_v13  ;;  %v2903_v63 = vpop.eup %2902  ;;  %v618_v3 = vsel %vm584_vm11, %v2901_v61, 0.0 }
 0x322   :  { %2669 = vmatmul.mubr.f32.gmra.mxu0 %v979_v14  ;;  %2703 = vmatprep.subr.mxu0 %v1231_v24  ;;  %v615_v5 = vsel %vm584_vm11, %v2903_v63, 0.0 }
 0x323   :  { %2704 = vmatpush3.msra.mxu0 %v1231_v24 }
 0x324   :  { %2705 = vmatprep.subr.mxu0 %v1230_v15 }
 0x325   :  { %2706 = vmatpush3.msra.mxu0 %v1230_v15 }
 0x3ce   :  { %v3399_v18 = vpop.f32.mrf.mxu0 }
 0x3d0   :  { %v3402_v21 = vpop.f32.mrf.mxu0 }
 0x3d2   :  { %v3406_v30 = vpop.f32.mrf.mxu0 }
 0x3d4   :  { %v3409_v34 = vpop.f32.mrf.mxu0 }
 0x3de   :  { %v2667_v39 = vpop.f32.mrf.mxu0 }
 0x3df   :  { %v1070_v40 = vmul.f32 0.35355338, %v2667_v39 }
 0x3e0   :  { %v1050_v36 = vpop.f32.mrf.mxu0 }
 0x3e1   :  { %v1069_v31 = vmul.f32 0.35355338, %v1050_v36  ;;  %v1074_v42 = vadd.f32 %v1070_v40, %v3319_v44 }
 0x3e2   :  { %v2670_v41 = vpop.f32.mrf.mxu0 }
 0x3e3   :  { %v1072_v43 = vmul.f32 0.35355338, %v2670_v41  ;;  %v1080_v45 = vsel %vm584_vm11, %v1074_v42, -inf  ;;  %v1073_v37 = vadd.f32 %v1069_v31, %v3319_v44 }
 0x3e4   :  { %1081 = vmax.xlane.f32.xlu1 %v1080_v45  ;;  %v1060_v46 = vpop.f32.mrf.mxu0 }
 0x3e5   :  { %v1071_v48 = vmul.f32 0.35355338, %v1060_v46  ;;  %v1077_v49 = vsel %vm584_vm11, %v1073_v37, -inf  ;;  %v1076_v50 = vadd.f32 %v1072_v43, %v3328_v51 }
 0x3e6   :  { %1078 = vmax.xlane.f32.xlu0 %v1077_v49 }
 0x3e7   :  { %v1086_v52 = vsel %vm584_vm11, %v1076_v50, -inf  ;;  %v1075_v57 = vadd.f32 %v1071_v48, %v3328_v51 }
 0x3e8   :  { %1087 = vmax.xlane.f32.xlu1 %v1086_v52 }
 0x3e9   :  { %v1083_v58 = vsel %vm584_vm11, %v1075_v57, -inf }
 0x3ea   :  { %1084 = vmax.xlane.f32.xlu0 %v1083_v58 }
 0x3ec   :  { %613 = vadd.xlane.f32.xlu1 %v612_v60 }
 0x3ee   :  { %610 = vadd.xlane.f32.xlu0 %v609_v62 }
 0x3f0   :  { %619 = vadd.xlane.f32.xlu1 %v618_v3 }
 0x3f2   :  { %616 = vadd.xlane.f32.xlu0 %v615_v5 }
 0x46d   :  { %v1082_v6 = vpop.xlane.xlu1 %1081 }
 0x46e   :  { %v1090_v8 = vsub.f32 %v1074_v42, %v1082_v6  ;;  %v1226_v6 = vmul.f32 %v3240_v56, %v3254_v2  ;;  %v1229_v2 = vmul.f32 %v3240_v56, %v3277_v12 }
 0x46f   :  { %v1079_v13 = vpop.xlane.xlu0 %1078 }
 0x470   :  { %v1095_v14 = vmul.f32 1.442695, %v1090_v8  ;;  %v1089_v24 = vsub.f32 %v1073_v37, %v1079_v13  ;;  %v1228_v8 = vmul.f32 %v3240_v56, %v3270_v10 }
 0x471   :  { %v1088_v15 = vpop.xlane.xlu1 %1087 }
 0x472   :  { %2904 = vpow2.f32 %v1095_v14  ;;  %v1093_v16 = vmul.f32 1.442695, %v1089_v24  ;;  %v1092_v17 = vsub.f32 %v1076_v50, %v1088_v15  ;;  %v982_v50 = vmul.f32 %v3235_v55, %v3309_v28 }
 0x473   :  { %v1085_v19 = vpop.xlane.xlu0 %1084 }
 0x474   :  { %2906 = vpow2.f32 %v1093_v16  ;;  %v1099_v20 = vmul.f32 1.442695, %v1092_v17  ;;  %v1091_v22 = vsub.f32 %v1075_v57, %v1085_v19  ;;  %v981_v57 = vmul.f32 %v3235_v55, %v3302_v23 }
 0x475   :  { %v614_v25 = vpop.xlane.xlu1 %613 }
 0x476   :  { %2908 = vpow2.f32 %v1099_v20  ;;  %v1097_v26 = vmul.f32 1.442695, %v1091_v22 }
 0x477   :  { %2910 = vrcp.f32 %v614_v25  ;;  %v611_v29 = vpop.xlane.xlu0 %610 }
 0x478   :  { %2912 = vpow2.f32 %v1097_v26 }
 0x479   :  { %2914 = vrcp.f32 %v611_v29  ;;  %v620_v32 = vpop.xlane.xlu1 %619 }
 0x47a   :  { %2916 = vrcp.f32 %v620_v32 }
 0x47b   :  { %v617_v33 = vpop.xlane.xlu0 %616 }
 0x47c   :  { %2918 = vrcp.f32 %v617_v33 }
 0x47f   :  { %v2905_v38 = vpop.eup %2904 }
 0x480   :  { %v1104_v35 = vsel %vm584_vm11, %v2905_v38, 0.0 }
 0x481   :  { %v2907_v39 = vpop.eup %2906  ;;  %1105 = vadd.xlane.f32.xlu1 %v1104_v35 }
 0x482   :  { %v1101_v40 = vsel %vm584_vm11, %v2907_v39, 0.0 }
 0x483   :  { %v2909_v36 = vpop.eup %2908  ;;  %1102 = vadd.xlane.f32.xlu0 %v1101_v40 }
 0x484   :  { %v2911_v31 = vpop.eup %2910  ;;  %v1110_v42 = vsel %vm584_vm11, %v2909_v36, 0.0 }
 0x485   :  { %v2913_v41 = vpop.eup %2912  ;;  %1111 = vadd.xlane.f32.xlu1 %v1110_v42  ;;  %v626_v48 = vmul.f32 %v2911_v31, %v2897_v0  ;;  %v980_v0 = vmul.f32 %v3235_v55, %v3307_v27 }
 0x486   :  { %v2915_v43 = vpop.eup %2914  ;;  %v1107_v45 = vsel %vm584_vm11, %v2913_v41, 0.0 }
 0x487   :  { %1108 = vadd.xlane.f32.xlu0 %v1107_v45  ;;  %v625_v37 = vmul.f32 %v2915_v43, %v2899_v59  ;;  %v2917_v46 = vpop.eup %2916 }
 0x488   :  { %v628_v58 = vmul.f32 %v2917_v46, %v2901_v61 }
 0x489   :  { %v2919_v49 = vpop.eup %2918  ;;  %2651 = vmatprep.mubr.msk.f32.mxu1 %vm584_vm11, %v625_v37 }
 0x48a   :  { %2652 = vmatmul.mubr.msk.f32.vlgmr.msra.gmra.mxu1 %vm584_vm11, %v626_v48  ;;  %v627_v52 = vmul.f32 %v2919_v49, %v2903_v63 }
 0x48b   :  { %2672 = vmatpush3.msra.mxu1 %v3369_v47 }
 0x48c   :  { %2673 = vmatprep.subr.mxu1 %v982_v50  ;;  %2654 = vmatprep.mubr.msk.f32.mxu1 %vm584_vm11, %v627_v52 }
 0x48d   :  { %2674 = vmatpush3.msra.mxu1 %v982_v50 }
 0x48e   :  { %2675 = vmatprep.subr.mxu1 %v981_v57  ;;  %2655 = vmatmul.mubr.msk.f32.gmra.mxu1 %vm584_vm11, %v628_v58 }
 0x48f   :  { %2676 = vmatpush3.msra.mxu1 %v981_v57 }
 0x490   :  { %2677 = vmatprep.subr.mxu1 %v980_v0 }
 0x491   :  { %2678 = vmatpush3.msra.mxu1 %v980_v0 }
 0x492   :  { %2685 = vmatprep.subr.mxu1 %v3252_v1 }
 0x50a   :  { %v1106_v28 = vpop.xlane.xlu1 %1105 }
 0x50b   :  { %2920 = vrcp.f32 %v1106_v28 }
 0x50c   :  { %v1103_v47 = vpop.xlane.xlu0 %1102 }
 0x50d   :  { %2922 = vrcp.f32 %v1103_v47 }
 0x50e   :  { %v1112_v59 = vpop.xlane.xlu1 %1111 }
 0x50f   :  { %2924 = vrcp.f32 %v1112_v59 }
 0x510   :  { %v1109_v23 = vpop.xlane.xlu0 %1108 }
 0x511   :  { %2926 = vrcp.f32 %v1109_v23 }
 0x518   :  { %v2921_v60 = vpop.eup %2920 }
 0x519   :  { %v1118_v63 = vmul.f32 %v2921_v60, %v2905_v38 }
 0x51a   :  { %v2923_v61 = vpop.eup %2922 }
 0x51b   :  { %v1117_v62 = vmul.f32 %v2923_v61, %v2907_v39  ;;  %v2217_v61 = vld [vmem:[%s3819_s1 + $0x1f8] sm:$0xff] }
 0x51c   :  { %v2925_v3 = vpop.eup %2924  ;;  %2713 = vmatprep.subr.mxu0 %v2217_v61 }
 0x51d   :  { %2679 = vmatprep.mubr.msk.f32.mxu1 %vm584_vm11, %v1117_v62  ;;  %v1120_v5 = vmul.f32 %v2925_v3, %v2909_v36 }
 0x51e   :  { %v2927_v55 = vpop.eup %2926  ;;  %2680 = vmatmul.mubr.msk.f32.vlgmr.msra.gmra.mxu1 %vm584_vm11, %v1118_v63 }
 0x51f   :  { %2686 = vmatpush3.xpose.msra.mxu1 %v3252_v1  ;;  %v1119_v27 = vmul.f32 %v2927_v55, %v2913_v41  ;;  %v1227_v1 = vmul.f32 %v3240_v56, %v3272_v11 }
 0x520   :  { %2687 = vmatprep.subr.mxu1 %v3256_v4 }
 0x521   :  { %2682 = vmatprep.mubr.msk.f32.mxu1 %vm584_vm11, %v1119_v27 }
 0x522   :  { %2683 = vmatmul.mubr.msk.f32.gmra.mxu1 %vm584_vm11, %v1120_v5 }
 0x523   :  { %2688 = vmatpush3.xpose.msra.mxu1 %v3256_v4  ;;  %2693 = vmatprep.mubr.f32.mxu1 %v1226_v6 }
 0x524   :  { %2689 = vmatprep.subr.mxu1 %v3263_v7 }
 0x527   :  { %2690 = vmatpush3.xpose.msra.mxu1 %v3263_v7 }
 0x528   :  { %2691 = vmatprep.subr.mxu1 %v3267_v9 }
 0x52b   :  { %2692 = vmatpush3.xpose.msra.mxu1 %v3267_v9 }
 0x52e   :  { %2694 = vmatmul.mubr.f32.vlgmr.msra.gmra.mxu1 %v1227_v1 }
 0x52f   :  { %2696 = vmatprep.mubr.f32.mxu1 %v1228_v8 }
 0x532   :  { %2697 = vmatmul.mubr.f32.gmra.mxu1 %v1229_v2  ;;  %v2216_v2 = vld [vmem:[%s3819_s1 + $0x1f0] sm:$0xff] }
 0x54a   :  { %v2653_v4 = vpop.f32.mrf.mxu1 }
 0x54b   :  { %v959_v24 = vadd.f32 %v2653_v4, %v3399_v18 }
 0x54c   :  { %v953_v13 = vpop.f32.mrf.mxu1 }
 0x54d   :  { %v954_v15 = vadd.f32 %v953_v13, %v3402_v21 }
 0x54e   :  { %v2656_v14 = vpop.f32.mrf.mxu1 }
 0x54f   :  { %v969_v10 = vadd.f32 %v2656_v14, %v3406_v30  ;;  %v2215_v14 = vld [vmem:[%s3819_s1 + $0x1e8] sm:$0xff] }
 0x550   :  { %v3458_v7 = vpop.f32.mrf.mxu1 }
 0x5de   :  { %v2681_v9 = vpop.f32.mrf.mxu1 }
 0x5df   :  { %v3462_v11 = vadd.f32 %v2681_v9, %v959_v24  ;;  %v2214_v9 = vld [vmem:[%s3819_s1 + $0x1e0] sm:$0xff] }
 0x5e0   :  { %v1199_v16 = vpop.f32.mrf.mxu1 }
 0x5e1   :  { %v3465_v17 = vadd.f32 %v1199_v16, %v954_v15  ;;  %v2213_v15 = vld [vmem:[%s3819_s1 + $0x1d8] sm:$0xff]  ;;  %v2212_v16 = vld [vmem:[%s3819_s1 + $0x1d0] sm:$0xff] }
 0x5e2   :  { %v2684_v19 = vpop.f32.mrf.mxu1 }
 0x5e3   :  { %v3467_v56 = vadd.f32 %v2684_v19, %v969_v10  ;;  %v2211_v10 = vld [vmem:[%s3819_s1 + $0x1c8] sm:$0xff]  ;;  %v2210_v19 = vld [vmem:[%s3819_s1 + $0x1c0] sm:$0xff] }
 0x5e4   :  { %v3469_v12 = vpop.f32.mrf.mxu1 }
 0x5ee   :  { %v2695_v20 = vpop.f32.mrf.mxu1 }
 0x5ef   :  { %v1320_v22 = vmul.f32 0.35355338, %v2695_v20  ;;  %v2209_v20 = vld [vmem:[%s3819_s1 + $0x1b8] sm:$0xff] }
 0x5f0   :  { %v1300_v25 = vpop.f32.mrf.mxu1 }
 0x5f1   :  { %v1319_v26 = vmul.f32 0.35355338, %v1300_v25  ;;  %v1324_v18 = vadd.f32 %v1320_v22, %v3319_v44  ;;  %v2208_v22 = vld [vmem:[%s3819_s1 + $0x1b0] sm:$0xff]  ;;  %v2207_v25 = vld [vmem:[%s3819_s1 + $0x1a8] sm:$0xff] }
 0x5f2   :  { %v2698_v29 = vpop.f32.mrf.mxu1 }
 0x5f3   :  { %v1322_v21 = vmul.f32 0.35355338, %v2698_v29  ;;  %v1330_v32 = vsel %vm584_vm11, %v1324_v18, -inf  ;;  %v1323_v33 = vadd.f32 %v1319_v26, %v3319_v44  ;;  %v2206_v26 = vld [vmem:[%s3819_s1 + $0x1a0] sm:$0xff]  ;;  %v2204_v29 = vld [vmem:[%s3819_s1 + $0x190] sm:$0xff] }
 0x5f4   :  { %1331 = vmax.xlane.f32.xlu1 %v1330_v32  ;;  %v1310_v30 = vpop.f32.mrf.mxu1  ;;  %v2202_v32 = vld [vmem:[%s3819_s1 + $0x180] sm:$0xff] }
 0x5f5   :  { %v1321_v38 = vmul.f32 0.35355338, %v1310_v30  ;;  %v1327_v35 = vsel %vm584_vm11, %v1323_v33, -inf  ;;  %v1326_v39 = vadd.f32 %v1322_v21, %v3328_v51  ;;  %v2203_v21 = vld [vmem:[%s3819_s1 + $0x188] sm:$0xff] }
 0x5f6   :  { %1328 = vmax.xlane.f32.xlu0 %v1327_v35 }
 0x5f7   :  { %v1336_v40 = vsel %vm584_vm11, %v1326_v39, -inf  ;;  %v1325_v36 = vadd.f32 %v1321_v38, %v3328_v51  ;;  %v964_v38 = vadd.f32 %v3458_v7, %v3409_v34 }
 0x5f8   :  { %1337 = vmax.xlane.f32.xlu1 %v1336_v40 }
 0x5f9   :  { %v1333_v31 = vsel %vm584_vm11, %v1325_v36, -inf }
 0x5fa   :  { %1334 = vmax.xlane.f32.xlu0 %v1333_v31 }
 0x67d   :  { %v1332_v42 = vpop.xlane.xlu1 %1331 }
 0x67e   :  { %v1340_v41 = vsub.f32 %v1324_v18, %v1332_v42  ;;  %v2205_v18 = vld [vmem:[%s3819_s1 + $0x198] sm:$0xff] }
 0x67f   :  { %v1329_v43 = vpop.xlane.xlu0 %1328 }
 0x680   :  { %v1345_v44 = vmul.f32 1.442695, %v1340_v41  ;;  %v1339_v45 = vsub.f32 %v1323_v33, %v1329_v43  ;;  %v2273_v43 = vld [vmem:[%s3820_s2 + $0x3] ss:$0 sm:$0xff] }
 0x681   :  { %v1338_v37 = vpop.xlane.xlu1 %1337 }
 0x682   :  { %2928 = vpow2.f32 %v1345_v44  ;;  %v1343_v46 = vmul.f32 1.442695, %v1339_v45  ;;  %v1342_v48 = vsub.f32 %v1326_v39, %v1338_v37 }
 0x683   :  { %v1335_v49 = vpop.xlane.xlu0 %1334 }
 0x684   :  { %2930 = vpow2.f32 %v1343_v46  ;;  %v1349_v50 = vmul.f32 1.442695, %v1342_v48  ;;  %v1341_v52 = vsub.f32 %v1325_v36, %v1335_v49  ;;  %v1220_v36 = vadd.f32 %v3469_v12, %v964_v38  ;;  %v2247_v38 = vld [vmem:[%s3819_s1 + $0x2e8] sm:$0xff] }
 0x686   :  { %2932 = vpow2.f32 %v1349_v50  ;;  %v1347_v57 = vmul.f32 1.442695, %v1341_v52  ;;  %v2972_v50 = vld [vmem:[%s3818_s0 + $0x18] sm:$0xff] }
 0x688   :  { %2934 = vpow2.f32 %v1347_v57  ;;  %v2973_v57 = vld [vmem:[%s3818_s0 + $0x10] sm:$0xff] }
 0x68f   :  { %v2929_v51 = vpop.eup %2928 }
 0x690   :  { %v1354_v58 = vsel %vm584_vm11, %v2929_v51, 0.0 }
 0x691   :  { %v2931_v0 = vpop.eup %2930  ;;  %1355 = vadd.xlane.f32.xlu1 %v1354_v58  ;;  %v2233_v58 = vld [vmem:[%s3819_s1 + $0x278] sm:$0xff] }
 0x692   :  { %v1351_v28 = vsel %vm584_vm11, %v2931_v0, 0.0  ;;  %2751 = vmatprep.subr.mxu1 %v2233_v58 }
 0x693   :  { %v2933_v47 = vpop.eup %2932  ;;  %1352 = vadd.xlane.f32.xlu0 %v1351_v28  ;;  %2752 = vmatpush3.msra.mxu1 %v2233_v58  ;;  %v2231_v28 = vld [vmem:[%s3819_s1 + $0x268] sm:$0xff] }
 0x694   :  { %v1360_v59 = vsel %vm584_vm11, %v2933_v47, 0.0 }
 0x695   :  { %v2935_v23 = vpop.eup %2934  ;;  %1361 = vadd.xlane.f32.xlu1 %v1360_v59 }
 0x696   :  { %v1357_v60 = vsel %vm584_vm11, %v2935_v23, 0.0 }
 0x697   :  { %1358 = vadd.xlane.f32.xlu0 %v1357_v60 }
 0x71a   :  { %v1356_v62 = vpop.xlane.xlu1 %1355 }
 0x71b   :  { %2936 = vrcp.f32 %v1356_v62 }
 0x71c   :  { %v1353_v63 = vpop.xlane.xlu0 %1352 }
 0x71d   :  { %2938 = vrcp.f32 %v1353_v63 }
 0x71e   :  { %v1362_v3 = vpop.xlane.xlu1 %1361 }
 0x71f   :  { %2940 = vrcp.f32 %v1362_v3 }
 0x720   :  { %v1359_v55 = vpop.xlane.xlu0 %1358 }
 0x721   :  { %2942 = vrcp.f32 %v1359_v55 }
 0x728   :  { %v2937_v27 = vpop.eup %2936 }
 0x729   :  { %v1368_v1 = vmul.f32 %v2937_v27, %v2929_v51 }
 0x72a   :  { %v2939_v5 = vpop.eup %2938 }
 0x72b   :  { %v1367_v6 = vmul.f32 %v2939_v5, %v2931_v0  ;;  %v2232_v0 = vld [vmem:[%s3819_s1 + $0x270] sm:$0xff] }
 0x72c   :  { %v2941_v8 = vpop.eup %2940  ;;  %2753 = vmatprep.subr.mxu1 %v2232_v0 }
 0x72d   :  { %2707 = vmatprep.mubr.msk.f32.mxu0 %vm584_vm11, %v1367_v6  ;;  %v1370_v24 = vmul.f32 %v2941_v8, %v2933_v47  ;;  %2754 = vmatpush3.msra.mxu1 %v2232_v0 }
 0x72e   :  { %v2943_v4 = vpop.eup %2942  ;;  %2708 = vmatmul.mubr.msk.f32.vlgmr.msra.gmra.mxu0 %vm584_vm11, %v1368_v1  ;;  %2755 = vmatprep.subr.mxu1 %v2231_v28 }
 0x72f   :  { %v1369_v13 = vmul.f32 %v2943_v4, %v2935_v23  ;;  %2714 = vmatpush3.msra.mxu0 %v2217_v61  ;;  %2756 = vmatpush3.msra.mxu1 %v2231_v28  ;;  %v3568_v23 = vsel %vm48_vm1, 1.0, %v3018_v54 }
 0x730   :  { %2715 = vmatprep.subr.mxu0 %v2216_v2 }
 0x731   :  { %2710 = vmatprep.mubr.msk.f32.mxu0 %vm584_vm11, %v1369_v13  ;;  %2716 = vmatpush3.msra.mxu0 %v2216_v2 }
 0x732   :  { %2711 = vmatmul.mubr.msk.f32.gmra.mxu0 %vm584_vm11, %v1370_v24  ;;  %2717 = vmatprep.subr.mxu0 %v2215_v14 }
 0x733   :  { %2718 = vmatpush3.msra.mxu0 %v2215_v14 }
 0x734   :  { %2719 = vmatprep.subr.mxu0 %v2214_v9 }
 0x735   :  { %2720 = vmatpush3.msra.mxu0 %v2214_v9  ;;  %v2230_v9 = vld [vmem:[%s3819_s1 + $0x260] sm:$0xff] }
 0x736   :  { %2721 = vmatprep.subr.mxu0 %v2213_v15  ;;  %2757 = vmatprep.subr.mxu1 %v2230_v9 }
 0x737   :  { %2722 = vmatpush3.msra.mxu0 %v2213_v15  ;;  %2758 = vmatpush3.msra.mxu1 %v2230_v9  ;;  %v2229_v15 = vld [vmem:[%s3819_s1 + $0x258] sm:$0xff] }
 0x738   :  { %2723 = vmatprep.subr.mxu0 %v2212_v16  ;;  %2759 = vmatprep.subr.mxu1 %v2229_v15 }
 0x739   :  { %2724 = vmatpush3.msra.mxu0 %v2212_v16  ;;  %2760 = vmatpush3.msra.mxu1 %v2229_v15  ;;  %v2228_v16 = vld [vmem:[%s3819_s1 + $0x250] sm:$0xff] }
 0x73a   :  { %2725 = vmatprep.subr.mxu0 %v2211_v10  ;;  %2761 = vmatprep.subr.mxu1 %v2228_v16 }
 0x73b   :  { %2726 = vmatpush3.msra.mxu0 %v2211_v10  ;;  %2762 = vmatpush3.msra.mxu1 %v2228_v16  ;;  %v2227_v10 = vld [vmem:[%s3819_s1 + $0x248] sm:$0xff] }
 0x73c   :  { %2727 = vmatprep.subr.mxu0 %v2210_v19  ;;  %2763 = vmatprep.subr.mxu1 %v2227_v10 }
 0x73d   :  { %2728 = vmatpush3.msra.mxu0 %v2210_v19  ;;  %2764 = vmatpush3.msra.mxu1 %v2227_v10  ;;  %v2226_v19 = vld [vmem:[%s3819_s1 + $0x240] sm:$0xff] }
 0x73e   :  { %2729 = vmatprep.subr.mxu0 %v2209_v20  ;;  %2765 = vmatprep.subr.mxu1 %v2226_v19 }
 0x73f   :  { %2730 = vmatpush3.msra.mxu0 %v2209_v20  ;;  %2766 = vmatpush3.msra.mxu1 %v2226_v19  ;;  %v2225_v20 = vld [vmem:[%s3819_s1 + $0x238] sm:$0xff] }
 0x740   :  { %2731 = vmatprep.subr.mxu0 %v2208_v22  ;;  %2767 = vmatprep.subr.mxu1 %v2225_v20 }
 0x741   :  { %2732 = vmatpush3.msra.mxu0 %v2208_v22  ;;  %2768 = vmatpush3.msra.mxu1 %v2225_v20  ;;  %v2224_v22 = vld [vmem:[%s3819_s1 + $0x230] sm:$0xff] }
 0x742   :  { %2733 = vmatprep.subr.mxu0 %v2207_v25  ;;  %2769 = vmatprep.subr.mxu1 %v2224_v22 }
 0x743   :  { %2734 = vmatpush3.msra.mxu0 %v2207_v25  ;;  %2770 = vmatpush3.msra.mxu1 %v2224_v22  ;;  %v2223_v25 = vld [vmem:[%s3819_s1 + $0x228] sm:$0xff] }
 0x744   :  { %2735 = vmatprep.subr.mxu0 %v2206_v26  ;;  %2771 = vmatprep.subr.mxu1 %v2223_v25 }
 0x745   :  { %2736 = vmatpush3.msra.mxu0 %v2206_v26  ;;  %2772 = vmatpush3.msra.mxu1 %v2223_v25  ;;  %v2222_v26 = vld [vmem:[%s3819_s1 + $0x220] sm:$0xff] }
 0x746   :  { %2737 = vmatprep.subr.mxu0 %v2205_v18  ;;  %2773 = vmatprep.subr.mxu1 %v2222_v26 }
 0x747   :  { %2738 = vmatpush3.msra.mxu0 %v2205_v18  ;;  %v2221_v18 = vld [vmem:[%s3819_s1 + $0x218] sm:$0xff]  ;;  %2774 = vmatpush3.msra.mxu1 %v2222_v26 }
 0x748   :  { %2739 = vmatprep.subr.mxu0 %v2204_v29  ;;  %2775 = vmatprep.subr.mxu1 %v2221_v18 }
 0x749   :  { %2740 = vmatpush3.msra.mxu0 %v2204_v29  ;;  %v2220_v29 = vld [vmem:[%s3819_s1 + $0x210] sm:$0xff]  ;;  %2776 = vmatpush3.msra.mxu1 %v2221_v18  ;;  %v2277_v18 = vld [vmem:[%s3820_s2 + $0x5] ss:$0 sm:$0xff] }
 0x74a   :  { %2741 = vmatprep.subr.mxu0 %v2203_v21  ;;  %2777 = vmatprep.subr.mxu1 %v2220_v29 }
 0x74b   :  { %2742 = vmatpush3.msra.mxu0 %v2203_v21  ;;  %v2219_v21 = vld [vmem:[%s3819_s1 + $0x208] sm:$0xff]  ;;  %2778 = vmatpush3.msra.mxu1 %v2220_v29 }
 0x74c   :  { %2743 = vmatprep.subr.mxu0 %v2202_v32  ;;  %2779 = vmatprep.subr.mxu1 %v2219_v21 }
 0x74d   :  { %2744 = vmatpush3.msra.mxu0 %v2202_v32  ;;  %v2218_v32 = vld [vmem:[%s3819_s1 + $0x200] sm:$0xff]  ;;  %2780 = vmatpush3.msra.mxu1 %v2219_v21 }
 0x74e   :  { %2781 = vmatprep.subr.mxu1 %v2218_v32 }
 0x74f   :  { %2782 = vmatpush3.msra.mxu1 %v2218_v32 }
 0x7ee   :  { %v2709_v33 = vpop.f32.mrf.mxu0 }
 0x7ef   :  { %v1469_v39 = vadd.f32 %v2709_v33, %v3462_v11  ;;  %v2970_v11 = vld [vmem:[%s3818_s0 + $0x8] sm:$0xff]  ;;  %v2249_v33 = vld [vmem:[%s3819_s1 + $0x2f8] sm:$0xff] }
 0x7f0   :  { %v1449_v30 = vpop.f32.mrf.mxu0  ;;  %2789 = vmatprep.subr.mxu0 %v2249_v33 }
 0x7f1   :  { %v1468_v35 = vadd.f32 %v1449_v30, %v3465_v17  ;;  %v2248_v30 = vld [vmem:[%s3819_s1 + $0x2f0] sm:$0xff] }
 0x7f2   :  { %v2712_v40 = vpop.f32.mrf.mxu0 }
 0x7f3   :  { %2745 = vmatprep.mubr.f32.mxu0 %v1468_v35  ;;  %v1471_v41 = vadd.f32 %v2712_v40, %v3467_v56  ;;  %v2971_v56 = vld [vmem:[%s3818_s0] sm:$0xff]  ;;  %v2244_v40 = vld [vmem:[%s3819_s1 + $0x2d0] sm:$0xff] }
 0x7f4   :  { %v1459_v31 = vpop.f32.mrf.mxu0  ;;  %2746 = vmatmul.mubr.f32.vlgmr.msra.gmra.mxu0 %v1469_v39  ;;  %v2246_v35 = vld [vmem:[%s3819_s1 + $0x2e0] sm:$0xff]  ;;  %v2245_v39 = vld [vmem:[%s3819_s1 + $0x2d8] sm:$0xff] }
 0x7f5   :  { %v1470_v42 = vadd.f32 %v1459_v31, %v1220_v36  ;;  %2790 = vmatpush3.msra.mxu0 %v2249_v33  ;;  %v2243_v36 = vld [vmem:[%s3819_s1 + $0x2c8] sm:$0xff]  ;;  %v2242_v31 = vld [vmem:[%s3819_s1 + $0x2c0] sm:$0xff] }
 0x7f6   :  { %2791 = vmatprep.subr.mxu0 %v2248_v30 }
 0x7f7   :  { %2748 = vmatprep.mubr.f32.mxu0 %v1470_v42  ;;  %2792 = vmatpush3.msra.mxu0 %v2248_v30  ;;  %v2241_v42 = vld [vmem:[%s3819_s1 + $0x2b8] sm:$0xff] }
 0x7f8   :  { %2749 = vmatmul.mubr.f32.gmra.mxu0 %v1471_v41  ;;  %2793 = vmatprep.subr.mxu0 %v2247_v38  ;;  %v2240_v41 = vld [vmem:[%s3819_s1 + $0x2b0] sm:$0xff] }
 0x7f9   :  { %2794 = vmatpush3.msra.mxu0 %v2247_v38 }
 0x7fa   :  { %2795 = vmatprep.subr.mxu0 %v2246_v35 }
 0x7fb   :  { %2796 = vmatpush3.msra.mxu0 %v2246_v35 }
 0x7fc   :  { %2797 = vmatprep.subr.mxu0 %v2245_v39 }
 0x7fd   :  { %2798 = vmatpush3.msra.mxu0 %v2245_v39 }
 0x7fe   :  { %2799 = vmatprep.subr.mxu0 %v2244_v40 }
 0x7ff   :  { %2800 = vmatpush3.msra.mxu0 %v2244_v40 }
 0x800   :  { %2801 = vmatprep.subr.mxu0 %v2243_v36 }
 0x801   :  { %2802 = vmatpush3.msra.mxu0 %v2243_v36 }
 0x802   :  { %2803 = vmatprep.subr.mxu0 %v2242_v31 }
 0x803   :  { %2804 = vmatpush3.msra.mxu0 %v2242_v31 }
 0x804   :  { %2805 = vmatprep.subr.mxu0 %v2241_v42 }
 0x805   :  { %2806 = vmatpush3.msra.mxu0 %v2241_v42 }
 0x806   :  { %2807 = vmatprep.subr.mxu0 %v2240_v41 }
 0x807   :  { %2808 = vmatpush3.msra.mxu0 %v2240_v41 }
 0x8b4   :  { %v2747_v34 = vpop.f32.mrf.mxu0 }
 0x8b5   :  { %v1548_v7 = vadd.f32 %v2747_v34, %v2273_v43  ;;  %v2238_v34 = vld [vmem:[%s3819_s1 + $0x2a0] sm:$0xff] }
 0x8b6   :  { %v1542_v17 = vpop.f32.mrf.mxu0 }
 0x8b7   :  { %v1543_v44 = vadd.f32 %v2273_v43, %v1542_v17  ;;  %v1562_v12 = vadd.f32 %v2970_v11, %v1548_v7 }
 0x8b8   :  { %v2750_v45 = vpop.f32.mrf.mxu0 }
 0x8b9   :  { %v1558_v37 = vadd.f32 %v2750_v45, %v2273_v43  ;;  %1567 = vadd.xlane.f32.xlu1 %v1562_v12  ;;  %v1561_v46 = vadd.f32 %v2971_v56, %v1543_v44 }
 0x8ba   :  { %v1552_v48 = vpop.f32.mrf.mxu0 }
 0x8bb   :  { %v1553_v49 = vadd.f32 %v2273_v43, %v1552_v48  ;;  %1565 = vadd.xlane.f32.xlu0 %v1561_v46  ;;  %v1564_v52 = vadd.f32 %v2972_v50, %v1558_v37  ;;  %v2239_v43 = vld [vmem:[%s3819_s1 + $0x2a8] sm:$0xff] }
 0x8bc   :  { %2809 = vmatprep.subr.mxu0 %v2239_v43 }
 0x8bd   :  { %1571 = vadd.xlane.f32.xlu1 %v1564_v52  ;;  %v1563_v51 = vadd.f32 %v2973_v57, %v1553_v49  ;;  %2810 = vmatpush3.msra.mxu0 %v2239_v43 }
 0x8be   :  { %2811 = vmatprep.subr.mxu0 %v2238_v34 }
 0x8bf   :  { %1569 = vadd.xlane.f32.xlu0 %v1563_v51  ;;  %2812 = vmatpush3.msra.mxu0 %v2238_v34 }
 0x942   :  { %v1568_v47 = vpop.xlane.xlu1 %1567 }
 0x943   :  { %v1574_v59 = vmul.f32 0.03125, %v1568_v47 }
 0x944   :  { %v1566_v60 = vpop.xlane.xlu0 %1565 }
 0x945   :  { %v1578_v61 = vsub.f32 %v1562_v12, %v1574_v59  ;;  %v1573_v62 = vmul.f32 0.03125, %v1566_v60  ;;  %v2275_v59 = vld [vmem:[%s3820_s2 + $0x7] ss:$0 sm:$0xff] }
 0x946   :  { %v1572_v63 = vpop.xlane.xlu1 %1571 }
 0x947   :  { %v1577_v3 = vsub.f32 %v1561_v46, %v1573_v62  ;;  %v1576_v55 = vmul.f32 0.03125, %v1572_v63  ;;  %v3571_v27 = vmul.f32 %v3568_v23, %v1578_v61 }
 0x948   :  { %v1570_v5 = vpop.xlane.xlu0 %1569 }
 0x949   :  { %v1580_v6 = vsub.f32 %v1564_v52, %v1576_v55  ;;  %v1575_v1 = vmul.f32 0.03125, %v1570_v5  ;;  %v1586_v8 = vmul.f32 %v3571_v27, %v3571_v27  ;;  %v3576_v2 = vmul.f32 %v3568_v23, %v1577_v3 }
 0x94b   :  { %v1579_v53 = vsub.f32 %v1563_v51, %v1575_v1  ;;  %1591 = vadd.xlane.f32.xlu1 %v1586_v8  ;;  %v1585_v54 = vmul.f32 %v3576_v2, %v3576_v2  ;;  %v3581_v4 = vmul.f32 %v3568_v23, %v1580_v6  ;;  %v2274_v51 = vld [vmem:[%s3820_s2 + $0x6] ss:$0 sm:$0xff]  ;;  %v2237_v8 = vld [vmem:[%s3819_s1 + $0x298] sm:$0xff] }
 0x94c   :  { %2813 = vmatprep.subr.mxu0 %v2237_v8 }
 0x94d   :  { %1589 = vadd.xlane.f32.xlu0 %v1585_v54  ;;  %v1588_v13 = vmul.f32 %v3581_v4, %v3581_v4  ;;  %v3586_v14 = vmul.f32 %v3568_v23, %v1579_v53  ;;  %2814 = vmatpush3.msra.mxu0 %v2237_v8  ;;  %v2235_v53 = vld [vmem:[%s3819_s1 + $0x288] sm:$0xff]  ;;  %v2234_v54 = vld [vmem:[%s3819_s1 + $0x280] sm:$0xff] }
 0x94e   :  { %v2278_v8 = vld [vmem:[%s3820_s2 + $0x8] ss:$0 sm:$0xff] }
 0x94f   :  { %1595 = vadd.xlane.f32.xlu1 %v1588_v13  ;;  %v1587_v24 = vmul.f32 %v3586_v14, %v3586_v14 }
 0x951   :  { %1593 = vadd.xlane.f32.xlu0 %v1587_v24 }
 0x9d4   :  { %v1592_v7 = vpop.xlane.xlu1 %1591 }
 0x9d5   :  { %v1598_v17 = vmul.f32 0.03125, %v1592_v7 }
 0x9d6   :  { %v1590_v44 = vpop.xlane.xlu0 %1589 }
 0x9d7   :  { %v1602_v11 = vadd.f32 1e-05, %v1598_v17  ;;  %v1597_v12 = vmul.f32 0.03125, %v1590_v44 }
 0x9d8   :  { %v1596_v45 = vpop.xlane.xlu1 %1595 }
 0x9d9   :  { %2944 = vrsqrt.f32 %v1602_v11  ;;  %v1601_v37 = vadd.f32 1e-05, %v1597_v12  ;;  %v1600_v56 = vmul.f32 0.03125, %v1596_v45 }
 0x9da   :  { %v1594_v46 = vpop.xlane.xlu0 %1593 }
 0x9db   :  { %2946 = vrsqrt.f32 %v1601_v37  ;;  %v1604_v48 = vadd.f32 1e-05, %v1600_v56  ;;  %v1599_v49 = vmul.f32 0.03125, %v1594_v46 }
 0x9dd   :  { %2948 = vrsqrt.f32 %v1604_v48  ;;  %v1603_v50 = vadd.f32 1e-05, %v1599_v49 }
 0x9df   :  { %2950 = vrsqrt.f32 %v1603_v50 }
 0x9e6   :  { %v2945_v52 = vpop.eup %2944 }
 0x9e7   :  { %v1610_v57 = vmul.f32 %v2945_v52, %v3571_v27 }
 0x9e8   :  { %v2947_v58 = vpop.eup %2946 }
 0x9e9   :  { %v1609_v0 = vmul.f32 %v2947_v58, %v3576_v2  ;;  %v1618_v47 = vmul.f32 %v2274_v51, %v1610_v57  ;;  %v2236_v2 = vld [vmem:[%s3819_s1 + $0x290] sm:$0xff] }
 0x9ea   :  { %v2949_v28 = vpop.eup %2948  ;;  %2815 = vmatprep.subr.mxu0 %v2236_v2 }
 0x9eb   :  { %v1617_v60 = vmul.f32 %v2274_v51, %v1609_v0  ;;  %v1612_v61 = vmul.f32 %v2949_v28, %v3581_v4  ;;  %v1626_v55 = vadd.f32 %v2275_v59, %v1618_v47  ;;  %2816 = vmatpush3.msra.mxu0 %v2236_v2  ;;  %v2276_v4 = vld [vmem:[%s3820_s2 + $0x4] ss:$0 sm:$0xff] }
 0x9ec   :  { %v2951_v62 = vpop.eup %2950  ;;  %2817 = vmatprep.subr.mxu0 %v2235_v53 }
 0x9ed   :  { %v1625_v63 = vadd.f32 %v2275_v59, %v1617_v60  ;;  %v1611_v3 = vmul.f32 %v2951_v62, %v3586_v14  ;;  %v1620_v27 = vmul.f32 %v2274_v51, %v1612_v61  ;;  %2818 = vmatpush3.msra.mxu0 %v2235_v53 }
 0x9ee   :  { %2819 = vmatprep.subr.mxu0 %v2234_v54 }
 0x9ef   :  { %2783 = vmatprep.mubr.f32.mxu1 %v1625_v63  ;;  %v1619_v5 = vmul.f32 %v2274_v51, %v1611_v3  ;;  %v1628_v1 = vadd.f32 %v2275_v59, %v1620_v27  ;;  %2820 = vmatpush3.msra.mxu0 %v2234_v54  ;;  %v2279_v54 = vld [vmem:[%s3820_s2 + $0x9] ss:$0 sm:$0xff] }
 0x9f0   :  { %2784 = vmatmul.mubr.f32.vlgmr.msra.gmra.mxu1 %v1626_v55 }
 0x9f1   :  { %v1627_v6 = vadd.f32 %v2275_v59, %v1619_v5 }
 0x9f3   :  { %2786 = vmatprep.mubr.f32.mxu1 %v1627_v6 }
 0x9f4   :  { %2787 = vmatmul.mubr.f32.gmra.mxu1 %v1628_v1 }
 0xab0   :  { %v2785_v13 = vpop.f32.mrf.mxu1 }
 0xab1   :  { %v1705_v14 = vadd.f32 %v2785_v13, %v2276_v4 }
 0xab2   :  { %v1699_v24 = vpop.f32.mrf.mxu1 }
 0xab3   :  { %v1700_v9 = vadd.f32 %v2276_v4, %v1699_v24  ;;  %v1719_v10 = vmax.f32 %v1705_v14, 0.0 }
 0xab4   :  { %v2788_v15 = vpop.f32.mrf.mxu1 }
 0xab5   :  { %v1718_v16 = vmax.f32 %v1700_v9, 0.0  ;;  %v1715_v19 = vadd.f32 %v2788_v15, %v2276_v4 }
 0xab6   :  { %v1709_v20 = vpop.f32.mrf.mxu1 }
 0xab7   :  { %v1710_v22 = vadd.f32 %v2276_v4, %v1709_v20  ;;  %2821 = vmatprep.mubr.f32.mxu0 %v1718_v16  ;;  %v1721_v26 = vmax.f32 %v1715_v19, 0.0 }
 0xab8   :  { %2822 = vmatmul.mubr.f32.vlgmr.msra.gmra.mxu0 %v1719_v10 }
 0xab9   :  { %v1720_v25 = vmax.f32 %v1710_v22, 0.0 }
 0xabb   :  { %2824 = vmatprep.mubr.f32.mxu0 %v1720_v25 }
 0xabc   :  { %2825 = vmatmul.mubr.f32.gmra.mxu0 %v1721_v26 }
 0xb78   :  { %v2823_v29 = vpop.f32.mrf.mxu0 }
 0xb79   :  { %v1798_v21 = vadd.f32 %v2823_v29, %v2277_v18  ;;  %v1966_v29 = vld [vmem:[%s3822_s4 + $0x70] sm:$0xff] }
 0xb7a   :  { %v1792_v32 = vpop.f32.mrf.mxu0 }
 0xb7b   :  { %v1793_v33 = vadd.f32 %v2277_v18, %v1792_v32  ;;  %v1812_v30 = vadd.f32 %v1798_v21, %v1626_v55  ;;  %v1965_v21 = vld [vmem:[%s3822_s4 + $0x68] sm:$0xff] }
 0xb7c   :  { %v2826_v38 = vpop.f32.mrf.mxu0 }
 0xb7d   :  { %v1808_v35 = vadd.f32 %v2826_v38, %v2277_v18  ;;  %1817 = vadd.xlane.f32.xlu1 %v1812_v30  ;;  %v1811_v39 = vadd.f32 %v1793_v33, %v1625_v63 }
 0xb7e   :  { %v1802_v40 = vpop.f32.mrf.mxu0 }
 0xb7f   :  { %v1803_v36 = vadd.f32 %v2277_v18, %v1802_v40  ;;  %1815 = vadd.xlane.f32.xlu0 %v1811_v39  ;;  %v1814_v31 = vadd.f32 %v1808_v35, %v1628_v1  ;;  %v1967_v18 = vld [vmem:[%s3822_s4 + $0x78] sm:$0xff] }
 0xb80   :  { %2827 = vmatprep.subr.mxu1 %v1967_v18 }
 0xb81   :  { %1821 = vadd.xlane.f32.xlu1 %v1814_v31  ;;  %v1813_v42 = vadd.f32 %v1803_v36, %v1627_v6  ;;  %2828 = vmatpush3.msra.mxu1 %v1967_v18 }
 0xb82   :  { %2829 = vmatprep.subr.mxu1 %v1966_v29 }
 0xb83   :  { %1819 = vadd.xlane.f32.xlu0 %v1813_v42  ;;  %2830 = vmatpush3.msra.mxu1 %v1966_v29 }
 0xb84   :  { %2831 = vmatprep.subr.mxu1 %v1965_v21 }
 0xb85   :  { %2832 = vmatpush3.msra.mxu1 %v1965_v21 }
 0xc06   :  { %v1818_v41 = vpop.xlane.xlu1 %1817 }
 0xc07   :  { %v1824_v43 = vmul.f32 0.03125, %v1818_v41 }
 0xc08   :  { %v1816_v34 = vpop.xlane.xlu0 %1815 }
 0xc09   :  { %v1828_v7 = vsub.f32 %v1812_v30, %v1824_v43  ;;  %v1823_v17 = vmul.f32 0.03125, %v1816_v34 }
 0xc0a   :  { %v1822_v44 = vpop.xlane.xlu1 %1821 }
 0xc0b   :  { %v1827_v11 = vsub.f32 %v1811_v39, %v1823_v17  ;;  %v1826_v12 = vmul.f32 0.03125, %v1822_v44  ;;  %v1832_v45 = vmul.f32 %v3568_v23, %v1828_v7 }
 0xc0c   :  { %v1820_v37 = vpop.xlane.xlu0 %1819 }
 0xc0d   :  { %v1830_v56 = vsub.f32 %v1814_v31, %v1826_v12  ;;  %v1825_v46 = vmul.f32 0.03125, %v1820_v37  ;;  %v1836_v48 = vmul.f32 %v1832_v45, %v1832_v45  ;;  %v1831_v49 = vmul.f32 %v3568_v23, %v1827_v11 }
 0xc0f   :  { %v1829_v50 = vsub.f32 %v1813_v42, %v1825_v46  ;;  %1841 = vadd.xlane.f32.xlu1 %v1836_v48  ;;  %v1835_v52 = vmul.f32 %v1831_v49, %v1831_v49  ;;  %v1834_v57 = vmul.f32 %v3568_v23, %v1830_v56  ;;  %v1964_v56 = vld [vmem:[%s3822_s4 + $0x60] sm:$0xff]  ;;  %v1963_v46 = vld [vmem:[%s3822_s4 + $0x58] sm:$0xff]  ;;  %v1961_v48 = vld [vmem:[%s3822_s4 + $0x48] sm:$0xff] }
 0xc10   :  { %2833 = vmatprep.subr.mxu1 %v1964_v56 }
 0xc11   :  { %1839 = vadd.xlane.f32.xlu0 %v1835_v52  ;;  %v1838_v51 = vmul.f32 %v1834_v57, %v1834_v57  ;;  %v1833_v58 = vmul.f32 %v3568_v23, %v1829_v50  ;;  %2834 = vmatpush3.msra.mxu1 %v1964_v56  ;;  %v1959_v50 = vld [vmem:[%s3822_s4 + $0x38] sm:$0xff]  ;;  %v1958_v52 = vld [vmem:[%s3822_s4 + $0x30] sm:$0xff] }
 0xc12   :  { %2835 = vmatprep.subr.mxu1 %v1963_v46 }
 0xc13   :  { %1845 = vadd.xlane.f32.xlu1 %v1838_v51  ;;  %v1837_v0 = vmul.f32 %v1833_v58, %v1833_v58  ;;  %2836 = vmatpush3.msra.mxu1 %v1963_v46  ;;  %v1956_v51 = vld [vmem:[%s3822_s4 + $0x20] sm:$0xff]  ;;  %v2065_v46 = vld [vmem:[%s3823_s5 + $0x18] sm:$0xff] }
 0xc15   :  { %1843 = vadd.xlane.f32.xlu0 %v1837_v0  ;;  %v1954_v0 = vld [vmem:[%s3822_s4 + $0x10] sm:$0xff] }
 0xc98   :  { %v1842_v28 = vpop.xlane.xlu1 %1841 }
 0xc99   :  { %v1848_v47 = vmul.f32 0.03125, %v1842_v28  ;;  %v1953_v28 = vld [vmem:[%s3822_s4 + $0x8] sm:$0xff] }
 0xc9a   :  { %v1840_v59 = vpop.xlane.xlu0 %1839 }
 0xc9b   :  { %v1852_v60 = vadd.f32 1e-05, %v1848_v47  ;;  %v1847_v61 = vmul.f32 0.03125, %v1840_v59  ;;  %v1952_v47 = vld [vmem:[%s3822_s4] sm:$0xff]  ;;  %v2075_v59 = vld [vmem:[%s3824_s6 + $0x8] sm:$0xff] }
 0xc9c   :  { %v1846_v62 = vpop.xlane.xlu1 %1845 }
 0xc9d   :  { %2952 = vrsqrt.f32 %v1852_v60  ;;  %v1851_v63 = vadd.f32 1e-05, %v1847_v61  ;;  %v1850_v3 = vmul.f32 0.03125, %v1846_v62  ;;  %v3020_v60 = vmov 0   ;;  %v2074_v62 = vld [vmem:[%s3824_s6] sm:$0xff] }
 0xc9e   :  { %v1844_v55 = vpop.xlane.xlu0 %1843  ;;  %2879 = vset.pattern.permute.xlu1 %v3020_v60  ;;  %v2116_v61 = vsel %vm2114_vm12, %v2075_v59, 0.0  ;;  %2878 = vset.pattern.permute.xlu0 %v3020_v60 }
 0xc9f   :  { %2954 = vrsqrt.f32 %v1851_v63  ;;  %v1854_v27 = vadd.f32 1e-05, %v1850_v3  ;;  %v1849_v5 = vmul.f32 0.03125, %v1844_v55  ;;  %v2115_v63 = vsel %vm2114_vm12, %v2074_v62, 0.0  ;;  %v2076_v3 = vld [vmem:[%s3824_s6 + $0x10] sm:$0xff] }
 0xca0   :  { %v2117_v55 = vadd.f32 %v2116_v61, %v2115_v63 }
 0xca1   :  { %2956 = vrsqrt.f32 %v1854_v27  ;;  %v1853_v6 = vadd.f32 1e-05, %v1849_v5  ;;  %v2077_v27 = vld [vmem:[%s3824_s6 + $0x18] sm:$0xff] }
 0xca3   :  { %2958 = vrsqrt.f32 %v1853_v6 }
 0xcaa   :  { %v2953_v1 = vpop.eup %2952 }
 0xcab   :  { %v1860_v2 = vmul.f32 %v2953_v1, %v1832_v45 }
 0xcac   :  { %v2955_v53 = vpop.eup %2954 }
 0xcad   :  { %v1868_v4 = vmul.f32 %v2278_v8, %v1860_v2  ;;  %v1859_v13 = vmul.f32 %v2955_v53, %v1831_v49  ;;  %v1960_v49 = vld [vmem:[%s3822_s4 + $0x40] sm:$0xff] }
 0xcae   :  { %v2957_v14 = vpop.eup %2956 }
 0xcaf   :  { %v1876_v24 = vadd.f32 %v2279_v54, %v1868_v4  ;;  %v1867_v9 = vmul.f32 %v2278_v8, %v1859_v13  ;;  %v1862_v15 = vmul.f32 %v2957_v14, %v1834_v57  ;;  %v1957_v57 = vld [vmem:[%s3822_s4 + $0x28] sm:$0xff] }
 0xcb0   :  { %v2959_v16 = vpop.eup %2958 }
 0xcb1   :  { %1890 = vadd.xlane.f32.xlu1 %v1876_v24  ;;  %v1875_v10 = vadd.f32 %v2279_v54, %v1867_v9  ;;  %v1870_v19 = vmul.f32 %v2278_v8, %v1862_v15  ;;  %v1861_v20 = vmul.f32 %v2959_v16, %v1833_v58  ;;  %v1955_v58 = vld [vmem:[%s3822_s4 + $0x18] sm:$0xff] }
 0xcb3   :  { %1888 = vadd.xlane.f32.xlu0 %v1875_v10  ;;  %v1878_v22 = vadd.f32 %v2279_v54, %v1870_v19  ;;  %v1869_v25 = vmul.f32 %v2278_v8, %v1861_v20 }
 0xcb5   :  { %1894 = vadd.xlane.f32.xlu1 %v1878_v22  ;;  %v1877_v26 = vadd.f32 %v2279_v54, %v1869_v25 }
 0xcb7   :  { %1892 = vadd.xlane.f32.xlu0 %v1877_v26 }
 0xd3a   :  { %v1891_v32 = vpop.xlane.xlu1 %1890 }
 0xd3b   :  { %v1897_v33 = vmul.f32 0.03125, %v1891_v32 }
 0xd3c   :  { %v1889_v30 = vpop.xlane.xlu0 %1888 }
 0xd3d   :  { %v1901_v38 = vsub.f32 %v1876_v24, %v1897_v33  ;;  %v1896_v35 = vmul.f32 0.03125, %v1889_v30 }
 0xd3e   :  { %v1895_v39 = vpop.xlane.xlu1 %1894 }
 0xd3f   :  { %v1900_v40 = vsub.f32 %v1875_v10, %v1896_v35  ;;  %v1899_v36 = vmul.f32 0.03125, %v1895_v39  ;;  %v3713_v31 = vmul.f32 %v3568_v23, %v1901_v38  ;;  %v2280_v10 = vld [vmem:[%s3821_s3] ss:$0 sm:$0xff] }
 0xd40   :  { %v1893_v42 = vpop.xlane.xlu0 %1892 }
 0xd41   :  { %v1903_v41 = vsub.f32 %v1878_v22, %v1899_v36  ;;  %v1898_v43 = vmul.f32 0.03125, %v1893_v42  ;;  %v1909_v34 = vmul.f32 %v3713_v31, %v3713_v31  ;;  %v3718_v7 = vmul.f32 %v3568_v23, %v1900_v40 }
 0xd42   :  { %v2118_v36 = vsel %vm2114_vm12, %v2076_v3, 0.0  ;;  %v2120_v42 = vsel %vm2114_vm12, %v2077_v27, 0.0 }
 0xd43   :  { %v1902_v17 = vsub.f32 %v1877_v26, %v1898_v43  ;;  %1914 = vadd.xlane.f32.xlu1 %v1909_v34  ;;  %v1908_v44 = vmul.f32 %v3718_v7, %v3718_v7  ;;  %v3723_v11 = vmul.f32 %v3568_v23, %v1903_v41  ;;  %v2281_v26 = vld [vmem:[%s3821_s3 + $0x1] ss:$0 sm:$0xff]  ;;  %v2282_v43 = vld [vmem:[%s3821_s3 + $0x2] ss:$0 sm:$0xff] }
 0xd45   :  { %1912 = vadd.xlane.f32.xlu0 %v1908_v44  ;;  %v1911_v12 = vmul.f32 %v3723_v11, %v3723_v11  ;;  %v3728_v45 = vmul.f32 %v3568_v23, %v1902_v17  ;;  %v1962_v23 = vld [vmem:[%s3822_s4 + $0x50] sm:$0xff] }
 0xd46   :  { %2837 = vmatprep.subr.mxu1 %v1962_v23 }
 0xd47   :  { %1918 = vadd.xlane.f32.xlu1 %v1911_v12  ;;  %v1910_v37 = vmul.f32 %v3728_v45, %v3728_v45  ;;  %2838 = vmatpush3.msra.mxu1 %v1962_v23  ;;  %v2062_v12 = vld [vmem:[%s3823_s5] sm:$0xff] }
 0xd48   :  { %2839 = vmatprep.subr.mxu1 %v1961_v48 }
 0xd49   :  { %1916 = vadd.xlane.f32.xlu0 %v1910_v37  ;;  %2840 = vmatpush3.msra.mxu1 %v1961_v48 }
 0xd4a   :  { %2841 = vmatprep.subr.mxu1 %v1960_v49 }
 0xd4b   :  { %2842 = vmatpush3.msra.mxu1 %v1960_v49 }
 0xd4c   :  { %2843 = vmatprep.subr.mxu1 %v1959_v50 }
 0xd4d   :  { %2844 = vmatpush3.msra.mxu1 %v1959_v50  ;;  %v2064_v50 = vld [vmem:[%s3823_s5 + $0x10] sm:$0xff] }
 0xd4e   :  { %2845 = vmatprep.subr.mxu1 %v1958_v52 }
 0xd4f   :  { %2846 = vmatpush3.msra.mxu1 %v1958_v52 }
 0xd50   :  { %2847 = vmatprep.subr.mxu1 %v1957_v57 }
 0xd51   :  { %2848 = vmatpush3.msra.mxu1 %v1957_v57 }
 0xd52   :  { %2849 = vmatprep.subr.mxu1 %v1956_v51 }
 0xd53   :  { %2850 = vmatpush3.msra.mxu1 %v1956_v51 }
 0xd54   :  { %2851 = vmatprep.subr.mxu1 %v1955_v58 }
 0xd55   :  { %2852 = vmatpush3.msra.mxu1 %v1955_v58 }
 0xd56   :  { %2853 = vmatprep.subr.mxu1 %v1954_v0 }
 0xd57   :  { %2854 = vmatpush3.msra.mxu1 %v1954_v0 }
 0xd58   :  { %2855 = vmatprep.subr.mxu1 %v1953_v28  ;;  %2085 = vperm.xlu1 %2879, %v2075_v59  }
 0xd59   :  { %2856 = vmatpush3.msra.mxu1 %v1953_v28 }
 0xd5a   :  { %2857 = vmatprep.subr.mxu1 %v1952_v47 }
 0xd5b   :  { %2858 = vmatpush3.msra.mxu1 %v1952_v47 }
 0xd5c   :  { %2090 = vperm.xlu1 %2879, %v2076_v3  }
 0xd5f   :  { %2080 = vperm.xlu0 %2878, %v2074_v62  }
 0xd60   :  { %2095 = vperm.xlu1 %2879, %v2077_v27  }
 0xdcc   :  { %v1915_v5 = vpop.xlane.xlu1 %1914 }
 0xdcd   :  { %v1921_v6 = vmul.f32 0.03125, %v1915_v5 }
 0xdce   :  { %v1913_v1 = vpop.xlane.xlu0 %1912 }
 0xdcf   :  { %v1925_v8 = vadd.f32 1e-05, %v1921_v6  ;;  %v1920_v2 = vmul.f32 0.03125, %v1913_v1 }
 0xdd0   :  { %v1919_v53 = vpop.xlane.xlu1 %1918 }
 0xdd1   :  { %2960 = vrsqrt.f32 %v1925_v8  ;;  %v1924_v54 = vadd.f32 1e-05, %v1920_v2  ;;  %v1923_v4 = vmul.f32 0.03125, %v1919_v53 }
 0xdd2   :  { %v1917_v13 = vpop.xlane.xlu0 %1916 }
 0xdd3   :  { %2962 = vrsqrt.f32 %v1924_v54  ;;  %v1927_v14 = vadd.f32 1e-05, %v1923_v4  ;;  %v1922_v24 = vmul.f32 0.03125, %v1917_v13 }
 0xdd4   :  { %v2086_v44 = vpop.permute.xlu1 %2085 }
 0xdd5   :  { %2964 = vrsqrt.f32 %v1927_v14  ;;  %v1926_v9 = vadd.f32 1e-05, %v1922_v24 }
 0xdd7   :  { %2966 = vrsqrt.f32 %v1926_v9 }
 0xdd8   :  { %v2091_v28 = vpop.permute.xlu1 %2090 }
 0xdda   :  { %v2081_v52 = vpop.permute.xlu0 %2080 }
 0xdde   :  { %v2961_v15 = vpop.eup %2960 }
 0xddf   :  { %v1933_v16 = vmul.f32 %v2961_v15, %v3713_v31  ;;  %v2119_v31 = vadd.f32 %v2118_v36, %v2117_v55  ;;  %v2096_v55 = vpop.permute.xlu1 %2095 }
 0xde0   :  { %v2963_v19 = vpop.eup %2962 }
 0xde1   :  { %v1932_v20 = vmul.f32 %v2963_v19, %v3718_v7  ;;  %v1941_v25 = vmul.f32 %v2280_v10, %v1933_v16  ;;  %v2121_v41 = vadd.f32 %v2120_v42, %v2119_v31  ;;  %v2063_v7 = vld [vmem:[%s3823_s5 + $0x8] sm:$0xff]  ;;  %s3021_s5 = smov [#allocation3]  }
 0xde2   :  { %v2965_v22 = vpop.eup %2964  ;;  %s2144_s9 = sshll.u32 %s3021_s5, 4  ;;  %s2145_s9 = int_to_ptr.vmem [resolvable:$true] %s2144_s9 }
 0xde3   :  { %v1940_v18 = vmul.f32 %v2280_v10, %v1932_v20  ;;  %v1935_v29 = vmul.f32 %v2965_v22, %v3723_v11  ;;  %v1949_v30 = vadd.f32 %v2281_v26, %v1941_v25  ;;  %2122 = vadd.xlane.f32.xlu0 %v2121_v41  ;;  %s2974_s2 = scalar_lea.vmem %s2145_s9, 512  ;;  %p2979_p1 = scmp.lt.s32.totalorder %s2145_s9, %s2145_s9 }
 0xde4   :  { %v2967_v21 = vpop.eup %2966  ;;  %p2975_p0 = scmp.ne.s32.totalorder %s2145_s9, %s2974_s2  ;;  %p2980_p2 = scmp.lt.s32.totalorder %s2974_s2, %s2974_s2 }
 0xde5   :  { %v1948_v32 = vadd.f32 %v2281_v26, %v1940_v18  ;;  %v1934_v33 = vmul.f32 %v2967_v21, %v3728_v45  ;;  %v1943_v38 = vmul.f32 %v2280_v10, %v1935_v29 }
 0xde6   :  { %p2981_p3 = por %p2980_p2, %p2979_p1 }
 0xde7   :  { %2859 = vmatprep.mubr.f32.mxu1 %v1948_v32  ;;  %v1942_v35 = vmul.f32 %v2280_v10, %v1934_v33  ;;  %v1951_v40 = vadd.f32 %v2281_v26, %v1943_v38 }
 0xde8   :  { %2860 = vmatmul.mubr.f32.vlgmr.msra.gmra.mxu1 %v1949_v30  ;;  %p2982_p4 = pnand %p2981_p3, %p2975_p0 }
 0xde9   :  { %v1950_v39 = vadd.f32 %v2281_v26, %v1942_v35 }
 0xdeb   :  { %2862 = vmatprep.mubr.f32.mxu1 %v1950_v39 }
 0xdec   :  { %2863 = vmatmul.mubr.f32.gmra.mxu1 %v1951_v40 }
 0xe6c   :  { %v2123_v1 = vpop.xlane.xlu0 %2122 }
 0xe6d   :  { %v2124_v8 = vrot.slane %v2123_v1, 4 }
 0xe6f   :  { %v2125_v2 = vadd.f32 %v2124_v8, %v2123_v1 }
 0xe71   :  { %v2126_v53 = vrot.slane %v2125_v2, 2 }
 0xe73   :  { %v2127_v14 = vadd.f32 %v2126_v53, %v2125_v2 }
 0xe75   :  { %v2128_v15 = vrot.slane %v2127_v14, 1 }
 0xea8   :  { %v2861_v34 = vpop.f32.mrf.mxu1 }
 0xea9   :  { %v2045_v17 = vadd.f32 %v2861_v34, %v2282_v43 }
 0xeaa   :  { %v2039_v11 = vpop.f32.mrf.mxu1 }
 0xeab   :  { %2059 = vst [vmem:[#allocation3 + $0x8] sm:$0xff] %v2045_v17  ;;  %v2067_v45 = vsub.f32 %v2045_v17, %v2063_v7  ;;  %v2040_v37 = vadd.f32 %v2282_v43, %v2039_v11 }
 0xeac   :  { %v2864_v56 = vpop.f32.mrf.mxu1 }
 0xead   :  { %2058 = vst [vmem:[#allocation3] sm:$0xff] %v2040_v37  ;;  %v2066_v23 = vsub.f32 %v2040_v37, %v2062_v12  ;;  %v2055_v48 = vadd.f32 %v2864_v56, %v2282_v43  ;;  %v2071_v57 = vmul.f32 %v2067_v45, %v2067_v45 }
 0xeae   :  { %v2049_v49 = vpop.f32.mrf.mxu1 }
 0xeaf   :  { %2061 = vst [vmem:[#allocation3 + $0x18] sm:$0xff] %v2055_v48  ;;  %v2069_v51 = vsub.f32 %v2055_v48, %v2065_v46  ;;  %v2050_v58 = vadd.f32 %v2282_v43, %v2049_v49  ;;  %v2070_v0 = vmul.f32 %v2066_v23, %v2066_v23  ;;  %v2099_v62 = vmul.f32 %v2086_v44, %v2071_v57 }
 0xeb1   :  { %2060 = vst [vmem:[#allocation3 + $0x10] sm:$0xff] %v2050_v58  ;;  %v2068_v47 = vsub.f32 %v2050_v58, %v2064_v50  ;;  %v2098_v59 = vmul.f32 %v2081_v52, %v2070_v0  ;;  %v2073_v60 = vmul.f32 %v2069_v51, %v2069_v51 }
 0xeb3   :  { %v2072_v61 = vmul.f32 %v2068_v47, %v2068_v47  ;;  %v2102_v3 = vadd.f32 %v2099_v62, %v2098_v59  ;;  %v2101_v27 = vmul.f32 %v2096_v55, %v2073_v60 }
 0xeb5   :  { %v2100_v63 = vmul.f32 %v2091_v28, %v2072_v61 }
 0xeb7   :  { %v2103_v5 = vadd.f32 %v2102_v3, %v2100_v63 }
 0xeb9   :  { %v2104_v6 = vadd.f32 %v2103_v5, %v2101_v27 }
 0xebb   :  { %2105 = vadd.xlane.f32.xlu1 %v2104_v6 }
 0xf44   :  { %v2106_v54 = vpop.xlane.xlu1 %2105 }
 0xf45   :  { %v2107_v4 = vrot.slane %v2106_v54, 4 }
 0xf47   :  { %v2108_v13 = vadd.f32 %v2107_v4, %v2106_v54 }
 0xf49   :  { %v2109_v24 = vrot.slane %v2108_v13, 2 }
 0xf4b   :  { %v2110_v9 = vadd.f32 %v2109_v24, %v2108_v13 }
 0xf4c   :  { %2985 = shalt.err (!%p2982_p4)
}
 0xf4d   :  { %s3022_s10 = smov 128   ;;  %s3023_s11 = smov 8   ;;  %v2111_v16 = vrot.slane %v2110_v9, 1  ;;  %v2129_v19 = vadd.f32 %v2128_v15, %v2127_v14 }
 0xf4e   :  { %2150 = dma.vmem_to_hbm [thread:$0]  %s2145_s9, 512, %s3825_s7, [#allocation4], %s3022_s10, %s3022_s10, %s3023_s11  }
 0xf4f   :  { %v2112_v10 = vadd.f32 %v2111_v16, %v2110_v9  ;;  %s3024_s17 = smov [#allocation5]  }
 0xf50   :  { %s2157_s4 = sshll.u32 %s3024_s17, 4  ;;  %s2158_s4 = int_to_ptr.vmem [resolvable:$true] %s2157_s4 }
 0xf51   :  { %2865 = vpush %v2112_v10  ;;  %s2994_s7 = scalar_lea.vmem %s2158_s4, 16  ;;  %s2998_s20 = scalar_lea.vmem %s2158_s4, 32 }
 0xf52   :  { %2867 = vpush %v2129_v19  ;;  %p2995_p5 = scmp.ne.s32.totalorder %s2158_s4, %s2994_s7  ;;  %p2999_p6 = scmp.lt.s32.totalorder %s2158_s4, %s2158_s4 }
 0xf53   :  { %p3000_p7 = scmp.lt.s32.totalorder %s2998_s20, %s2994_s7 }
 0xf55   :  { %p3001_p8 = por %p3000_p7, %p2999_p6 }
 0xf57   :  { %p3002_p9 = pnand %p3001_p8, %p2995_p5 }
 0xf82   :  { %s2866_s14 = spop %2865 }
 0xf83   :  { %s2868_s15 = spop %2867 }
 0xf84   :  { %s2131_s16 = smul.f32 64.0, %s2868_s15 }
 0xf86   :  { %v2132_v20 = vstv %s2131_s16 }
 0xf87   :  { %2968 = vrcp.f32 %v2132_v20 }
 0xf94   :  { %v2969_v22 = vpop.eup %2968 }
 0xf95   :  { %2869 = vpush %v2969_v22 }
 0xfc6   :  { %s2870_s18 = spop %2869 }
 0xfc7   :  { %s2135_s19 = smul.f32 %s2870_s18, %s2866_s14 }
 0xfc9   :  { %v2136_v25 = vstv %s2135_s19 }
 0xfca   :  { %2138 = vst [vmem:[#allocation5] sm:$0x1] %v2136_v25 }
 0xfcb   :  { %3005 = shalt.err (!%p3002_p9)
}
 0xfcc   :  { %2160 = dma.vmem_to_hbm [thread:$0]  %s2158_s4, 16, %s3826_s8, [#allocation6]  }
 0xfcd   :  { %3014 = dma.done.wait [#allocation4], 512  }
 0xfce   :  { %3015 = vsyncadd [#allocation4], 4294966784 }
 0xfcf   :  { %3016 = dma.done.wait [#allocation6], 16  }
 0xfd0   :  { %3017 = vsyncadd [#allocation6], 4294967280 }
 0xfd1   :  { %2167 = vsyncpa [#allocation4], 1 }
 0xfd2   :  { %2168 = vsyncpa [#allocation6], 1 }

</bundles_post_ra>
